<compile_context>
chip_gen: v7x
topology: tpu7x:2x2x1
jax: 0.10.0
libtpu: 0.0.40
codegen_flags: <defaults>
</compile_context>

<pallas_src>
import functools

import numpy as np
import jax
import jax.numpy as jnp
from jax.experimental import pallas as pl
from jax.experimental.pallas import tpu as pltpu

# ---------------- problem sizes (small, consistent with the module) ----------
B = 4          # batch
SRC_LEN = 6    # source sequence length
TRG_LEN = 7    # target sequence length
V = 32         # vocab size (encoder.input_dim == decoder.output_dim)
E = 16         # embedding dim
H = 32         # hid_dim
L = 2          # n_layers


# ---------------- fused seq2seq kernel ----------------------------------------
def _make_seq2seq_kernel(S, T_steps, n_layers, hid, vocab_p, batch_p):
    """Refs: src_emb (S,Bp,H) bf16, dec_emb (T,Bp,H) bf16,
             lstm_w (2L,2H,4H) bf16, lstm_b (2L,4H) f32,
             fc_w (H,Vp) bf16, fc_b (1,Vp) f32 (vocab pad = -1e30)
       Out:  (Bp, Vp) f32 — column t holds step-t argmax, rest zero."""
    Hd = hid

    def kernel(src_emb_ref, dec_emb_ref, lstm_w_ref, lstm_b_ref,
               fc_w_ref, fc_b_ref, out_ref):

        def lstm_cell(x, h_l, c_l, layer_idx):
            # weight slab read close to use (cheap VMEM vld, low vreg pressure)
            w = lstm_w_ref[layer_idx]                                 # (2H,4H) bf16
            # cast x and h to bf16 BEFORE the lane merge (half the moved data)
            x_cat = jnp.concatenate(
                [x.astype(jnp.bfloat16), h_l.astype(jnp.bfloat16)], axis=-1)
            # fused [x ‖ h] @ [Wih; Whh] on the MXU, f32 accumulate; bias row is
            # VPU sublane-broadcast by the add (no pinned pre-broadcast vregs)
            gates = (jnp.dot(x_cat, w, preferred_element_type=jnp.float32)
                     + lstm_b_ref[layer_idx:layer_idx + 1, :])        # (Bp,4H) f32
            # whole-vreg activations, then slice gates [i, f, g, o]
            sig = jax.nn.sigmoid(gates)
            tg = jnp.tanh(gates)
            i_g = sig[:, 0 * Hd:1 * Hd]
            f_g = sig[:, 1 * Hd:2 * Hd]
            g_g = tg[:, 2 * Hd:3 * Hd]
            o_g = sig[:, 3 * Hd:4 * Hd]
            # elementwise state stays f32 (v5e has no bf16 VPU/EUP datapath)
            c_new = f_g * c_l + i_g * g_g
            h_new = o_g * jnp.tanh(c_new)
            return h_new, c_new

        # zero-initialized LSTM state (PyTorch default), carried as values
        h = [jnp.zeros((batch_p, Hd), jnp.float32) for _ in range(n_layers)]
        c = [jnp.zeros((batch_p, Hd), jnp.float32) for _ in range(n_layers)]

        # ---- encoder: L-layer LSTM over the source sequence (static unroll) ----
        # TODO(synk): for long sequences switch to lax.fori_loop (h/c in VMEM
        # scratch) or a grid axis over time; at S=6/T=6 static unroll is fine.
        for t in range(S):
            x = src_emb_ref[t]
            for l in range(n_layers):
                h[l], c[l] = lstm_cell(x, h[l], c[l], l)
                x = h[l]

        # ---- decoder: one teacher-forced step per target position ----
        col = jax.lax.broadcasted_iota(jnp.int32, (batch_p, vocab_p), 1)  # hoisted
        fc_b = fc_b_ref[0:1, :]                                           # (1,Vp) f32
        out_acc = jnp.zeros((batch_p, vocab_p), jnp.float32)

        for t in range(T_steps):
            x = dec_emb_ref[t]
            for l in range(n_layers):
                h[l], c[l] = lstm_cell(x, h[l], c[l], n_layers + l)
                x = h[l]
            # bf16 fc matmul, f32 bias (with -1e30 pad sentinel) added after
            logits = (jnp.dot(x.astype(jnp.bfloat16), fc_w_ref[...],
                              preferred_element_type=jnp.float32) + fc_b)
            # argmax along vocab (first-max tie break, like torch.argmax)
            mx = jnp.max(logits, axis=-1, keepdims=True)
            top1 = jnp.min(jnp.where(logits == mx, col, vocab_p),
                           axis=-1, keepdims=True).astype(jnp.float32)   # (Bp,1)
            out_acc = jnp.where(col == t, top1, out_acc)

        # single lane-dense unmasked store
        out_ref[...] = out_acc

    return kernel


# ---------------- one-time weight packing (hoisted out of the hot path) -------
def prepare_params(params):
    """Pack module weights once into TPU-friendly slabs. Returns a dict:
       {'arrays': pytree-of-arrays for the jitted forward, 'vocab': int}."""
    vocab = params["fc_b"].shape[-1]
    hid = params["enc_layers"][0][1].shape[0]
    emb_dim = params["enc_emb"].shape[1]
    assert emb_dim <= hid, "embedding dim padded up to hid_dim for the fused slab"
    vocab_p = ((vocab + 127) // 128) * 128    # lane padding

    # embedding tables: pad feature dim E->H, cast to bf16 (MXU operand dtype)
    def pad_emb(w):
        out = jnp.zeros((w.shape[0], hid), jnp.float32).at[:, :emb_dim].set(w)
        return out.astype(jnp.bfloat16)

    # LSTM weights: one (2L, 2H, 4H) bf16 slab, one (2L, 4H) f32 bias
    def slab(wih, whh):
        wih_p = jnp.zeros((hid, 4 * hid), jnp.float32).at[:wih.shape[0]].set(wih)
        return jnp.concatenate([wih_p, whh], axis=0)            # (2H, 4H)

    all_layers = params["enc_layers"] + params["dec_layers"]
    lstm_w = jnp.stack([slab(w, u) for (w, u, _) in all_layers]).astype(jnp.bfloat16)
    lstm_b = jnp.stack([b.reshape(4 * hid) for (_, _, b) in all_layers])  # f32

    # fc: bf16 weight (H, Vp) + f32 bias (1, Vp); pad bias with -1e30 so argmax
    # never selects a padded vocab lane
    fc_w = (jnp.zeros((hid, vocab_p), jnp.float32)
            .at[:, :vocab].set(params["fc_w"]).astype(jnp.bfloat16))
    fc_b = (jnp.full((1, vocab_p), -1e30, jnp.float32)
            .at[:, :vocab].set(params["fc_b"]))

    arrays = {
        "enc_emb": pad_emb(params["enc_emb"]),   # (V, H) bf16
        "dec_emb": pad_emb(params["dec_emb"]),   # (V, H) bf16
        "lstm_w": lstm_w,                        # (2L, 2H, 4H) bf16
        "lstm_b": lstm_b,                        # (2L, 4H) f32
        "fc_w": fc_w,                            # (H, Vp) bf16
        "fc_b": fc_b,                            # (1, Vp) f32
    }
    return {"arrays": jax.device_put(arrays), "vocab": vocab}


# ---------------- jitted forward (glue ops fuse into one XLA program) ----------
@functools.partial(jax.jit, static_argnames=("vocab",))
def _forward_jit(src, trg, arrays, *, vocab):
    batch, trg_len = trg.shape
    S = src.shape[1]
    t_steps = trg_len - 1

    lstm_w = arrays["lstm_w"]
    n_layers = lstm_w.shape[0] // 2
    hid = lstm_w.shape[1] // 2
    vocab_p = arrays["fc_w"].shape[1]
    batch_p = ((batch + 7) // 8) * 8          # sublane padding

    # embedding lookups (gathers) + transpose + pad — all fused under jit
    src_e = jnp.transpose(arrays["enc_emb"][src], (1, 0, 2))        # (S, B, H) bf16

    # decoder inputs under always-on teacher forcing, exactly as the torch loop:
    #   step 0 and step 1 use trg[:, 0]; step k>=2 uses trg[:, k-1]
    dec_idx = np.concatenate([[0], np.arange(0, t_steps - 1)]).astype(np.int32)
    dec_tokens = trg[:, dec_idx]                                    # (B, T_steps)
    dec_e = jnp.transpose(arrays["dec_emb"][dec_tokens], (1, 0, 2)) # (T, B, H) bf16

    pad_b = [(0, 0), (0, batch_p - batch), (0, 0)]
    src_e = jnp.pad(src_e, pad_b)                                   # (S, Bp, H)
    dec_e = jnp.pad(dec_e, pad_b)                                   # (T, Bp, H)

    kernel = _make_seq2seq_kernel(S, t_steps, n_layers, hid, vocab_p, batch_p)
    vmem = pl.BlockSpec(memory_space=pltpu.MemorySpace.VMEM)
    out = pl.pallas_call(
        kernel,
        out_shape=jax.ShapeDtypeStruct((batch_p, vocab_p), jnp.float32),
        in_specs=[vmem] * 6,
        out_specs=vmem,
        # TODO(synk): at realistic H/V sizes add a grid over vocab tiles (and a
        # batch-tile 'parallel' axis for v7x's 2 TCs) + explicit vmem_limit_bytes;
        # at ~100 KB total footprint neither binds here.
    )(src_e, dec_e, lstm_w, arrays["lstm_b"], arrays["fc_w"], arrays["fc_b"])

    # columns 0..t_steps-1 hold argmax tokens, the rest stay zero — exactly the
    # module's outputs = zeros(batch, vocab); outputs[:, t-1] = top1 contract.
    return out[:batch, :vocab]


def seq2seq_lstm_forward(src, trg, packed, teacher_forcing_ratio=1.0):
    # TODO(synk): teacher_forcing_ratio < 1 (python random feedback of predicted
    # tokens) is not implemented; the module's default ratio=1 path is exact.
    assert teacher_forcing_ratio >= 1.0
    return _forward_jit(src, trg, packed["arrays"], vocab=packed["vocab"])


# ---------------- deterministic parameter init --------------------------------
def init_params(key, vocab, emb, hid, n_layers):
    def nxt():
        nonlocal key
        key, sub = jax.random.split(key)
        return sub

    bound = 1.0 / float(hid) ** 0.5

    def lstm_layer(in_dim):
        wih = jax.random.uniform(nxt(), (in_dim, 4 * hid), jnp.float32, -bound, bound)
        whh = jax.random.uniform(nxt(), (hid, 4 * hid), jnp.float32, -bound, bound)
        b_ih = jax.random.uniform(nxt(), (1, 4 * hid), jnp.float32, -bound, bound)
        b_hh = jax.random.uniform(nxt(), (1, 4 * hid), jnp.float32, -bound, bound)
        return (wih, whh, b_ih + b_hh)

    return {
        "enc_emb": jax.random.normal(nxt(), (vocab, emb), jnp.float32),
        "dec_emb": jax.random.normal(nxt(), (vocab, emb), jnp.float32),
        "enc_layers": [lstm_layer(emb if l == 0 else hid) for l in range(n_layers)],
        "dec_layers": [lstm_layer(emb if l == 0 else hid) for l in range(n_layers)],
        "fc_w": jax.random.uniform(nxt(), (hid, vocab), jnp.float32, -bound, bound),
        "fc_b": jax.random.uniform(nxt(), (1, vocab), jnp.float32, -bound, bound),
    }


if __name__ == "__main__":
    key = jax.random.PRNGKey(0)
    pk, sk, tk = jax.random.split(key, 3)
    params = init_params(pk, V, E, H, L)
    packed = prepare_params(params)          # one-time packing, off the hot path

    src = jax.random.randint(sk, (B, SRC_LEN), 0, V, dtype=jnp.int32)
    trg = jax.random.randint(tk, (B, TRG_LEN), 0, V, dtype=jnp.int32)

    out = seq2seq_lstm_forward(src, trg, packed)
    out = jax.block_until_ready(out)
    assert out.shape == (B, V) and out.dtype == jnp.float32
    # columns beyond trg_len-1 must stay zero, matching torch.zeros init
    assert bool(jnp.all(out[:, TRG_LEN - 1:] == 0.0))
    # argmax outputs must be valid (unpadded) vocab indices
    assert bool(jnp.all(out[:, :TRG_LEN - 1] < V))
    print("KERNEL_OK")
</pallas_src>

<mosaic_0001>
module attributes {stable_mosaic.version = 11 : i64} {
  func.func @kernel(%arg0: memref<6x8x32xbf16, #tpu.memory_space<vmem>>, %arg1: memref<6x8x32xbf16, #tpu.memory_space<vmem>>, %arg2: memref<4x64x128xbf16, #tpu.memory_space<vmem>>, %arg3: memref<4x128xf32, #tpu.memory_space<vmem>>, %arg4: memref<32x128xbf16, #tpu.memory_space<vmem>>, %arg5: memref<1x128xf32, #tpu.memory_space<vmem>>, %arg6: memref<8x128xf32, #tpu.memory_space<vmem>>) attributes {dimension_semantics = [], scalar_prefetch = 0 : i64, scratch_operands = 0 : i64, tpu.core_type = #tpu.core_type<tc>} {
    %cst = arith.constant 0.000000e+00 : f32
    %0 = vector.broadcast %cst : f32 to vector<8x32xf32>
    %cst_0 = arith.constant 0.000000e+00 : f32
    %1 = vector.broadcast %cst_0 : f32 to vector<8x32xf32>
    %cst_1 = arith.constant 0.000000e+00 : f32
    %2 = vector.broadcast %cst_1 : f32 to vector<8x32xf32>
    %cst_2 = arith.constant 0.000000e+00 : f32
    %3 = vector.broadcast %cst_2 : f32 to vector<8x32xf32>
    %c0 = arith.constant 0 : index
    %c0_3 = arith.constant 0 : index
    %c0_4 = arith.constant 0 : index
    %4 = vector.load %arg0[%c0, %c0_3, %c0_4] : memref<6x8x32xbf16, #tpu.memory_space<vmem>>, vector<1x8x32xbf16>
    %5 = vector.shape_cast %4 : vector<1x8x32xbf16> to vector<8x32xbf16>
    %c0_5 = arith.constant 0 : index
    %c0_6 = arith.constant 0 : index
    %c0_7 = arith.constant 0 : index
    %6 = vector.load %arg2[%c0_5, %c0_6, %c0_7] : memref<4x64x128xbf16, #tpu.memory_space<vmem>>, vector<1x64x128xbf16>
    %7 = vector.shape_cast %6 : vector<1x64x128xbf16> to vector<64x128xbf16>
    %8 = arith.truncf %0 : vector<8x32xf32> to vector<8x32xbf16>
    %9 = tpu.concatenate %5, %8 in 1 : vector<8x32xbf16>, vector<8x32xbf16> -> vector<8x64xbf16>
    %cst_8 = arith.constant dense<0.000000e+00> : vector<8x128xf32>
    %10 = tpu.matmul %9, %7, %cst_8 {dimension_numbers = #tpu.dot_dimension_numbers<[1], [0], [0], [1], [0, 0, 1, 1], [], []>} : vector<8x64xbf16>, vector<64x128xbf16>, vector<8x128xf32> -> vector<8x128xf32>
    %c0_9 = arith.constant 0 : index
    %c0_10 = arith.constant 0 : index
    %11 = vector.load %arg3[%c0_9, %c0_10] : memref<4x128xf32, #tpu.memory_space<vmem>>, vector<1x128xf32>
    %12 = vector.broadcast %11 : vector<1x128xf32> to vector<8x128xf32>
    %13 = arith.addf %10, %12 : vector<8x128xf32>
    %14 = arith.negf %13 : vector<8x128xf32>
    %15 = math.exp %14 : vector<8x128xf32>
    %cst_11 = arith.constant 1.000000e+00 : f32
    %16 = vector.broadcast %cst_11 : f32 to vector<8x128xf32>
    %17 = arith.addf %16, %15 : vector<8x128xf32>
    %18 = arith.divf %16, %17 : vector<8x128xf32>
    %19 = math.tanh %13 : vector<8x128xf32>
    %20 = vector.extract_strided_slice %18 {offsets = [0, 0], sizes = [8, 32], strides = [1, 1]} : vector<8x128xf32> to vector<8x32xf32>
    %21 = vector.extract_strided_slice %18 {offsets = [0, 32], sizes = [8, 32], strides = [1, 1]} : vector<8x128xf32> to vector<8x32xf32>
    %22 = vector.extract_strided_slice %19 {offsets = [0, 64], sizes = [8, 32], strides = [1, 1]} : vector<8x128xf32> to vector<8x32xf32>
    %23 = vector.extract_strided_slice %18 {offsets = [0, 96], sizes = [8, 32], strides = [1, 1]} : vector<8x128xf32> to vector<8x32xf32>
    %24 = arith.mulf %21, %2 : vector<8x32xf32>
    %25 = arith.mulf %20, %22 : vector<8x32xf32>
    %26 = arith.addf %24, %25 : vector<8x32xf32>
    %27 = math.tanh %26 : vector<8x32xf32>
    %28 = arith.mulf %23, %27 : vector<8x32xf32>
    %c1 = arith.constant 1 : index
    %c0_12 = arith.constant 0 : index
    %c0_13 = arith.constant 0 : index
    %29 = vector.load %arg2[%c1, %c0_12, %c0_13] : memref<4x64x128xbf16, #tpu.memory_space<vmem>>, vector<1x64x128xbf16>
    %30 = vector.shape_cast %29 : vector<1x64x128xbf16> to vector<64x128xbf16>
    %31 = arith.truncf %28 : vector<8x32xf32> to vector<8x32xbf16>
    %32 = arith.truncf %1 : vector<8x32xf32> to vector<8x32xbf16>
    %33 = tpu.concatenate %31, %32 in 1 : vector<8x32xbf16>, vector<8x32xbf16> -> vector<8x64xbf16>
    %cst_14 = arith.constant dense<0.000000e+00> : vector<8x128xf32>
    %34 = tpu.matmul %33, %30, %cst_14 {dimension_numbers = #tpu.dot_dimension_numbers<[1], [0], [0], [1], [0, 0, 1, 1], [], []>} : vector<8x64xbf16>, vector<64x128xbf16>, vector<8x128xf32> -> vector<8x128xf32>
    %c1_15 = arith.constant 1 : index
    %c0_16 = arith.constant 0 : index
    %35 = vector.load %arg3[%c1_15, %c0_16] : memref<4x128xf32, #tpu.memory_space<vmem>>, vector<1x128xf32>
    %36 = vector.broadcast %35 : vector<1x128xf32> to vector<8x128xf32>
    %37 = arith.addf %34, %36 : vector<8x128xf32>
    %38 = arith.negf %37 : vector<8x128xf32>
    %39 = math.exp %38 : vector<8x128xf32>
    %cst_17 = arith.constant 1.000000e+00 : f32
    %40 = vector.broadcast %cst_17 : f32 to vector<8x128xf32>
    %41 = arith.addf %40, %39 : vector<8x128xf32>
    %42 = arith.divf %40, %41 : vector<8x128xf32>
    %43 = math.tanh %37 : vector<8x128xf32>
    %44 = vector.extract_strided_slice %42 {offsets = [0, 0], sizes = [8, 32], strides = [1, 1]} : vector<8x128xf32> to vector<8x32xf32>
    %45 = vector.extract_strided_slice %42 {offsets = [0, 32], sizes = [8, 32], strides = [1, 1]} : vector<8x128xf32> to vector<8x32xf32>
    %46 = vector.extract_strided_slice %43 {offsets = [0, 64], sizes = [8, 32], strides = [1, 1]} : vector<8x128xf32> to vector<8x32xf32>
    %47 = vector.extract_strided_slice %42 {offsets = [0, 96], sizes = [8, 32], strides = [1, 1]} : vector<8x128xf32> to vector<8x32xf32>
    %48 = arith.mulf %45, %3 : vector<8x32xf32>
    %49 = arith.mulf %44, %46 : vector<8x32xf32>
    %50 = arith.addf %48, %49 : vector<8x32xf32>
    %51 = math.tanh %50 : vector<8x32xf32>
    %52 = arith.mulf %47, %51 : vector<8x32xf32>
    %c1_18 = arith.constant 1 : index
    %c0_19 = arith.constant 0 : index
    %c0_20 = arith.constant 0 : index
    %53 = vector.load %arg0[%c1_18, %c0_19, %c0_20] : memref<6x8x32xbf16, #tpu.memory_space<vmem>>, vector<1x8x32xbf16>
    %54 = vector.shape_cast %53 : vector<1x8x32xbf16> to vector<8x32xbf16>
    %c0_21 = arith.constant 0 : index
    %c0_22 = arith.constant 0 : index
    %c0_23 = arith.constant 0 : index
    %55 = vector.load %arg2[%c0_21, %c0_22, %c0_23] : memref<4x64x128xbf16, #tpu.memory_space<vmem>>, vector<1x64x128xbf16>
    %56 = vector.shape_cast %55 : vector<1x64x128xbf16> to vector<64x128xbf16>
    %57 = arith.truncf %28 : vector<8x32xf32> to vector<8x32xbf16>
    %58 = tpu.concatenate %54, %57 in 1 : vector<8x32xbf16>, vector<8x32xbf16> -> vector<8x64xbf16>
    %cst_24 = arith.constant dense<0.000000e+00> : vector<8x128xf32>
    %59 = tpu.matmul %58, %56, %cst_24 {dimension_numbers = #tpu.dot_dimension_numbers<[1], [0], [0], [1], [0, 0, 1, 1], [], []>} : vector<8x64xbf16>, vector<64x128xbf16>, vector<8x128xf32> -> vector<8x128xf32>
    %c0_25 = arith.constant 0 : index
    %c0_26 = arith.constant 0 : index
    %60 = vector.load %arg3[%c0_25, %c0_26] : memref<4x128xf32, #tpu.memory_space<vmem>>, vector<1x128xf32>
    %61 = vector.broadcast %60 : vector<1x128xf32> to vector<8x128xf32>
    %62 = arith.addf %59, %61 : vector<8x128xf32>
    %63 = arith.negf %62 : vector<8x128xf32>
    %64 = math.exp %63 : vector<8x128xf32>
    %cst_27 = arith.constant 1.000000e+00 : f32
    %65 = vector.broadcast %cst_27 : f32 to vector<8x128xf32>
    %66 = arith.addf %65, %64 : vector<8x128xf32>
    %67 = arith.divf %65, %66 : vector<8x128xf32>
    %68 = math.tanh %62 : vector<8x128xf32>
    %69 = vector.extract_strided_slice %67 {offsets = [0, 0], sizes = [8, 32], strides = [1, 1]} : vector<8x128xf32> to vector<8x32xf32>
    %70 = vector.extract_strided_slice %67 {offsets = [0, 32], sizes = [8, 32], strides = [1, 1]} : vector<8x128xf32> to vector<8x32xf32>
    %71 = vector.extract_strided_slice %68 {offsets = [0, 64], sizes = [8, 32], strides = [1, 1]} : vector<8x128xf32> to vector<8x32xf32>
    %72 = vector.extract_strided_slice %67 {offsets = [0, 96], sizes = [8, 32], strides = [1, 1]} : vector<8x128xf32> to vector<8x32xf32>
    %73 = arith.mulf %70, %26 : vector<8x32xf32>
    %74 = arith.mulf %69, %71 : vector<8x32xf32>
    %75 = arith.addf %73, %74 : vector<8x32xf32>
    %76 = math.tanh %75 : vector<8x32xf32>
    %77 = arith.mulf %72, %76 : vector<8x32xf32>
    %c1_28 = arith.constant 1 : index
    %c0_29 = arith.constant 0 : index
    %c0_30 = arith.constant 0 : index
    %78 = vector.load %arg2[%c1_28, %c0_29, %c0_30] : memref<4x64x128xbf16, #tpu.memory_space<vmem>>, vector<1x64x128xbf16>
    %79 = vector.shape_cast %78 : vector<1x64x128xbf16> to vector<64x128xbf16>
    %80 = arith.truncf %77 : vector<8x32xf32> to vector<8x32xbf16>
    %81 = arith.truncf %52 : vector<8x32xf32> to vector<8x32xbf16>
    %82 = tpu.concatenate %80, %81 in 1 : vector<8x32xbf16>, vector<8x32xbf16> -> vector<8x64xbf16>
    %cst_31 = arith.constant dense<0.000000e+00> : vector<8x128xf32>
    %83 = tpu.matmul %82, %79, %cst_31 {dimension_numbers = #tpu.dot_dimension_numbers<[1], [0], [0], [1], [0, 0, 1, 1], [], []>} : vector<8x64xbf16>, vector<64x128xbf16>, vector<8x128xf32> -> vector<8x128xf32>
    %c1_32 = arith.constant 1 : index
    %c0_33 = arith.constant 0 : index
    %84 = vector.load %arg3[%c1_32, %c0_33] : memref<4x128xf32, #tpu.memory_space<vmem>>, vector<1x128xf32>
    %85 = vector.broadcast %84 : vector<1x128xf32> to vector<8x128xf32>
    %86 = arith.addf %83, %85 : vector<8x128xf32>
    %87 = arith.negf %86 : vector<8x128xf32>
    %88 = math.exp %87 : vector<8x128xf32>
    %cst_34 = arith.constant 1.000000e+00 : f32
    %89 = vector.broadcast %cst_34 : f32 to vector<8x128xf32>
    %90 = arith.addf %89, %88 : vector<8x128xf32>
    %91 = arith.divf %89, %90 : vector<8x128xf32>
    %92 = math.tanh %86 : vector<8x128xf32>
    %93 = vector.extract_strided_slice %91 {offsets = [0, 0], sizes = [8, 32], strides = [1, 1]} : vector<8x128xf32> to vector<8x32xf32>
    %94 = vector.extract_strided_slice %91 {offsets = [0, 32], sizes = [8, 32], strides = [1, 1]} : vector<8x128xf32> to vector<8x32xf32>
    %95 = vector.extract_strided_slice %92 {offsets = [0, 64], sizes = [8, 32], strides = [1, 1]} : vector<8x128xf32> to vector<8x32xf32>
    %96 = vector.extract_strided_slice %91 {offsets = [0, 96], sizes = [8, 32], strides = [1, 1]} : vector<8x128xf32> to vector<8x32xf32>
    %97 = arith.mulf %94, %50 : vector<8x32xf32>
    %98 = arith.mulf %93, %95 : vector<8x32xf32>
    %99 = arith.addf %97, %98 : vector<8x32xf32>
    %100 = math.tanh %99 : vector<8x32xf32>
    %101 = arith.mulf %96, %100 : vector<8x32xf32>
    %c2 = arith.constant 2 : index
    %c0_35 = arith.constant 0 : index
    %c0_36 = arith.constant 0 : index
    %102 = vector.load %arg0[%c2, %c0_35, %c0_36] : memref<6x8x32xbf16, #tpu.memory_space<vmem>>, vector<1x8x32xbf16>
    %103 = vector.shape_cast %102 : vector<1x8x32xbf16> to vector<8x32xbf16>
    %c0_37 = arith.constant 0 : index
    %c0_38 = arith.constant 0 : index
    %c0_39 = arith.constant 0 : index
    %104 = vector.load %arg2[%c0_37, %c0_38, %c0_39] : memref<4x64x128xbf16, #tpu.memory_space<vmem>>, vector<1x64x128xbf16>
    %105 = vector.shape_cast %104 : vector<1x64x128xbf16> to vector<64x128xbf16>
    %106 = arith.truncf %77 : vector<8x32xf32> to vector<8x32xbf16>
    %107 = tpu.concatenate %103, %106 in 1 : vector<8x32xbf16>, vector<8x32xbf16> -> vector<8x64xbf16>
    %cst_40 = arith.constant dense<0.000000e+00> : vector<8x128xf32>
    %108 = tpu.matmul %107, %105, %cst_40 {dimension_numbers = #tpu.dot_dimension_numbers<[1], [0], [0], [1], [0, 0, 1, 1], [], []>} : vector<8x64xbf16>, vector<64x128xbf16>, vector<8x128xf32> -> vector<8x128xf32>
    %c0_41 = arith.constant 0 : index
    %c0_42 = arith.constant 0 : index
    %109 = vector.load %arg3[%c0_41, %c0_42] : memref<4x128xf32, #tpu.memory_space<vmem>>, vector<1x128xf32>
    %110 = vector.broadcast %109 : vector<1x128xf32> to vector<8x128xf32>
    %111 = arith.addf %108, %110 : vector<8x128xf32>
    %112 = arith.negf %111 : vector<8x128xf32>
    %113 = math.exp %112 : vector<8x128xf32>
    %cst_43 = arith.constant 1.000000e+00 : f32
    %114 = vector.broadcast %cst_43 : f32 to vector<8x128xf32>
    %115 = arith.addf %114, %113 : vector<8x128xf32>
    %116 = arith.divf %114, %115 : vector<8x128xf32>
    %117 = math.tanh %111 : vector<8x128xf32>
    %118 = vector.extract_strided_slice %116 {offsets = [0, 0], sizes = [8, 32], strides = [1, 1]} : vector<8x128xf32> to vector<8x32xf32>
    %119 = vector.extract_strided_slice %116 {offsets = [0, 32], sizes = [8, 32], strides = [1, 1]} : vector<8x128xf32> to vector<8x32xf32>
    %120 = vector.extract_strided_slice %117 {offsets = [0, 64], sizes = [8, 32], strides = [1, 1]} : vector<8x128xf32> to vector<8x32xf32>
    %121 = vector.extract_strided_slice %116 {offsets = [0, 96], sizes = [8, 32], strides = [1, 1]} : vector<8x128xf32> to vector<8x32xf32>
    %122 = arith.mulf %119, %75 : vector<8x32xf32>
    %123 = arith.mulf %118, %120 : vector<8x32xf32>
    %124 = arith.addf %122, %123 : vector<8x32xf32>
    %125 = math.tanh %124 : vector<8x32xf32>
    %126 = arith.mulf %121, %125 : vector<8x32xf32>
    %c1_44 = arith.constant 1 : index
    %c0_45 = arith.constant 0 : index
    %c0_46 = arith.constant 0 : index
    %127 = vector.load %arg2[%c1_44, %c0_45, %c0_46] : memref<4x64x128xbf16, #tpu.memory_space<vmem>>, vector<1x64x128xbf16>
    %128 = vector.shape_cast %127 : vector<1x64x128xbf16> to vector<64x128xbf16>
    %129 = arith.truncf %126 : vector<8x32xf32> to vector<8x32xbf16>
    %130 = arith.truncf %101 : vector<8x32xf32> to vector<8x32xbf16>
    %131 = tpu.concatenate %129, %130 in 1 : vector<8x32xbf16>, vector<8x32xbf16> -> vector<8x64xbf16>
    %cst_47 = arith.constant dense<0.000000e+00> : vector<8x128xf32>
    %132 = tpu.matmul %131, %128, %cst_47 {dimension_numbers = #tpu.dot_dimension_numbers<[1], [0], [0], [1], [0, 0, 1, 1], [], []>} : vector<8x64xbf16>, vector<64x128xbf16>, vector<8x128xf32> -> vector<8x128xf32>
    %c1_48 = arith.constant 1 : index
    %c0_49 = arith.constant 0 : index
    %133 = vector.load %arg3[%c1_48, %c0_49] : memref<4x128xf32, #tpu.memory_space<vmem>>, vector<1x128xf32>
    %134 = vector.broadcast %133 : vector<1x128xf32> to vector<8x128xf32>
    %135 = arith.addf %132, %134 : vector<8x128xf32>
    %136 = arith.negf %135 : vector<8x128xf32>
    %137 = math.exp %136 : vector<8x128xf32>
    %cst_50 = arith.constant 1.000000e+00 : f32
    %138 = vector.broadcast %cst_50 : f32 to vector<8x128xf32>
    %139 = arith.addf %138, %137 : vector<8x128xf32>
    %140 = arith.divf %138, %139 : vector<8x128xf32>
    %141 = math.tanh %135 : vector<8x128xf32>
    %142 = vector.extract_strided_slice %140 {offsets = [0, 0], sizes = [8, 32], strides = [1, 1]} : vector<8x128xf32> to vector<8x32xf32>
    %143 = vector.extract_strided_slice %140 {offsets = [0, 32], sizes = [8, 32], strides = [1, 1]} : vector<8x128xf32> to vector<8x32xf32>
    %144 = vector.extract_strided_slice %141 {offsets = [0, 64], sizes = [8, 32], strides = [1, 1]} : vector<8x128xf32> to vector<8x32xf32>
    %145 = vector.extract_strided_slice %140 {offsets = [0, 96], sizes = [8, 32], strides = [1, 1]} : vector<8x128xf32> to vector<8x32xf32>
    %146 = arith.mulf %143, %99 : vector<8x32xf32>
    %147 = arith.mulf %142, %144 : vector<8x32xf32>
    %148 = arith.addf %146, %147 : vector<8x32xf32>
    %149 = math.tanh %148 : vector<8x32xf32>
    %150 = arith.mulf %145, %149 : vector<8x32xf32>
    %c3 = arith.constant 3 : index
    %c0_51 = arith.constant 0 : index
    %c0_52 = arith.constant 0 : index
    %151 = vector.load %arg0[%c3, %c0_51, %c0_52] : memref<6x8x32xbf16, #tpu.memory_space<vmem>>, vector<1x8x32xbf16>
    %152 = vector.shape_cast %151 : vector<1x8x32xbf16> to vector<8x32xbf16>
    %c0_53 = arith.constant 0 : index
    %c0_54 = arith.constant 0 : index
    %c0_55 = arith.constant 0 : index
    %153 = vector.load %arg2[%c0_53, %c0_54, %c0_55] : memref<4x64x128xbf16, #tpu.memory_space<vmem>>, vector<1x64x128xbf16>
    %154 = vector.shape_cast %153 : vector<1x64x128xbf16> to vector<64x128xbf16>
    %155 = arith.truncf %126 : vector<8x32xf32> to vector<8x32xbf16>
    %156 = tpu.concatenate %152, %155 in 1 : vector<8x32xbf16>, vector<8x32xbf16> -> vector<8x64xbf16>
    %cst_56 = arith.constant dense<0.000000e+00> : vector<8x128xf32>
    %157 = tpu.matmul %156, %154, %cst_56 {dimension_numbers = #tpu.dot_dimension_numbers<[1], [0], [0], [1], [0, 0, 1, 1], [], []>} : vector<8x64xbf16>, vector<64x128xbf16>, vector<8x128xf32> -> vector<8x128xf32>
    %c0_57 = arith.constant 0 : index
    %c0_58 = arith.constant 0 : index
    %158 = vector.load %arg3[%c0_57, %c0_58] : memref<4x128xf32, #tpu.memory_space<vmem>>, vector<1x128xf32>
    %159 = vector.broadcast %158 : vector<1x128xf32> to vector<8x128xf32>
    %160 = arith.addf %157, %159 : vector<8x128xf32>
    %161 = arith.negf %160 : vector<8x128xf32>
    %162 = math.exp %161 : vector<8x128xf32>
    %cst_59 = arith.constant 1.000000e+00 : f32
    %163 = vector.broadcast %cst_59 : f32 to vector<8x128xf32>
    %164 = arith.addf %163, %162 : vector<8x128xf32>
    %165 = arith.divf %163, %164 : vector<8x128xf32>
    %166 = math.tanh %160 : vector<8x128xf32>
    %167 = vector.extract_strided_slice %165 {offsets = [0, 0], sizes = [8, 32], strides = [1, 1]} : vector<8x128xf32> to vector<8x32xf32>
    %168 = vector.extract_strided_slice %165 {offsets = [0, 32], sizes = [8, 32], strides = [1, 1]} : vector<8x128xf32> to vector<8x32xf32>
    %169 = vector.extract_strided_slice %166 {offsets = [0, 64], sizes = [8, 32], strides = [1, 1]} : vector<8x128xf32> to vector<8x32xf32>
    %170 = vector.extract_strided_slice %165 {offsets = [0, 96], sizes = [8, 32], strides = [1, 1]} : vector<8x128xf32> to vector<8x32xf32>
    %171 = arith.mulf %168, %124 : vector<8x32xf32>
    %172 = arith.mulf %167, %169 : vector<8x32xf32>
    %173 = arith.addf %171, %172 : vector<8x32xf32>
    %174 = math.tanh %173 : vector<8x32xf32>
    %175 = arith.mulf %170, %174 : vector<8x32xf32>
    %c1_60 = arith.constant 1 : index
    %c0_61 = arith.constant 0 : index
    %c0_62 = arith.constant 0 : index
    %176 = vector.load %arg2[%c1_60, %c0_61, %c0_62] : memref<4x64x128xbf16, #tpu.memory_space<vmem>>, vector<1x64x128xbf16>
    %177 = vector.shape_cast %176 : vector<1x64x128xbf16> to vector<64x128xbf16>
    %178 = arith.truncf %175 : vector<8x32xf32> to vector<8x32xbf16>
    %179 = arith.truncf %150 : vector<8x32xf32> to vector<8x32xbf16>
    %180 = tpu.concatenate %178, %179 in 1 : vector<8x32xbf16>, vector<8x32xbf16> -> vector<8x64xbf16>
    %cst_63 = arith.constant dense<0.000000e+00> : vector<8x128xf32>
    %181 = tpu.matmul %180, %177, %cst_63 {dimension_numbers = #tpu.dot_dimension_numbers<[1], [0], [0], [1], [0, 0, 1, 1], [], []>} : vector<8x64xbf16>, vector<64x128xbf16>, vector<8x128xf32> -> vector<8x128xf32>
    %c1_64 = arith.constant 1 : index
    %c0_65 = arith.constant 0 : index
    %182 = vector.load %arg3[%c1_64, %c0_65] : memref<4x128xf32, #tpu.memory_space<vmem>>, vector<1x128xf32>
    %183 = vector.broadcast %182 : vector<1x128xf32> to vector<8x128xf32>
    %184 = arith.addf %181, %183 : vector<8x128xf32>
    %185 = arith.negf %184 : vector<8x128xf32>
    %186 = math.exp %185 : vector<8x128xf32>
    %cst_66 = arith.constant 1.000000e+00 : f32
    %187 = vector.broadcast %cst_66 : f32 to vector<8x128xf32>
    %188 = arith.addf %187, %186 : vector<8x128xf32>
    %189 = arith.divf %187, %188 : vector<8x128xf32>
    %190 = math.tanh %184 : vector<8x128xf32>
    %191 = vector.extract_strided_slice %189 {offsets = [0, 0], sizes = [8, 32], strides = [1, 1]} : vector<8x128xf32> to vector<8x32xf32>
    %192 = vector.extract_strided_slice %189 {offsets = [0, 32], sizes = [8, 32], strides = [1, 1]} : vector<8x128xf32> to vector<8x32xf32>
    %193 = vector.extract_strided_slice %190 {offsets = [0, 64], sizes = [8, 32], strides = [1, 1]} : vector<8x128xf32> to vector<8x32xf32>
    %194 = vector.extract_strided_slice %189 {offsets = [0, 96], sizes = [8, 32], strides = [1, 1]} : vector<8x128xf32> to vector<8x32xf32>
    %195 = arith.mulf %192, %148 : vector<8x32xf32>
    %196 = arith.mulf %191, %193 : vector<8x32xf32>
    %197 = arith.addf %195, %196 : vector<8x32xf32>
    %198 = math.tanh %197 : vector<8x32xf32>
    %199 = arith.mulf %194, %198 : vector<8x32xf32>
    %c4 = arith.constant 4 : index
    %c0_67 = arith.constant 0 : index
    %c0_68 = arith.constant 0 : index
    %200 = vector.load %arg0[%c4, %c0_67, %c0_68] : memref<6x8x32xbf16, #tpu.memory_space<vmem>>, vector<1x8x32xbf16>
    %201 = vector.shape_cast %200 : vector<1x8x32xbf16> to vector<8x32xbf16>
    %c0_69 = arith.constant 0 : index
    %c0_70 = arith.constant 0 : index
    %c0_71 = arith.constant 0 : index
    %202 = vector.load %arg2[%c0_69, %c0_70, %c0_71] : memref<4x64x128xbf16, #tpu.memory_space<vmem>>, vector<1x64x128xbf16>
    %203 = vector.shape_cast %202 : vector<1x64x128xbf16> to vector<64x128xbf16>
    %204 = arith.truncf %175 : vector<8x32xf32> to vector<8x32xbf16>
    %205 = tpu.concatenate %201, %204 in 1 : vector<8x32xbf16>, vector<8x32xbf16> -> vector<8x64xbf16>
    %cst_72 = arith.constant dense<0.000000e+00> : vector<8x128xf32>
    %206 = tpu.matmul %205, %203, %cst_72 {dimension_numbers = #tpu.dot_dimension_numbers<[1], [0], [0], [1], [0, 0, 1, 1], [], []>} : vector<8x64xbf16>, vector<64x128xbf16>, vector<8x128xf32> -> vector<8x128xf32>
    %c0_73 = arith.constant 0 : index
    %c0_74 = arith.constant 0 : index
    %207 = vector.load %arg3[%c0_73, %c0_74] : memref<4x128xf32, #tpu.memory_space<vmem>>, vector<1x128xf32>
    %208 = vector.broadcast %207 : vector<1x128xf32> to vector<8x128xf32>
    %209 = arith.addf %206, %208 : vector<8x128xf32>
    %210 = arith.negf %209 : vector<8x128xf32>
    %211 = math.exp %210 : vector<8x128xf32>
    %cst_75 = arith.constant 1.000000e+00 : f32
    %212 = vector.broadcast %cst_75 : f32 to vector<8x128xf32>
    %213 = arith.addf %212, %211 : vector<8x128xf32>
    %214 = arith.divf %212, %213 : vector<8x128xf32>
    %215 = math.tanh %209 : vector<8x128xf32>
    %216 = vector.extract_strided_slice %214 {offsets = [0, 0], sizes = [8, 32], strides = [1, 1]} : vector<8x128xf32> to vector<8x32xf32>
    %217 = vector.extract_strided_slice %214 {offsets = [0, 32], sizes = [8, 32], strides = [1, 1]} : vector<8x128xf32> to vector<8x32xf32>
    %218 = vector.extract_strided_slice %215 {offsets = [0, 64], sizes = [8, 32], strides = [1, 1]} : vector<8x128xf32> to vector<8x32xf32>
    %219 = vector.extract_strided_slice %214 {offsets = [0, 96], sizes = [8, 32], strides = [1, 1]} : vector<8x128xf32> to vector<8x32xf32>
    %220 = arith.mulf %217, %173 : vector<8x32xf32>
    %221 = arith.mulf %216, %218 : vector<8x32xf32>
    %222 = arith.addf %220, %221 : vector<8x32xf32>
    %223 = math.tanh %222 : vector<8x32xf32>
    %224 = arith.mulf %219, %223 : vector<8x32xf32>
    %c1_76 = arith.constant 1 : index
    %c0_77 = arith.constant 0 : index
    %c0_78 = arith.constant 0 : index
    %225 = vector.load %arg2[%c1_76, %c0_77, %c0_78] : memref<4x64x128xbf16, #tpu.memory_space<vmem>>, vector<1x64x128xbf16>
    %226 = vector.shape_cast %225 : vector<1x64x128xbf16> to vector<64x128xbf16>
    %227 = arith.truncf %224 : vector<8x32xf32> to vector<8x32xbf16>
    %228 = arith.truncf %199 : vector<8x32xf32> to vector<8x32xbf16>
    %229 = tpu.concatenate %227, %228 in 1 : vector<8x32xbf16>, vector<8x32xbf16> -> vector<8x64xbf16>
    %cst_79 = arith.constant dense<0.000000e+00> : vector<8x128xf32>
    %230 = tpu.matmul %229, %226, %cst_79 {dimension_numbers = #tpu.dot_dimension_numbers<[1], [0], [0], [1], [0, 0, 1, 1], [], []>} : vector<8x64xbf16>, vector<64x128xbf16>, vector<8x128xf32> -> vector<8x128xf32>
    %c1_80 = arith.constant 1 : index
    %c0_81 = arith.constant 0 : index
    %231 = vector.load %arg3[%c1_80, %c0_81] : memref<4x128xf32, #tpu.memory_space<vmem>>, vector<1x128xf32>
    %232 = vector.broadcast %231 : vector<1x128xf32> to vector<8x128xf32>
    %233 = arith.addf %230, %232 : vector<8x128xf32>
    %234 = arith.negf %233 : vector<8x128xf32>
    %235 = math.exp %234 : vector<8x128xf32>
    %cst_82 = arith.constant 1.000000e+00 : f32
    %236 = vector.broadcast %cst_82 : f32 to vector<8x128xf32>
    %237 = arith.addf %236, %235 : vector<8x128xf32>
    %238 = arith.divf %236, %237 : vector<8x128xf32>
    %239 = math.tanh %233 : vector<8x128xf32>
    %240 = vector.extract_strided_slice %238 {offsets = [0, 0], sizes = [8, 32], strides = [1, 1]} : vector<8x128xf32> to vector<8x32xf32>
    %241 = vector.extract_strided_slice %238 {offsets = [0, 32], sizes = [8, 32], strides = [1, 1]} : vector<8x128xf32> to vector<8x32xf32>
    %242 = vector.extract_strided_slice %239 {offsets = [0, 64], sizes = [8, 32], strides = [1, 1]} : vector<8x128xf32> to vector<8x32xf32>
    %243 = vector.extract_strided_slice %238 {offsets = [0, 96], sizes = [8, 32], strides = [1, 1]} : vector<8x128xf32> to vector<8x32xf32>
    %244 = arith.mulf %241, %197 : vector<8x32xf32>
    %245 = arith.mulf %240, %242 : vector<8x32xf32>
    %246 = arith.addf %244, %245 : vector<8x32xf32>
    %247 = math.tanh %246 : vector<8x32xf32>
    %248 = arith.mulf %243, %247 : vector<8x32xf32>
    %c5 = arith.constant 5 : index
    %c0_83 = arith.constant 0 : index
    %c0_84 = arith.constant 0 : index
    %249 = vector.load %arg0[%c5, %c0_83, %c0_84] : memref<6x8x32xbf16, #tpu.memory_space<vmem>>, vector<1x8x32xbf16>
    %250 = vector.shape_cast %249 : vector<1x8x32xbf16> to vector<8x32xbf16>
    %c0_85 = arith.constant 0 : index
    %c0_86 = arith.constant 0 : index
    %c0_87 = arith.constant 0 : index
    %251 = vector.load %arg2[%c0_85, %c0_86, %c0_87] : memref<4x64x128xbf16, #tpu.memory_space<vmem>>, vector<1x64x128xbf16>
    %252 = vector.shape_cast %251 : vector<1x64x128xbf16> to vector<64x128xbf16>
    %253 = arith.truncf %224 : vector<8x32xf32> to vector<8x32xbf16>
    %254 = tpu.concatenate %250, %253 in 1 : vector<8x32xbf16>, vector<8x32xbf16> -> vector<8x64xbf16>
    %cst_88 = arith.constant dense<0.000000e+00> : vector<8x128xf32>
    %255 = tpu.matmul %254, %252, %cst_88 {dimension_numbers = #tpu.dot_dimension_numbers<[1], [0], [0], [1], [0, 0, 1, 1], [], []>} : vector<8x64xbf16>, vector<64x128xbf16>, vector<8x128xf32> -> vector<8x128xf32>
    %c0_89 = arith.constant 0 : index
    %c0_90 = arith.constant 0 : index
    %256 = vector.load %arg3[%c0_89, %c0_90] : memref<4x128xf32, #tpu.memory_space<vmem>>, vector<1x128xf32>
    %257 = vector.broadcast %256 : vector<1x128xf32> to vector<8x128xf32>
    %258 = arith.addf %255, %257 : vector<8x128xf32>
    %259 = arith.negf %258 : vector<8x128xf32>
    %260 = math.exp %259 : vector<8x128xf32>
    %cst_91 = arith.constant 1.000000e+00 : f32
    %261 = vector.broadcast %cst_91 : f32 to vector<8x128xf32>
    %262 = arith.addf %261, %260 : vector<8x128xf32>
    %263 = arith.divf %261, %262 : vector<8x128xf32>
    %264 = math.tanh %258 : vector<8x128xf32>
    %265 = vector.extract_strided_slice %263 {offsets = [0, 0], sizes = [8, 32], strides = [1, 1]} : vector<8x128xf32> to vector<8x32xf32>
    %266 = vector.extract_strided_slice %263 {offsets = [0, 32], sizes = [8, 32], strides = [1, 1]} : vector<8x128xf32> to vector<8x32xf32>
    %267 = vector.extract_strided_slice %264 {offsets = [0, 64], sizes = [8, 32], strides = [1, 1]} : vector<8x128xf32> to vector<8x32xf32>
    %268 = vector.extract_strided_slice %263 {offsets = [0, 96], sizes = [8, 32], strides = [1, 1]} : vector<8x128xf32> to vector<8x32xf32>
    %269 = arith.mulf %266, %222 : vector<8x32xf32>
    %270 = arith.mulf %265, %267 : vector<8x32xf32>
    %271 = arith.addf %269, %270 : vector<8x32xf32>
    %272 = math.tanh %271 : vector<8x32xf32>
    %273 = arith.mulf %268, %272 : vector<8x32xf32>
    %c1_92 = arith.constant 1 : index
    %c0_93 = arith.constant 0 : index
    %c0_94 = arith.constant 0 : index
    %274 = vector.load %arg2[%c1_92, %c0_93, %c0_94] : memref<4x64x128xbf16, #tpu.memory_space<vmem>>, vector<1x64x128xbf16>
    %275 = vector.shape_cast %274 : vector<1x64x128xbf16> to vector<64x128xbf16>
    %276 = arith.truncf %273 : vector<8x32xf32> to vector<8x32xbf16>
    %277 = arith.truncf %248 : vector<8x32xf32> to vector<8x32xbf16>
    %278 = tpu.concatenate %276, %277 in 1 : vector<8x32xbf16>, vector<8x32xbf16> -> vector<8x64xbf16>
    %cst_95 = arith.constant dense<0.000000e+00> : vector<8x128xf32>
    %279 = tpu.matmul %278, %275, %cst_95 {dimension_numbers = #tpu.dot_dimension_numbers<[1], [0], [0], [1], [0, 0, 1, 1], [], []>} : vector<8x64xbf16>, vector<64x128xbf16>, vector<8x128xf32> -> vector<8x128xf32>
    %c1_96 = arith.constant 1 : index
    %c0_97 = arith.constant 0 : index
    %280 = vector.load %arg3[%c1_96, %c0_97] : memref<4x128xf32, #tpu.memory_space<vmem>>, vector<1x128xf32>
    %281 = vector.broadcast %280 : vector<1x128xf32> to vector<8x128xf32>
    %282 = arith.addf %279, %281 : vector<8x128xf32>
    %283 = arith.negf %282 : vector<8x128xf32>
    %284 = math.exp %283 : vector<8x128xf32>
    %cst_98 = arith.constant 1.000000e+00 : f32
    %285 = vector.broadcast %cst_98 : f32 to vector<8x128xf32>
    %286 = arith.addf %285, %284 : vector<8x128xf32>
    %287 = arith.divf %285, %286 : vector<8x128xf32>
    %288 = math.tanh %282 : vector<8x128xf32>
    %289 = vector.extract_strided_slice %287 {offsets = [0, 0], sizes = [8, 32], strides = [1, 1]} : vector<8x128xf32> to vector<8x32xf32>
    %290 = vector.extract_strided_slice %287 {offsets = [0, 32], sizes = [8, 32], strides = [1, 1]} : vector<8x128xf32> to vector<8x32xf32>
    %291 = vector.extract_strided_slice %288 {offsets = [0, 64], sizes = [8, 32], strides = [1, 1]} : vector<8x128xf32> to vector<8x32xf32>
    %292 = vector.extract_strided_slice %287 {offsets = [0, 96], sizes = [8, 32], strides = [1, 1]} : vector<8x128xf32> to vector<8x32xf32>
    %293 = arith.mulf %290, %246 : vector<8x32xf32>
    %294 = arith.mulf %289, %291 : vector<8x32xf32>
    %295 = arith.addf %293, %294 : vector<8x32xf32>
    %296 = math.tanh %295 : vector<8x32xf32>
    %297 = arith.mulf %292, %296 : vector<8x32xf32>
    %298 = tpu.iota {dimensions = array<i32: 1>} : vector<8x128xi32>
    %c0_99 = arith.constant 0 : index
    %c0_100 = arith.constant 0 : index
    %299 = vector.load %arg5[%c0_99, %c0_100] : memref<1x128xf32, #tpu.memory_space<vmem>>, vector<1x128xf32>
    %cst_101 = arith.constant 0.000000e+00 : f32
    %300 = vector.broadcast %cst_101 : f32 to vector<8x128xf32>
    %c0_102 = arith.constant 0 : index
    %c0_103 = arith.constant 0 : index
    %c0_104 = arith.constant 0 : index
    %301 = vector.load %arg1[%c0_102, %c0_103, %c0_104] : memref<6x8x32xbf16, #tpu.memory_space<vmem>>, vector<1x8x32xbf16>
    %302 = vector.shape_cast %301 : vector<1x8x32xbf16> to vector<8x32xbf16>
    %c2_105 = arith.constant 2 : index
    %c0_106 = arith.constant 0 : index
    %c0_107 = arith.constant 0 : index
    %303 = vector.load %arg2[%c2_105, %c0_106, %c0_107] : memref<4x64x128xbf16, #tpu.memory_space<vmem>>, vector<1x64x128xbf16>
    %304 = vector.shape_cast %303 : vector<1x64x128xbf16> to vector<64x128xbf16>
    %305 = arith.truncf %273 : vector<8x32xf32> to vector<8x32xbf16>
    %306 = tpu.concatenate %302, %305 in 1 : vector<8x32xbf16>, vector<8x32xbf16> -> vector<8x64xbf16>
    %cst_108 = arith.constant dense<0.000000e+00> : vector<8x128xf32>
    %307 = tpu.matmul %306, %304, %cst_108 {dimension_numbers = #tpu.dot_dimension_numbers<[1], [0], [0], [1], [0, 0, 1, 1], [], []>} : vector<8x64xbf16>, vector<64x128xbf16>, vector<8x128xf32> -> vector<8x128xf32>
    %c2_109 = arith.constant 2 : index
    %c0_110 = arith.constant 0 : index
    %308 = vector.load %arg3[%c2_109, %c0_110] : memref<4x128xf32, #tpu.memory_space<vmem>>, vector<1x128xf32>
    %309 = vector.broadcast %308 : vector<1x128xf32> to vector<8x128xf32>
    %310 = arith.addf %307, %309 : vector<8x128xf32>
    %311 = arith.negf %310 : vector<8x128xf32>
    %312 = math.exp %311 : vector<8x128xf32>
    %cst_111 = arith.constant 1.000000e+00 : f32
    %313 = vector.broadcast %cst_111 : f32 to vector<8x128xf32>
    %314 = arith.addf %313, %312 : vector<8x128xf32>
    %315 = arith.divf %313, %314 : vector<8x128xf32>
    %316 = math.tanh %310 : vector<8x128xf32>
    %317 = vector.extract_strided_slice %315 {offsets = [0, 0], sizes = [8, 32], strides = [1, 1]} : vector<8x128xf32> to vector<8x32xf32>
    %318 = vector.extract_strided_slice %315 {offsets = [0, 32], sizes = [8, 32], strides = [1, 1]} : vector<8x128xf32> to vector<8x32xf32>
    %319 = vector.extract_strided_slice %316 {offsets = [0, 64], sizes = [8, 32], strides = [1, 1]} : vector<8x128xf32> to vector<8x32xf32>
    %320 = vector.extract_strided_slice %315 {offsets = [0, 96], sizes = [8, 32], strides = [1, 1]} : vector<8x128xf32> to vector<8x32xf32>
    %321 = arith.mulf %318, %271 : vector<8x32xf32>
    %322 = arith.mulf %317, %319 : vector<8x32xf32>
    %323 = arith.addf %321, %322 : vector<8x32xf32>
    %324 = math.tanh %323 : vector<8x32xf32>
    %325 = arith.mulf %320, %324 : vector<8x32xf32>
    %c3_112 = arith.constant 3 : index
    %c0_113 = arith.constant 0 : index
    %c0_114 = arith.constant 0 : index
    %326 = vector.load %arg2[%c3_112, %c0_113, %c0_114] : memref<4x64x128xbf16, #tpu.memory_space<vmem>>, vector<1x64x128xbf16>
    %327 = vector.shape_cast %326 : vector<1x64x128xbf16> to vector<64x128xbf16>
    %328 = arith.truncf %325 : vector<8x32xf32> to vector<8x32xbf16>
    %329 = arith.truncf %297 : vector<8x32xf32> to vector<8x32xbf16>
    %330 = tpu.concatenate %328, %329 in 1 : vector<8x32xbf16>, vector<8x32xbf16> -> vector<8x64xbf16>
    %cst_115 = arith.constant dense<0.000000e+00> : vector<8x128xf32>
    %331 = tpu.matmul %330, %327, %cst_115 {dimension_numbers = #tpu.dot_dimension_numbers<[1], [0], [0], [1], [0, 0, 1, 1], [], []>} : vector<8x64xbf16>, vector<64x128xbf16>, vector<8x128xf32> -> vector<8x128xf32>
    %c3_116 = arith.constant 3 : index
    %c0_117 = arith.constant 0 : index
    %332 = vector.load %arg3[%c3_116, %c0_117] : memref<4x128xf32, #tpu.memory_space<vmem>>, vector<1x128xf32>
    %333 = vector.broadcast %332 : vector<1x128xf32> to vector<8x128xf32>
    %334 = arith.addf %331, %333 : vector<8x128xf32>
    %335 = arith.negf %334 : vector<8x128xf32>
    %336 = math.exp %335 : vector<8x128xf32>
    %cst_118 = arith.constant 1.000000e+00 : f32
    %337 = vector.broadcast %cst_118 : f32 to vector<8x128xf32>
    %338 = arith.addf %337, %336 : vector<8x128xf32>
    %339 = arith.divf %337, %338 : vector<8x128xf32>
    %340 = math.tanh %334 : vector<8x128xf32>
    %341 = vector.extract_strided_slice %339 {offsets = [0, 0], sizes = [8, 32], strides = [1, 1]} : vector<8x128xf32> to vector<8x32xf32>
    %342 = vector.extract_strided_slice %339 {offsets = [0, 32], sizes = [8, 32], strides = [1, 1]} : vector<8x128xf32> to vector<8x32xf32>
    %343 = vector.extract_strided_slice %340 {offsets = [0, 64], sizes = [8, 32], strides = [1, 1]} : vector<8x128xf32> to vector<8x32xf32>
    %344 = vector.extract_strided_slice %339 {offsets = [0, 96], sizes = [8, 32], strides = [1, 1]} : vector<8x128xf32> to vector<8x32xf32>
    %345 = arith.mulf %342, %295 : vector<8x32xf32>
    %346 = arith.mulf %341, %343 : vector<8x32xf32>
    %347 = arith.addf %345, %346 : vector<8x32xf32>
    %348 = math.tanh %347 : vector<8x32xf32>
    %349 = arith.mulf %344, %348 : vector<8x32xf32>
    %350 = arith.truncf %349 : vector<8x32xf32> to vector<8x32xbf16>
    %c0_119 = arith.constant 0 : index
    %c0_120 = arith.constant 0 : index
    %351 = vector.load %arg4[%c0_119, %c0_120] : memref<32x128xbf16, #tpu.memory_space<vmem>>, vector<32x128xbf16>
    %cst_121 = arith.constant dense<0.000000e+00> : vector<8x128xf32>
    %352 = tpu.matmul %350, %351, %cst_121 {dimension_numbers = #tpu.dot_dimension_numbers<[1], [0], [0], [1], [0, 0, 1, 1], [], []>} : vector<8x32xbf16>, vector<32x128xbf16>, vector<8x128xf32> -> vector<8x128xf32>
    %353 = vector.broadcast %299 : vector<1x128xf32> to vector<8x128xf32>
    %354 = arith.addf %352, %353 : vector<8x128xf32>
    %cst_122 = arith.constant dense<0xFF800000> : vector<8xf32>
    %355 = vector.multi_reduction <maximumf>, %354, %cst_122 [1] : vector<8x128xf32> to vector<8xf32>
    %356 = vector.shape_cast %355 : vector<8xf32> to vector<8x1xf32>
    %357 = vector.broadcast %356 : vector<8x1xf32> to vector<8x128xf32>
    %358 = arith.cmpf oeq, %354, %357 : vector<8x128xf32>
    %c128_i32 = arith.constant 128 : i32
    %359 = vector.broadcast %c128_i32 : i32 to vector<8x128xi32>
    %360 = arith.select %358, %298, %359 : vector<8x128xi1>, vector<8x128xi32>
    %cst_123 = arith.constant dense<2147483647> : vector<8xi32>
    %361 = vector.multi_reduction <minsi>, %360, %cst_123 [1] : vector<8x128xi32> to vector<8xi32>
    %362 = vector.shape_cast %361 : vector<8xi32> to vector<8x1xi32>
    %363 = arith.sitofp %362 : vector<8x1xi32> to vector<8x1xf32>
    %c0_i32 = arith.constant 0 : i32
    %364 = vector.broadcast %c0_i32 : i32 to vector<8x128xi32>
    %365 = arith.cmpi eq, %298, %364 : vector<8x128xi32>
    %366 = vector.shape_cast %363 : vector<8x1xf32> to vector<8x1xf32>
    %367 = vector.broadcast %366 : vector<8x1xf32> to vector<8x128xf32>
    %368 = arith.select %365, %367, %300 : vector<8x128xi1>, vector<8x128xf32>
    %c1_124 = arith.constant 1 : index
    %c0_125 = arith.constant 0 : index
    %c0_126 = arith.constant 0 : index
    %369 = vector.load %arg1[%c1_124, %c0_125, %c0_126] : memref<6x8x32xbf16, #tpu.memory_space<vmem>>, vector<1x8x32xbf16>
    %370 = vector.shape_cast %369 : vector<1x8x32xbf16> to vector<8x32xbf16>
    %c2_127 = arith.constant 2 : index
    %c0_128 = arith.constant 0 : index
    %c0_129 = arith.constant 0 : index
    %371 = vector.load %arg2[%c2_127, %c0_128, %c0_129] : memref<4x64x128xbf16, #tpu.memory_space<vmem>>, vector<1x64x128xbf16>
    %372 = vector.shape_cast %371 : vector<1x64x128xbf16> to vector<64x128xbf16>
    %373 = arith.truncf %325 : vector<8x32xf32> to vector<8x32xbf16>
    %374 = tpu.concatenate %370, %373 in 1 : vector<8x32xbf16>, vector<8x32xbf16> -> vector<8x64xbf16>
    %cst_130 = arith.constant dense<0.000000e+00> : vector<8x128xf32>
    %375 = tpu.matmul %374, %372, %cst_130 {dimension_numbers = #tpu.dot_dimension_numbers<[1], [0], [0], [1], [0, 0, 1, 1], [], []>} : vector<8x64xbf16>, vector<64x128xbf16>, vector<8x128xf32> -> vector<8x128xf32>
    %c2_131 = arith.constant 2 : index
    %c0_132 = arith.constant 0 : index
    %376 = vector.load %arg3[%c2_131, %c0_132] : memref<4x128xf32, #tpu.memory_space<vmem>>, vector<1x128xf32>
    %377 = vector.broadcast %376 : vector<1x128xf32> to vector<8x128xf32>
    %378 = arith.addf %375, %377 : vector<8x128xf32>
    %379 = arith.negf %378 : vector<8x128xf32>
    %380 = math.exp %379 : vector<8x128xf32>
    %cst_133 = arith.constant 1.000000e+00 : f32
    %381 = vector.broadcast %cst_133 : f32 to vector<8x128xf32>
    %382 = arith.addf %381, %380 : vector<8x128xf32>
    %383 = arith.divf %381, %382 : vector<8x128xf32>
    %384 = math.tanh %378 : vector<8x128xf32>
    %385 = vector.extract_strided_slice %383 {offsets = [0, 0], sizes = [8, 32], strides = [1, 1]} : vector<8x128xf32> to vector<8x32xf32>
    %386 = vector.extract_strided_slice %383 {offsets = [0, 32], sizes = [8, 32], strides = [1, 1]} : vector<8x128xf32> to vector<8x32xf32>
    %387 = vector.extract_strided_slice %384 {offsets = [0, 64], sizes = [8, 32], strides = [1, 1]} : vector<8x128xf32> to vector<8x32xf32>
    %388 = vector.extract_strided_slice %383 {offsets = [0, 96], sizes = [8, 32], strides = [1, 1]} : vector<8x128xf32> to vector<8x32xf32>
    %389 = arith.mulf %386, %323 : vector<8x32xf32>
    %390 = arith.mulf %385, %387 : vector<8x32xf32>
    %391 = arith.addf %389, %390 : vector<8x32xf32>
    %392 = math.tanh %391 : vector<8x32xf32>
    %393 = arith.mulf %388, %392 : vector<8x32xf32>
    %c3_134 = arith.constant 3 : index
    %c0_135 = arith.constant 0 : index
    %c0_136 = arith.constant 0 : index
    %394 = vector.load %arg2[%c3_134, %c0_135, %c0_136] : memref<4x64x128xbf16, #tpu.memory_space<vmem>>, vector<1x64x128xbf16>
    %395 = vector.shape_cast %394 : vector<1x64x128xbf16> to vector<64x128xbf16>
    %396 = arith.truncf %393 : vector<8x32xf32> to vector<8x32xbf16>
    %397 = arith.truncf %349 : vector<8x32xf32> to vector<8x32xbf16>
    %398 = tpu.concatenate %396, %397 in 1 : vector<8x32xbf16>, vector<8x32xbf16> -> vector<8x64xbf16>
    %cst_137 = arith.constant dense<0.000000e+00> : vector<8x128xf32>
    %399 = tpu.matmul %398, %395, %cst_137 {dimension_numbers = #tpu.dot_dimension_numbers<[1], [0], [0], [1], [0, 0, 1, 1], [], []>} : vector<8x64xbf16>, vector<64x128xbf16>, vector<8x128xf32> -> vector<8x128xf32>
    %c3_138 = arith.constant 3 : index
    %c0_139 = arith.constant 0 : index
    %400 = vector.load %arg3[%c3_138, %c0_139] : memref<4x128xf32, #tpu.memory_space<vmem>>, vector<1x128xf32>
    %401 = vector.broadcast %400 : vector<1x128xf32> to vector<8x128xf32>
    %402 = arith.addf %399, %401 : vector<8x128xf32>
    %403 = arith.negf %402 : vector<8x128xf32>
    %404 = math.exp %403 : vector<8x128xf32>
    %cst_140 = arith.constant 1.000000e+00 : f32
    %405 = vector.broadcast %cst_140 : f32 to vector<8x128xf32>
    %406 = arith.addf %405, %404 : vector<8x128xf32>
    %407 = arith.divf %405, %406 : vector<8x128xf32>
    %408 = math.tanh %402 : vector<8x128xf32>
    %409 = vector.extract_strided_slice %407 {offsets = [0, 0], sizes = [8, 32], strides = [1, 1]} : vector<8x128xf32> to vector<8x32xf32>
    %410 = vector.extract_strided_slice %407 {offsets = [0, 32], sizes = [8, 32], strides = [1, 1]} : vector<8x128xf32> to vector<8x32xf32>
    %411 = vector.extract_strided_slice %408 {offsets = [0, 64], sizes = [8, 32], strides = [1, 1]} : vector<8x128xf32> to vector<8x32xf32>
    %412 = vector.extract_strided_slice %407 {offsets = [0, 96], sizes = [8, 32], strides = [1, 1]} : vector<8x128xf32> to vector<8x32xf32>
    %413 = arith.mulf %410, %347 : vector<8x32xf32>
    %414 = arith.mulf %409, %411 : vector<8x32xf32>
    %415 = arith.addf %413, %414 : vector<8x32xf32>
    %416 = math.tanh %415 : vector<8x32xf32>
    %417 = arith.mulf %412, %416 : vector<8x32xf32>
    %418 = arith.truncf %417 : vector<8x32xf32> to vector<8x32xbf16>
    %c0_141 = arith.constant 0 : index
    %c0_142 = arith.constant 0 : index
    %419 = vector.load %arg4[%c0_141, %c0_142] : memref<32x128xbf16, #tpu.memory_space<vmem>>, vector<32x128xbf16>
    %cst_143 = arith.constant dense<0.000000e+00> : vector<8x128xf32>
    %420 = tpu.matmul %418, %419, %cst_143 {dimension_numbers = #tpu.dot_dimension_numbers<[1], [0], [0], [1], [0, 0, 1, 1], [], []>} : vector<8x32xbf16>, vector<32x128xbf16>, vector<8x128xf32> -> vector<8x128xf32>
    %421 = vector.broadcast %299 : vector<1x128xf32> to vector<8x128xf32>
    %422 = arith.addf %420, %421 : vector<8x128xf32>
    %cst_144 = arith.constant dense<0xFF800000> : vector<8xf32>
    %423 = vector.multi_reduction <maximumf>, %422, %cst_144 [1] : vector<8x128xf32> to vector<8xf32>
    %424 = vector.shape_cast %423 : vector<8xf32> to vector<8x1xf32>
    %425 = vector.broadcast %424 : vector<8x1xf32> to vector<8x128xf32>
    %426 = arith.cmpf oeq, %422, %425 : vector<8x128xf32>
    %c128_i32_145 = arith.constant 128 : i32
    %427 = vector.broadcast %c128_i32_145 : i32 to vector<8x128xi32>
    %428 = arith.select %426, %298, %427 : vector<8x128xi1>, vector<8x128xi32>
    %cst_146 = arith.constant dense<2147483647> : vector<8xi32>
    %429 = vector.multi_reduction <minsi>, %428, %cst_146 [1] : vector<8x128xi32> to vector<8xi32>
    %430 = vector.shape_cast %429 : vector<8xi32> to vector<8x1xi32>
    %431 = arith.sitofp %430 : vector<8x1xi32> to vector<8x1xf32>
    %c1_i32 = arith.constant 1 : i32
    %432 = vector.broadcast %c1_i32 : i32 to vector<8x128xi32>
    %433 = arith.cmpi eq, %298, %432 : vector<8x128xi32>
    %434 = vector.shape_cast %431 : vector<8x1xf32> to vector<8x1xf32>
    %435 = vector.broadcast %434 : vector<8x1xf32> to vector<8x128xf32>
    %436 = arith.select %433, %435, %368 : vector<8x128xi1>, vector<8x128xf32>
    %c2_147 = arith.constant 2 : index
    %c0_148 = arith.constant 0 : index
    %c0_149 = arith.constant 0 : index
    %437 = vector.load %arg1[%c2_147, %c0_148, %c0_149] : memref<6x8x32xbf16, #tpu.memory_space<vmem>>, vector<1x8x32xbf16>
    %438 = vector.shape_cast %437 : vector<1x8x32xbf16> to vector<8x32xbf16>
    %c2_150 = arith.constant 2 : index
    %c0_151 = arith.constant 0 : index
    %c0_152 = arith.constant 0 : index
    %439 = vector.load %arg2[%c2_150, %c0_151, %c0_152] : memref<4x64x128xbf16, #tpu.memory_space<vmem>>, vector<1x64x128xbf16>
    %440 = vector.shape_cast %439 : vector<1x64x128xbf16> to vector<64x128xbf16>
    %441 = arith.truncf %393 : vector<8x32xf32> to vector<8x32xbf16>
    %442 = tpu.concatenate %438, %441 in 1 : vector<8x32xbf16>, vector<8x32xbf16> -> vector<8x64xbf16>
    %cst_153 = arith.constant dense<0.000000e+00> : vector<8x128xf32>
    %443 = tpu.matmul %442, %440, %cst_153 {dimension_numbers = #tpu.dot_dimension_numbers<[1], [0], [0], [1], [0, 0, 1, 1], [], []>} : vector<8x64xbf16>, vector<64x128xbf16>, vector<8x128xf32> -> vector<8x128xf32>
    %c2_154 = arith.constant 2 : index
    %c0_155 = arith.constant 0 : index
    %444 = vector.load %arg3[%c2_154, %c0_155] : memref<4x128xf32, #tpu.memory_space<vmem>>, vector<1x128xf32>
    %445 = vector.broadcast %444 : vector<1x128xf32> to vector<8x128xf32>
    %446 = arith.addf %443, %445 : vector<8x128xf32>
    %447 = arith.negf %446 : vector<8x128xf32>
    %448 = math.exp %447 : vector<8x128xf32>
    %cst_156 = arith.constant 1.000000e+00 : f32
    %449 = vector.broadcast %cst_156 : f32 to vector<8x128xf32>
    %450 = arith.addf %449, %448 : vector<8x128xf32>
    %451 = arith.divf %449, %450 : vector<8x128xf32>
    %452 = math.tanh %446 : vector<8x128xf32>
    %453 = vector.extract_strided_slice %451 {offsets = [0, 0], sizes = [8, 32], strides = [1, 1]} : vector<8x128xf32> to vector<8x32xf32>
    %454 = vector.extract_strided_slice %451 {offsets = [0, 32], sizes = [8, 32], strides = [1, 1]} : vector<8x128xf32> to vector<8x32xf32>
    %455 = vector.extract_strided_slice %452 {offsets = [0, 64], sizes = [8, 32], strides = [1, 1]} : vector<8x128xf32> to vector<8x32xf32>
    %456 = vector.extract_strided_slice %451 {offsets = [0, 96], sizes = [8, 32], strides = [1, 1]} : vector<8x128xf32> to vector<8x32xf32>
    %457 = arith.mulf %454, %391 : vector<8x32xf32>
    %458 = arith.mulf %453, %455 : vector<8x32xf32>
    %459 = arith.addf %457, %458 : vector<8x32xf32>
    %460 = math.tanh %459 : vector<8x32xf32>
    %461 = arith.mulf %456, %460 : vector<8x32xf32>
    %c3_157 = arith.constant 3 : index
    %c0_158 = arith.constant 0 : index
    %c0_159 = arith.constant 0 : index
    %462 = vector.load %arg2[%c3_157, %c0_158, %c0_159] : memref<4x64x128xbf16, #tpu.memory_space<vmem>>, vector<1x64x128xbf16>
    %463 = vector.shape_cast %462 : vector<1x64x128xbf16> to vector<64x128xbf16>
    %464 = arith.truncf %461 : vector<8x32xf32> to vector<8x32xbf16>
    %465 = arith.truncf %417 : vector<8x32xf32> to vector<8x32xbf16>
    %466 = tpu.concatenate %464, %465 in 1 : vector<8x32xbf16>, vector<8x32xbf16> -> vector<8x64xbf16>
    %cst_160 = arith.constant dense<0.000000e+00> : vector<8x128xf32>
    %467 = tpu.matmul %466, %463, %cst_160 {dimension_numbers = #tpu.dot_dimension_numbers<[1], [0], [0], [1], [0, 0, 1, 1], [], []>} : vector<8x64xbf16>, vector<64x128xbf16>, vector<8x128xf32> -> vector<8x128xf32>
    %c3_161 = arith.constant 3 : index
    %c0_162 = arith.constant 0 : index
    %468 = vector.load %arg3[%c3_161, %c0_162] : memref<4x128xf32, #tpu.memory_space<vmem>>, vector<1x128xf32>
    %469 = vector.broadcast %468 : vector<1x128xf32> to vector<8x128xf32>
    %470 = arith.addf %467, %469 : vector<8x128xf32>
    %471 = arith.negf %470 : vector<8x128xf32>
    %472 = math.exp %471 : vector<8x128xf32>
    %cst_163 = arith.constant 1.000000e+00 : f32
    %473 = vector.broadcast %cst_163 : f32 to vector<8x128xf32>
    %474 = arith.addf %473, %472 : vector<8x128xf32>
    %475 = arith.divf %473, %474 : vector<8x128xf32>
    %476 = math.tanh %470 : vector<8x128xf32>
    %477 = vector.extract_strided_slice %475 {offsets = [0, 0], sizes = [8, 32], strides = [1, 1]} : vector<8x128xf32> to vector<8x32xf32>
    %478 = vector.extract_strided_slice %475 {offsets = [0, 32], sizes = [8, 32], strides = [1, 1]} : vector<8x128xf32> to vector<8x32xf32>
    %479 = vector.extract_strided_slice %476 {offsets = [0, 64], sizes = [8, 32], strides = [1, 1]} : vector<8x128xf32> to vector<8x32xf32>
    %480 = vector.extract_strided_slice %475 {offsets = [0, 96], sizes = [8, 32], strides = [1, 1]} : vector<8x128xf32> to vector<8x32xf32>
    %481 = arith.mulf %478, %415 : vector<8x32xf32>
    %482 = arith.mulf %477, %479 : vector<8x32xf32>
    %483 = arith.addf %481, %482 : vector<8x32xf32>
    %484 = math.tanh %483 : vector<8x32xf32>
    %485 = arith.mulf %480, %484 : vector<8x32xf32>
    %486 = arith.truncf %485 : vector<8x32xf32> to vector<8x32xbf16>
    %c0_164 = arith.constant 0 : index
    %c0_165 = arith.constant 0 : index
    %487 = vector.load %arg4[%c0_164, %c0_165] : memref<32x128xbf16, #tpu.memory_space<vmem>>, vector<32x128xbf16>
    %cst_166 = arith.constant dense<0.000000e+00> : vector<8x128xf32>
    %488 = tpu.matmul %486, %487, %cst_166 {dimension_numbers = #tpu.dot_dimension_numbers<[1], [0], [0], [1], [0, 0, 1, 1], [], []>} : vector<8x32xbf16>, vector<32x128xbf16>, vector<8x128xf32> -> vector<8x128xf32>
    %489 = vector.broadcast %299 : vector<1x128xf32> to vector<8x128xf32>
    %490 = arith.addf %488, %489 : vector<8x128xf32>
    %cst_167 = arith.constant dense<0xFF800000> : vector<8xf32>
    %491 = vector.multi_reduction <maximumf>, %490, %cst_167 [1] : vector<8x128xf32> to vector<8xf32>
    %492 = vector.shape_cast %491 : vector<8xf32> to vector<8x1xf32>
    %493 = vector.broadcast %492 : vector<8x1xf32> to vector<8x128xf32>
    %494 = arith.cmpf oeq, %490, %493 : vector<8x128xf32>
    %c128_i32_168 = arith.constant 128 : i32
    %495 = vector.broadcast %c128_i32_168 : i32 to vector<8x128xi32>
    %496 = arith.select %494, %298, %495 : vector<8x128xi1>, vector<8x128xi32>
    %cst_169 = arith.constant dense<2147483647> : vector<8xi32>
    %497 = vector.multi_reduction <minsi>, %496, %cst_169 [1] : vector<8x128xi32> to vector<8xi32>
    %498 = vector.shape_cast %497 : vector<8xi32> to vector<8x1xi32>
    %499 = arith.sitofp %498 : vector<8x1xi32> to vector<8x1xf32>
    %c2_i32 = arith.constant 2 : i32
    %500 = vector.broadcast %c2_i32 : i32 to vector<8x128xi32>
    %501 = arith.cmpi eq, %298, %500 : vector<8x128xi32>
    %502 = vector.shape_cast %499 : vector<8x1xf32> to vector<8x1xf32>
    %503 = vector.broadcast %502 : vector<8x1xf32> to vector<8x128xf32>
    %504 = arith.select %501, %503, %436 : vector<8x128xi1>, vector<8x128xf32>
    %c3_170 = arith.constant 3 : index
    %c0_171 = arith.constant 0 : index
    %c0_172 = arith.constant 0 : index
    %505 = vector.load %arg1[%c3_170, %c0_171, %c0_172] : memref<6x8x32xbf16, #tpu.memory_space<vmem>>, vector<1x8x32xbf16>
    %506 = vector.shape_cast %505 : vector<1x8x32xbf16> to vector<8x32xbf16>
    %c2_173 = arith.constant 2 : index
    %c0_174 = arith.constant 0 : index
    %c0_175 = arith.constant 0 : index
    %507 = vector.load %arg2[%c2_173, %c0_174, %c0_175] : memref<4x64x128xbf16, #tpu.memory_space<vmem>>, vector<1x64x128xbf16>
    %508 = vector.shape_cast %507 : vector<1x64x128xbf16> to vector<64x128xbf16>
    %509 = arith.truncf %461 : vector<8x32xf32> to vector<8x32xbf16>
    %510 = tpu.concatenate %506, %509 in 1 : vector<8x32xbf16>, vector<8x32xbf16> -> vector<8x64xbf16>
    %cst_176 = arith.constant dense<0.000000e+00> : vector<8x128xf32>
    %511 = tpu.matmul %510, %508, %cst_176 {dimension_numbers = #tpu.dot_dimension_numbers<[1], [0], [0], [1], [0, 0, 1, 1], [], []>} : vector<8x64xbf16>, vector<64x128xbf16>, vector<8x128xf32> -> vector<8x128xf32>
    %c2_177 = arith.constant 2 : index
    %c0_178 = arith.constant 0 : index
    %512 = vector.load %arg3[%c2_177, %c0_178] : memref<4x128xf32, #tpu.memory_space<vmem>>, vector<1x128xf32>
    %513 = vector.broadcast %512 : vector<1x128xf32> to vector<8x128xf32>
    %514 = arith.addf %511, %513 : vector<8x128xf32>
    %515 = arith.negf %514 : vector<8x128xf32>
    %516 = math.exp %515 : vector<8x128xf32>
    %cst_179 = arith.constant 1.000000e+00 : f32
    %517 = vector.broadcast %cst_179 : f32 to vector<8x128xf32>
    %518 = arith.addf %517, %516 : vector<8x128xf32>
    %519 = arith.divf %517, %518 : vector<8x128xf32>
    %520 = math.tanh %514 : vector<8x128xf32>
    %521 = vector.extract_strided_slice %519 {offsets = [0, 0], sizes = [8, 32], strides = [1, 1]} : vector<8x128xf32> to vector<8x32xf32>
    %522 = vector.extract_strided_slice %519 {offsets = [0, 32], sizes = [8, 32], strides = [1, 1]} : vector<8x128xf32> to vector<8x32xf32>
    %523 = vector.extract_strided_slice %520 {offsets = [0, 64], sizes = [8, 32], strides = [1, 1]} : vector<8x128xf32> to vector<8x32xf32>
    %524 = vector.extract_strided_slice %519 {offsets = [0, 96], sizes = [8, 32], strides = [1, 1]} : vector<8x128xf32> to vector<8x32xf32>
    %525 = arith.mulf %522, %459 : vector<8x32xf32>
    %526 = arith.mulf %521, %523 : vector<8x32xf32>
    %527 = arith.addf %525, %526 : vector<8x32xf32>
    %528 = math.tanh %527 : vector<8x32xf32>
    %529 = arith.mulf %524, %528 : vector<8x32xf32>
    %c3_180 = arith.constant 3 : index
    %c0_181 = arith.constant 0 : index
    %c0_182 = arith.constant 0 : index
    %530 = vector.load %arg2[%c3_180, %c0_181, %c0_182] : memref<4x64x128xbf16, #tpu.memory_space<vmem>>, vector<1x64x128xbf16>
    %531 = vector.shape_cast %530 : vector<1x64x128xbf16> to vector<64x128xbf16>
    %532 = arith.truncf %529 : vector<8x32xf32> to vector<8x32xbf16>
    %533 = arith.truncf %485 : vector<8x32xf32> to vector<8x32xbf16>
    %534 = tpu.concatenate %532, %533 in 1 : vector<8x32xbf16>, vector<8x32xbf16> -> vector<8x64xbf16>
    %cst_183 = arith.constant dense<0.000000e+00> : vector<8x128xf32>
    %535 = tpu.matmul %534, %531, %cst_183 {dimension_numbers = #tpu.dot_dimension_numbers<[1], [0], [0], [1], [0, 0, 1, 1], [], []>} : vector<8x64xbf16>, vector<64x128xbf16>, vector<8x128xf32> -> vector<8x128xf32>
    %c3_184 = arith.constant 3 : index
    %c0_185 = arith.constant 0 : index
    %536 = vector.load %arg3[%c3_184, %c0_185] : memref<4x128xf32, #tpu.memory_space<vmem>>, vector<1x128xf32>
    %537 = vector.broadcast %536 : vector<1x128xf32> to vector<8x128xf32>
    %538 = arith.addf %535, %537 : vector<8x128xf32>
    %539 = arith.negf %538 : vector<8x128xf32>
    %540 = math.exp %539 : vector<8x128xf32>
    %cst_186 = arith.constant 1.000000e+00 : f32
    %541 = vector.broadcast %cst_186 : f32 to vector<8x128xf32>
    %542 = arith.addf %541, %540 : vector<8x128xf32>
    %543 = arith.divf %541, %542 : vector<8x128xf32>
    %544 = math.tanh %538 : vector<8x128xf32>
    %545 = vector.extract_strided_slice %543 {offsets = [0, 0], sizes = [8, 32], strides = [1, 1]} : vector<8x128xf32> to vector<8x32xf32>
    %546 = vector.extract_strided_slice %543 {offsets = [0, 32], sizes = [8, 32], strides = [1, 1]} : vector<8x128xf32> to vector<8x32xf32>
    %547 = vector.extract_strided_slice %544 {offsets = [0, 64], sizes = [8, 32], strides = [1, 1]} : vector<8x128xf32> to vector<8x32xf32>
    %548 = vector.extract_strided_slice %543 {offsets = [0, 96], sizes = [8, 32], strides = [1, 1]} : vector<8x128xf32> to vector<8x32xf32>
    %549 = arith.mulf %546, %483 : vector<8x32xf32>
    %550 = arith.mulf %545, %547 : vector<8x32xf32>
    %551 = arith.addf %549, %550 : vector<8x32xf32>
    %552 = math.tanh %551 : vector<8x32xf32>
    %553 = arith.mulf %548, %552 : vector<8x32xf32>
    %554 = arith.truncf %553 : vector<8x32xf32> to vector<8x32xbf16>
    %c0_187 = arith.constant 0 : index
    %c0_188 = arith.constant 0 : index
    %555 = vector.load %arg4[%c0_187, %c0_188] : memref<32x128xbf16, #tpu.memory_space<vmem>>, vector<32x128xbf16>
    %cst_189 = arith.constant dense<0.000000e+00> : vector<8x128xf32>
    %556 = tpu.matmul %554, %555, %cst_189 {dimension_numbers = #tpu.dot_dimension_numbers<[1], [0], [0], [1], [0, 0, 1, 1], [], []>} : vector<8x32xbf16>, vector<32x128xbf16>, vector<8x128xf32> -> vector<8x128xf32>
    %557 = vector.broadcast %299 : vector<1x128xf32> to vector<8x128xf32>
    %558 = arith.addf %556, %557 : vector<8x128xf32>
    %cst_190 = arith.constant dense<0xFF800000> : vector<8xf32>
    %559 = vector.multi_reduction <maximumf>, %558, %cst_190 [1] : vector<8x128xf32> to vector<8xf32>
    %560 = vector.shape_cast %559 : vector<8xf32> to vector<8x1xf32>
    %561 = vector.broadcast %560 : vector<8x1xf32> to vector<8x128xf32>
    %562 = arith.cmpf oeq, %558, %561 : vector<8x128xf32>
    %c128_i32_191 = arith.constant 128 : i32
    %563 = vector.broadcast %c128_i32_191 : i32 to vector<8x128xi32>
    %564 = arith.select %562, %298, %563 : vector<8x128xi1>, vector<8x128xi32>
    %cst_192 = arith.constant dense<2147483647> : vector<8xi32>
    %565 = vector.multi_reduction <minsi>, %564, %cst_192 [1] : vector<8x128xi32> to vector<8xi32>
    %566 = vector.shape_cast %565 : vector<8xi32> to vector<8x1xi32>
    %567 = arith.sitofp %566 : vector<8x1xi32> to vector<8x1xf32>
    %c3_i32 = arith.constant 3 : i32
    %568 = vector.broadcast %c3_i32 : i32 to vector<8x128xi32>
    %569 = arith.cmpi eq, %298, %568 : vector<8x128xi32>
    %570 = vector.shape_cast %567 : vector<8x1xf32> to vector<8x1xf32>
    %571 = vector.broadcast %570 : vector<8x1xf32> to vector<8x128xf32>
    %572 = arith.select %569, %571, %504 : vector<8x128xi1>, vector<8x128xf32>
    %c4_193 = arith.constant 4 : index
    %c0_194 = arith.constant 0 : index
    %c0_195 = arith.constant 0 : index
    %573 = vector.load %arg1[%c4_193, %c0_194, %c0_195] : memref<6x8x32xbf16, #tpu.memory_space<vmem>>, vector<1x8x32xbf16>
    %574 = vector.shape_cast %573 : vector<1x8x32xbf16> to vector<8x32xbf16>
    %c2_196 = arith.constant 2 : index
    %c0_197 = arith.constant 0 : index
    %c0_198 = arith.constant 0 : index
    %575 = vector.load %arg2[%c2_196, %c0_197, %c0_198] : memref<4x64x128xbf16, #tpu.memory_space<vmem>>, vector<1x64x128xbf16>
    %576 = vector.shape_cast %575 : vector<1x64x128xbf16> to vector<64x128xbf16>
    %577 = arith.truncf %529 : vector<8x32xf32> to vector<8x32xbf16>
    %578 = tpu.concatenate %574, %577 in 1 : vector<8x32xbf16>, vector<8x32xbf16> -> vector<8x64xbf16>
    %cst_199 = arith.constant dense<0.000000e+00> : vector<8x128xf32>
    %579 = tpu.matmul %578, %576, %cst_199 {dimension_numbers = #tpu.dot_dimension_numbers<[1], [0], [0], [1], [0, 0, 1, 1], [], []>} : vector<8x64xbf16>, vector<64x128xbf16>, vector<8x128xf32> -> vector<8x128xf32>
    %c2_200 = arith.constant 2 : index
    %c0_201 = arith.constant 0 : index
    %580 = vector.load %arg3[%c2_200, %c0_201] : memref<4x128xf32, #tpu.memory_space<vmem>>, vector<1x128xf32>
    %581 = vector.broadcast %580 : vector<1x128xf32> to vector<8x128xf32>
    %582 = arith.addf %579, %581 : vector<8x128xf32>
    %583 = arith.negf %582 : vector<8x128xf32>
    %584 = math.exp %583 : vector<8x128xf32>
    %cst_202 = arith.constant 1.000000e+00 : f32
    %585 = vector.broadcast %cst_202 : f32 to vector<8x128xf32>
    %586 = arith.addf %585, %584 : vector<8x128xf32>
    %587 = arith.divf %585, %586 : vector<8x128xf32>
    %588 = math.tanh %582 : vector<8x128xf32>
    %589 = vector.extract_strided_slice %587 {offsets = [0, 0], sizes = [8, 32], strides = [1, 1]} : vector<8x128xf32> to vector<8x32xf32>
    %590 = vector.extract_strided_slice %587 {offsets = [0, 32], sizes = [8, 32], strides = [1, 1]} : vector<8x128xf32> to vector<8x32xf32>
    %591 = vector.extract_strided_slice %588 {offsets = [0, 64], sizes = [8, 32], strides = [1, 1]} : vector<8x128xf32> to vector<8x32xf32>
    %592 = vector.extract_strided_slice %587 {offsets = [0, 96], sizes = [8, 32], strides = [1, 1]} : vector<8x128xf32> to vector<8x32xf32>
    %593 = arith.mulf %590, %527 : vector<8x32xf32>
    %594 = arith.mulf %589, %591 : vector<8x32xf32>
    %595 = arith.addf %593, %594 : vector<8x32xf32>
    %596 = math.tanh %595 : vector<8x32xf32>
    %597 = arith.mulf %592, %596 : vector<8x32xf32>
    %c3_203 = arith.constant 3 : index
    %c0_204 = arith.constant 0 : index
    %c0_205 = arith.constant 0 : index
    %598 = vector.load %arg2[%c3_203, %c0_204, %c0_205] : memref<4x64x128xbf16, #tpu.memory_space<vmem>>, vector<1x64x128xbf16>
    %599 = vector.shape_cast %598 : vector<1x64x128xbf16> to vector<64x128xbf16>
    %600 = arith.truncf %597 : vector<8x32xf32> to vector<8x32xbf16>
    %601 = arith.truncf %553 : vector<8x32xf32> to vector<8x32xbf16>
    %602 = tpu.concatenate %600, %601 in 1 : vector<8x32xbf16>, vector<8x32xbf16> -> vector<8x64xbf16>
    %cst_206 = arith.constant dense<0.000000e+00> : vector<8x128xf32>
    %603 = tpu.matmul %602, %599, %cst_206 {dimension_numbers = #tpu.dot_dimension_numbers<[1], [0], [0], [1], [0, 0, 1, 1], [], []>} : vector<8x64xbf16>, vector<64x128xbf16>, vector<8x128xf32> -> vector<8x128xf32>
    %c3_207 = arith.constant 3 : index
    %c0_208 = arith.constant 0 : index
    %604 = vector.load %arg3[%c3_207, %c0_208] : memref<4x128xf32, #tpu.memory_space<vmem>>, vector<1x128xf32>
    %605 = vector.broadcast %604 : vector<1x128xf32> to vector<8x128xf32>
    %606 = arith.addf %603, %605 : vector<8x128xf32>
    %607 = arith.negf %606 : vector<8x128xf32>
    %608 = math.exp %607 : vector<8x128xf32>
    %cst_209 = arith.constant 1.000000e+00 : f32
    %609 = vector.broadcast %cst_209 : f32 to vector<8x128xf32>
    %610 = arith.addf %609, %608 : vector<8x128xf32>
    %611 = arith.divf %609, %610 : vector<8x128xf32>
    %612 = math.tanh %606 : vector<8x128xf32>
    %613 = vector.extract_strided_slice %611 {offsets = [0, 0], sizes = [8, 32], strides = [1, 1]} : vector<8x128xf32> to vector<8x32xf32>
    %614 = vector.extract_strided_slice %611 {offsets = [0, 32], sizes = [8, 32], strides = [1, 1]} : vector<8x128xf32> to vector<8x32xf32>
    %615 = vector.extract_strided_slice %612 {offsets = [0, 64], sizes = [8, 32], strides = [1, 1]} : vector<8x128xf32> to vector<8x32xf32>
    %616 = vector.extract_strided_slice %611 {offsets = [0, 96], sizes = [8, 32], strides = [1, 1]} : vector<8x128xf32> to vector<8x32xf32>
    %617 = arith.mulf %614, %551 : vector<8x32xf32>
    %618 = arith.mulf %613, %615 : vector<8x32xf32>
    %619 = arith.addf %617, %618 : vector<8x32xf32>
    %620 = math.tanh %619 : vector<8x32xf32>
    %621 = arith.mulf %616, %620 : vector<8x32xf32>
    %622 = arith.truncf %621 : vector<8x32xf32> to vector<8x32xbf16>
    %c0_210 = arith.constant 0 : index
    %c0_211 = arith.constant 0 : index
    %623 = vector.load %arg4[%c0_210, %c0_211] : memref<32x128xbf16, #tpu.memory_space<vmem>>, vector<32x128xbf16>
    %cst_212 = arith.constant dense<0.000000e+00> : vector<8x128xf32>
    %624 = tpu.matmul %622, %623, %cst_212 {dimension_numbers = #tpu.dot_dimension_numbers<[1], [0], [0], [1], [0, 0, 1, 1], [], []>} : vector<8x32xbf16>, vector<32x128xbf16>, vector<8x128xf32> -> vector<8x128xf32>
    %625 = vector.broadcast %299 : vector<1x128xf32> to vector<8x128xf32>
    %626 = arith.addf %624, %625 : vector<8x128xf32>
    %cst_213 = arith.constant dense<0xFF800000> : vector<8xf32>
    %627 = vector.multi_reduction <maximumf>, %626, %cst_213 [1] : vector<8x128xf32> to vector<8xf32>
    %628 = vector.shape_cast %627 : vector<8xf32> to vector<8x1xf32>
    %629 = vector.broadcast %628 : vector<8x1xf32> to vector<8x128xf32>
    %630 = arith.cmpf oeq, %626, %629 : vector<8x128xf32>
    %c128_i32_214 = arith.constant 128 : i32
    %631 = vector.broadcast %c128_i32_214 : i32 to vector<8x128xi32>
    %632 = arith.select %630, %298, %631 : vector<8x128xi1>, vector<8x128xi32>
    %cst_215 = arith.constant dense<2147483647> : vector<8xi32>
    %633 = vector.multi_reduction <minsi>, %632, %cst_215 [1] : vector<8x128xi32> to vector<8xi32>
    %634 = vector.shape_cast %633 : vector<8xi32> to vector<8x1xi32>
    %635 = arith.sitofp %634 : vector<8x1xi32> to vector<8x1xf32>
    %c4_i32 = arith.constant 4 : i32
    %636 = vector.broadcast %c4_i32 : i32 to vector<8x128xi32>
    %637 = arith.cmpi eq, %298, %636 : vector<8x128xi32>
    %638 = vector.shape_cast %635 : vector<8x1xf32> to vector<8x1xf32>
    %639 = vector.broadcast %638 : vector<8x1xf32> to vector<8x128xf32>
    %640 = arith.select %637, %639, %572 : vector<8x128xi1>, vector<8x128xf32>
    %c5_216 = arith.constant 5 : index
    %c0_217 = arith.constant 0 : index
    %c0_218 = arith.constant 0 : index
    %641 = vector.load %arg1[%c5_216, %c0_217, %c0_218] : memref<6x8x32xbf16, #tpu.memory_space<vmem>>, vector<1x8x32xbf16>
    %642 = vector.shape_cast %641 : vector<1x8x32xbf16> to vector<8x32xbf16>
    %c2_219 = arith.constant 2 : index
    %c0_220 = arith.constant 0 : index
    %c0_221 = arith.constant 0 : index
    %643 = vector.load %arg2[%c2_219, %c0_220, %c0_221] : memref<4x64x128xbf16, #tpu.memory_space<vmem>>, vector<1x64x128xbf16>
    %644 = vector.shape_cast %643 : vector<1x64x128xbf16> to vector<64x128xbf16>
    %645 = arith.truncf %597 : vector<8x32xf32> to vector<8x32xbf16>
    %646 = tpu.concatenate %642, %645 in 1 : vector<8x32xbf16>, vector<8x32xbf16> -> vector<8x64xbf16>
    %cst_222 = arith.constant dense<0.000000e+00> : vector<8x128xf32>
    %647 = tpu.matmul %646, %644, %cst_222 {dimension_numbers = #tpu.dot_dimension_numbers<[1], [0], [0], [1], [0, 0, 1, 1], [], []>} : vector<8x64xbf16>, vector<64x128xbf16>, vector<8x128xf32> -> vector<8x128xf32>
    %c2_223 = arith.constant 2 : index
    %c0_224 = arith.constant 0 : index
    %648 = vector.load %arg3[%c2_223, %c0_224] : memref<4x128xf32, #tpu.memory_space<vmem>>, vector<1x128xf32>
    %649 = vector.broadcast %648 : vector<1x128xf32> to vector<8x128xf32>
    %650 = arith.addf %647, %649 : vector<8x128xf32>
    %651 = arith.negf %650 : vector<8x128xf32>
    %652 = math.exp %651 : vector<8x128xf32>
    %cst_225 = arith.constant 1.000000e+00 : f32
    %653 = vector.broadcast %cst_225 : f32 to vector<8x128xf32>
    %654 = arith.addf %653, %652 : vector<8x128xf32>
    %655 = arith.divf %653, %654 : vector<8x128xf32>
    %656 = math.tanh %650 : vector<8x128xf32>
    %657 = vector.extract_strided_slice %655 {offsets = [0, 0], sizes = [8, 32], strides = [1, 1]} : vector<8x128xf32> to vector<8x32xf32>
    %658 = vector.extract_strided_slice %655 {offsets = [0, 32], sizes = [8, 32], strides = [1, 1]} : vector<8x128xf32> to vector<8x32xf32>
    %659 = vector.extract_strided_slice %656 {offsets = [0, 64], sizes = [8, 32], strides = [1, 1]} : vector<8x128xf32> to vector<8x32xf32>
    %660 = vector.extract_strided_slice %655 {offsets = [0, 96], sizes = [8, 32], strides = [1, 1]} : vector<8x128xf32> to vector<8x32xf32>
    %661 = arith.mulf %658, %595 : vector<8x32xf32>
    %662 = arith.mulf %657, %659 : vector<8x32xf32>
    %663 = arith.addf %661, %662 : vector<8x32xf32>
    %664 = math.tanh %663 : vector<8x32xf32>
    %665 = arith.mulf %660, %664 : vector<8x32xf32>
    %c3_226 = arith.constant 3 : index
    %c0_227 = arith.constant 0 : index
    %c0_228 = arith.constant 0 : index
    %666 = vector.load %arg2[%c3_226, %c0_227, %c0_228] : memref<4x64x128xbf16, #tpu.memory_space<vmem>>, vector<1x64x128xbf16>
    %667 = vector.shape_cast %666 : vector<1x64x128xbf16> to vector<64x128xbf16>
    %668 = arith.truncf %665 : vector<8x32xf32> to vector<8x32xbf16>
    %669 = arith.truncf %621 : vector<8x32xf32> to vector<8x32xbf16>
    %670 = tpu.concatenate %668, %669 in 1 : vector<8x32xbf16>, vector<8x32xbf16> -> vector<8x64xbf16>
    %cst_229 = arith.constant dense<0.000000e+00> : vector<8x128xf32>
    %671 = tpu.matmul %670, %667, %cst_229 {dimension_numbers = #tpu.dot_dimension_numbers<[1], [0], [0], [1], [0, 0, 1, 1], [], []>} : vector<8x64xbf16>, vector<64x128xbf16>, vector<8x128xf32> -> vector<8x128xf32>
    %c3_230 = arith.constant 3 : index
    %c0_231 = arith.constant 0 : index
    %672 = vector.load %arg3[%c3_230, %c0_231] : memref<4x128xf32, #tpu.memory_space<vmem>>, vector<1x128xf32>
    %673 = vector.broadcast %672 : vector<1x128xf32> to vector<8x128xf32>
    %674 = arith.addf %671, %673 : vector<8x128xf32>
    %675 = arith.negf %674 : vector<8x128xf32>
    %676 = math.exp %675 : vector<8x128xf32>
    %cst_232 = arith.constant 1.000000e+00 : f32
    %677 = vector.broadcast %cst_232 : f32 to vector<8x128xf32>
    %678 = arith.addf %677, %676 : vector<8x128xf32>
    %679 = arith.divf %677, %678 : vector<8x128xf32>
    %680 = math.tanh %674 : vector<8x128xf32>
    %681 = vector.extract_strided_slice %679 {offsets = [0, 0], sizes = [8, 32], strides = [1, 1]} : vector<8x128xf32> to vector<8x32xf32>
    %682 = vector.extract_strided_slice %679 {offsets = [0, 32], sizes = [8, 32], strides = [1, 1]} : vector<8x128xf32> to vector<8x32xf32>
    %683 = vector.extract_strided_slice %680 {offsets = [0, 64], sizes = [8, 32], strides = [1, 1]} : vector<8x128xf32> to vector<8x32xf32>
    %684 = vector.extract_strided_slice %679 {offsets = [0, 96], sizes = [8, 32], strides = [1, 1]} : vector<8x128xf32> to vector<8x32xf32>
    %685 = arith.mulf %682, %619 : vector<8x32xf32>
    %686 = arith.mulf %681, %683 : vector<8x32xf32>
    %687 = arith.addf %685, %686 : vector<8x32xf32>
    %688 = math.tanh %687 : vector<8x32xf32>
    %689 = arith.mulf %684, %688 : vector<8x32xf32>
    %690 = arith.truncf %689 : vector<8x32xf32> to vector<8x32xbf16>
    %c0_233 = arith.constant 0 : index
    %c0_234 = arith.constant 0 : index
    %691 = vector.load %arg4[%c0_233, %c0_234] : memref<32x128xbf16, #tpu.memory_space<vmem>>, vector<32x128xbf16>
    %cst_235 = arith.constant dense<0.000000e+00> : vector<8x128xf32>
    %692 = tpu.matmul %690, %691, %cst_235 {dimension_numbers = #tpu.dot_dimension_numbers<[1], [0], [0], [1], [0, 0, 1, 1], [], []>} : vector<8x32xbf16>, vector<32x128xbf16>, vector<8x128xf32> -> vector<8x128xf32>
    %693 = vector.broadcast %299 : vector<1x128xf32> to vector<8x128xf32>
    %694 = arith.addf %692, %693 : vector<8x128xf32>
    %cst_236 = arith.constant dense<0xFF800000> : vector<8xf32>
    %695 = vector.multi_reduction <maximumf>, %694, %cst_236 [1] : vector<8x128xf32> to vector<8xf32>
    %696 = vector.shape_cast %695 : vector<8xf32> to vector<8x1xf32>
    %697 = vector.broadcast %696 : vector<8x1xf32> to vector<8x128xf32>
    %698 = arith.cmpf oeq, %694, %697 : vector<8x128xf32>
    %c128_i32_237 = arith.constant 128 : i32
    %699 = vector.broadcast %c128_i32_237 : i32 to vector<8x128xi32>
    %700 = arith.select %698, %298, %699 : vector<8x128xi1>, vector<8x128xi32>
    %cst_238 = arith.constant dense<2147483647> : vector<8xi32>
    %701 = vector.multi_reduction <minsi>, %700, %cst_238 [1] : vector<8x128xi32> to vector<8xi32>
    %702 = vector.shape_cast %701 : vector<8xi32> to vector<8x1xi32>
    %703 = arith.sitofp %702 : vector<8x1xi32> to vector<8x1xf32>
    %c5_i32 = arith.constant 5 : i32
    %704 = vector.broadcast %c5_i32 : i32 to vector<8x128xi32>
    %705 = arith.cmpi eq, %298, %704 : vector<8x128xi32>
    %706 = vector.shape_cast %703 : vector<8x1xf32> to vector<8x1xf32>
    %707 = vector.broadcast %706 : vector<8x1xf32> to vector<8x128xf32>
    %708 = arith.select %705, %707, %640 : vector<8x128xi1>, vector<8x128xf32>
    %c0_239 = arith.constant 0 : index
    %c0_240 = arith.constant 0 : index
    %709 = vector.load %arg6[%c0_239, %c0_240] : memref<8x128xf32, #tpu.memory_space<vmem>>, vector<8x128xf32>
    tpu.vector_store %arg6[%c0_239, %c0_240], %708 {strides = array<i32>} : memref<8x128xf32, #tpu.memory_space<vmem>>, vector<8x128xf32>,
    return
  }
}

</mosaic_0001>

<bundles_post_ra>
// kernel: _forward_jit.1
= control target key start
LH: loop header
LB: loop body
LE: loop exit
PB: predicated region body
PF: predicated region fallthrough
CT: control target
= control target key end

     0   :  { %v3195_v0 = vmov 0.0   ;;  %vm3196_vm0 = vmmov 0   ;;  %vm33_vm1 = vcmask 261120   ;;  %vm66_vm2 = vcmask 523264   ;;  %s3197_s9 = smov 64   ;;  %s3198_s10 = smov 32   ;;  %s3966_s2 = inlined_call_operand.vmem [shape: bf16[4,64,128], index: 2, kind: input, shape index: {}]   ;;  %s3967_s0 = inlined_call_operand.vmem [shape: bf16[6,8,32], index: 0, kind: input, shape index: {}]   ;;  %s3968_s3 = inlined_call_operand.vmem [shape: f32[4,128], index: 3, kind: input, shape index: {}]   ;;  %s3969_s1 = inlined_call_operand.vmem [shape: bf16[6,8,32], index: 1, kind: input, shape index: {}]   ;;  %s3970_s4 = inlined_call_operand.vmem [shape: bf16[32,128], index: 4, kind: input, shape index: {}]   ;;  %s3971_s5 = inlined_call_operand.vmem [shape: f32[1,128], index: 5, kind: input, shape index: {}]   ;;  %s3972_s6 = inlined_call_operand.vmem [shape: f32[8,128], index: 6, kind: output, shape index: {}]  }
   0x1   :  { %2645 = vmatprep.subr.bf16.mxu0 %v3195_v0  ;;  %v3238_v1 = vld [vmem:[%s3966_s2] sm:$0xff]   ;;  %2653 = vmatprep.mubr.msk.bf16.mxu0 %vm3196_vm0, %v3195_v0  ;;  %v3249_v2 = vld [vmem:[%s3966_s2 + $0x8] sm:$0xff]   ;;  %v3255_v3 = vld [vmem:[%s3966_s2 + $0x10] sm:$0xff]  }
   0x2   :  { %2657 = vmatprep.subr.bf16.mxu1 %v3195_v0  ;;  %2665 = vmatprep.mubr.msk.bf16.mxu1 %vm3196_vm0, %v3195_v0  ;;  %v3262_v4 = vld [vmem:[%s3966_s2 + $0x18] sm:$0xff]   ;;  %v24_v5 = vld [vmem:[%s3967_s0] sm:$0xf]  ;;  %v3303_v24 = vld [vmem:[%s3966_s2 + $0x28] sm:$0xff]  }
   0x3   :  { %2646 = vmatpush3.bf16.msra.mxu0 %v3238_v1  ;;  %v36_v6 = vsel %vm33_vm1, %v24_v5, 0  ;;  %v3286_v7 = vld [vmem:[%s3968_s3] ss:$0 sm:$0xff]  ;;  %v3310_v25 = vld [vmem:[%s3966_s2 + $0x30] sm:$0xff]   ;;  %v3318_v27 = vld [vmem:[%s3966_s2 + $0x38] sm:$0xff]  }
   0x4   :  { %2647 = vmatprep.subr.bf16.mxu0 %v3195_v0  ;;  %v3297_v23 = vld [vmem:[%s3966_s2 + $0x20] sm:$0xff]  }
   0x5   :  { %2658 = vmatpush3.bf16.msra.mxu1 %v3297_v23  ;;  %v2418_v31 = vld [vmem:[%s3967_s0 + $0x4] sm:$0xf]  ;;  %v3355_v36 = vld [vmem:[%s3968_s3 + $0x1] ss:$0 sm:$0xff] }
   0x6   :  { %2659 = vmatprep.subr.bf16.mxu1 %v3195_v0 }
   0x7   :  { %2648 = vmatpush3.bf16.msra.mxu0 %v3249_v2 }
   0x8   :  { %2649 = vmatprep.subr.bf16.mxu0 %v3195_v0 }
   0x9   :  { %2660 = vmatpush3.bf16.msra.mxu1 %v3303_v24 }
   0xa   :  { %2661 = vmatprep.subr.bf16.mxu1 %v3195_v0 }
   0xb   :  { %2650 = vmatpush3.bf16.msra.mxu0 %v3255_v3 }
   0xc   :  { %2651 = vmatprep.subr.bf16.mxu0 %v3195_v0 }
   0xd   :  { %2662 = vmatpush3.bf16.msra.mxu1 %v3310_v25 }
   0xe   :  { %2663 = vmatprep.subr.bf16.mxu1 %v3195_v0 }
   0xf   :  { %2652 = vmatpush3.bf16.msra.mxu0 %v3262_v4 }
  0x10   :  { %2669 = vmatprep.subr.bf16.mxu0 %v3195_v0 }
  0x11   :  { %2664 = vmatpush3.bf16.msra.mxu1 %v3318_v27 }
  0x12   :  { %2654 = vmatmul.mubr.msk.bf16.vlgmr.msra.gmra.mrb[0].mxu0 %vm66_vm2, %v36_v6  ;;  %2681 = vmatprep.subr.bf16.mxu1 %v3195_v0 }
  0x13   :  { %2670 = vmatpush3.bf16.msra.mxu0 %v3238_v1  ;;  %2677 = vmatprep.mubr.msk.bf16.mxu0 %vm3196_vm0, %v3195_v0 }
  0x14   :  { %2671 = vmatprep.subr.bf16.mxu0 %v3195_v0 }
  0x17   :  { %2672 = vmatpush3.bf16.msra.mxu0 %v3249_v2 }
  0x18   :  { %2673 = vmatprep.subr.bf16.mxu0 %v3195_v0 }
  0x1b   :  { %2674 = vmatpush3.bf16.msra.mxu0 %v3255_v3 }
  0x1c   :  { %2675 = vmatprep.subr.bf16.mxu0 %v3195_v0 }
  0x1f   :  { %2676 = vmatpush3.bf16.msra.mxu0 %v3262_v4 }
  0x20   :  { %2693 = vmatprep.subr.bf16.mxu0 %v3195_v0 }
  0xe5   :  { %v103_v8 = vpop.f32.mrb[0].mxu0 }
  0xe6   :  { %v104_v9 = vadd.f32 %v3286_v7, %v103_v8  ;;  %v2655_v10 = vpop.f32.mrb[1].mxu0 }
  0xe7   :  { %v106_v11 = vpop.f32.mrb[2].mxu0 }
  0xe8   :  { %3003 = vtanh.f32 %v104_v9  ;;  %v2656_v12 = vpop.f32.mrb[3].mxu0  ;;  %v2402_v14 = vmul.f32 -1.442695, %v104_v9 }
  0xea   :  { %3005 = vpow2.f32 %v2402_v14 }
  0xf2   :  { %v3004_v13 = vpop.eup %3003 }
  0xf3   :  { %118 = vrot.lane.b32.xlu0 %v3004_v13, %s3197_s9 }
  0xf4   :  { %v3006_v15 = vpop.eup %3005 }
  0xf5   :  { %v112_v16 = vadd.f32 1.0, %v3006_v15 }
  0xf7   :  { %3007 = vrcp.f32 %v112_v16 }
 0x101   :  { %v3008_v17 = vpop.eup %3007 }
 0x102   :  { %v116_v20 = vmul.f32 0.0, %v3008_v17 }
 0x165   :  { %v119_v18 = vpop.permute.xlu0 %118 }
 0x166   :  { %v121_v19 = vmul.f32 %v3008_v17, %v119_v18 }
 0x168   :  { %123 = vrot.lane.b32.xlu0 %v121_v19, %s3198_s10 }
 0x1da   :  { %v124_v21 = vpop.permute.xlu0 %123 }
 0x1db   :  { %v3291_v22 = vadd.f32 %v124_v21, %v116_v20  ;;  %v2423_v20 = vld [vmem:[%s3967_s0 + $0x8] sm:$0xf] }
 0x1dd   :  { %3009 = vtanh.f32 %v3291_v22 }
 0x1e7   :  { %v3010_v26 = vpop.eup %3009 }
 0x1e8   :  { %129 = vrot.lane.b32.xlu1 %v3010_v26, %s3197_s9 }
 0x25a   :  { %v130_v28 = vpop.permute.xlu1 %129 }
 0x25b   :  { %v132_v29 = vmul.f32 %v3008_v17, %v130_v28 }
 0x25d   :  { %v142_v30 = vpack.c.bf16 %v132_v29, %v132_v29 }
 0x25f   :  { %245 = vrot.lane.b32.xlu0 %v142_v30, %s3197_s9  ;;  %144 = vrot.lane.b32.xlu1 %v142_v30, %s3198_s10 }
 0x2d1   :  { %v246_v32 = vpop.permute.xlu0 %245  ;;  %v145_v33 = vpop.permute.xlu1 %144 }
 0x2d2   :  { %v249_v34 = vsel %vm33_vm1, %v2418_v31, %v246_v32  ;;  %v147_v35 = vsel %vm33_vm1, %v145_v33, 0 }
 0x2d3   :  { %2666 = vmatmul.mubr.msk.bf16.vlgmr.msra.gmra.mrb[0].mxu1 %vm66_vm2, %v147_v35  ;;  %2678 = vmatmul.mubr.msk.bf16.vlgmr.msra.gmra.mrb[4].mxu0 %vm66_vm2, %v249_v34 }
 0x2d4   :  { %2682 = vmatpush3.bf16.msra.mxu1 %v3297_v23  ;;  %2694 = vmatpush3.bf16.msra.mxu0 %v3238_v1 }
 0x2d5   :  { %2683 = vmatprep.subr.bf16.mxu1 %v3195_v0  ;;  %2695 = vmatprep.subr.bf16.mxu0 %v3195_v0 }
 0x2d6   :  { %2689 = vmatprep.mubr.msk.bf16.mxu1 %vm3196_vm0, %v3195_v0  ;;  %2701 = vmatprep.mubr.msk.bf16.mxu0 %vm3196_vm0, %v3195_v0 }
 0x2d8   :  { %2684 = vmatpush3.bf16.msra.mxu1 %v3303_v24  ;;  %2696 = vmatpush3.bf16.msra.mxu0 %v3249_v2 }
 0x2d9   :  { %2685 = vmatprep.subr.bf16.mxu1 %v3195_v0  ;;  %2697 = vmatprep.subr.bf16.mxu0 %v3195_v0 }
 0x2dc   :  { %2686 = vmatpush3.bf16.msra.mxu1 %v3310_v25  ;;  %2698 = vmatpush3.bf16.msra.mxu0 %v3255_v3 }
 0x2dd   :  { %2687 = vmatprep.subr.bf16.mxu1 %v3195_v0  ;;  %2699 = vmatprep.subr.bf16.mxu0 %v3195_v0 }
 0x2e0   :  { %2688 = vmatpush3.bf16.msra.mxu1 %v3318_v27  ;;  %2700 = vmatpush3.bf16.msra.mxu0 %v3262_v4 }
 0x2e1   :  { %2705 = vmatprep.subr.bf16.mxu1 %v3195_v0  ;;  %2717 = vmatprep.subr.bf16.mxu0 %v3195_v0 }
 0x3a6   :  { %v213_v37 = vpop.f32.mrb[0].mxu1  ;;  %v286_v38 = vpop.f32.mrb[4].mxu0 }
 0x3a7   :  { %v214_v39 = vadd.f32 %v3355_v36, %v213_v37  ;;  %v287_v40 = vadd.f32 %v3286_v7, %v286_v38  ;;  %v2667_v41 = vpop.f32.mrb[1].mxu1  ;;  %v2679_v42 = vpop.f32.mrb[5].mxu0 }
 0x3a8   :  { %v216_v43 = vpop.f32.mrb[2].mxu1  ;;  %v289_v44 = vpop.f32.mrb[6].mxu0 }
 0x3a9   :  { %3011 = vtanh.f32 %v214_v39  ;;  %v2668_v45 = vpop.f32.mrb[3].mxu1  ;;  %v2680_v46 = vpop.f32.mrb[7].mxu0  ;;  %v2417_v49 = vmul.f32 -1.442695, %v214_v39  ;;  %v2420_v50 = vmul.f32 -1.442695, %v287_v40 }
 0x3aa   :  { %3013 = vtanh.f32 %v287_v40 }
 0x3ab   :  { %3015 = vpow2.f32 %v2417_v49 }
 0x3ac   :  { %3017 = vpow2.f32 %v2420_v50 }
 0x3b3   :  { %v3012_v47 = vpop.eup %3011 }
 0x3b4   :  { %v3014_v48 = vpop.eup %3013  ;;  %228 = vrot.lane.b32.xlu1 %v3012_v47, %s3197_s9 }
 0x3b5   :  { %301 = vrot.lane.b32.xlu0 %v3014_v48, %s3197_s9  ;;  %v3016_v51 = vpop.eup %3015 }
 0x3b6   :  { %v3018_v52 = vpop.eup %3017  ;;  %v222_v53 = vadd.f32 1.0, %v3016_v51 }
 0x3b7   :  { %v295_v54 = vadd.f32 1.0, %v3018_v52 }
 0x3b8   :  { %3019 = vrcp.f32 %v222_v53 }
 0x3b9   :  { %3021 = vrcp.f32 %v295_v54 }
 0x3c2   :  { %v3020_v55 = vpop.eup %3019 }
 0x3c3   :  { %v3022_v57 = vpop.eup %3021  ;;  %v226_v61 = vmul.f32 0.0, %v3020_v55 }
 0x3c4   :  { %v299_v63 = vmul.f32 %v3022_v57, %v3291_v22 }
 0x426   :  { %v229_v56 = vpop.permute.xlu1 %228 }
 0x427   :  { %v231_v58 = vmul.f32 %v3020_v55, %v229_v56  ;;  %v302_v59 = vpop.permute.xlu0 %301 }
 0x428   :  { %v304_v60 = vmul.f32 %v3022_v57, %v302_v59 }
 0x429   :  { %233 = vrot.lane.b32.xlu1 %v231_v58, %s3198_s10 }
 0x42a   :  { %306 = vrot.lane.b32.xlu0 %v304_v60, %s3198_s10 }
 0x49b   :  { %v234_v62 = vpop.permute.xlu1 %233 }
 0x49c   :  { %v3364_v5 = vadd.f32 %v234_v62, %v226_v61  ;;  %v307_v6 = vpop.permute.xlu0 %306 }
 0x49d   :  { %v3366_v8 = vadd.f32 %v307_v6, %v299_v63 }
 0x49e   :  { %3023 = vtanh.f32 %v3364_v5 }
 0x49f   :  { %3025 = vtanh.f32 %v3366_v8 }
 0x4a8   :  { %v3024_v9 = vpop.eup %3023 }
 0x4a9   :  { %v3026_v10 = vpop.eup %3025  ;;  %239 = vrot.lane.b32.xlu1 %v3024_v9, %s3197_s9 }
 0x4aa   :  { %312 = vrot.lane.b32.xlu0 %v3026_v10, %s3197_s9 }
 0x51b   :  { %v240_v11 = vpop.permute.xlu1 %239 }
 0x51c   :  { %v242_v12 = vmul.f32 %v3020_v55, %v240_v11  ;;  %v313_v13 = vpop.permute.xlu0 %312  ;;  %v2428_v11 = vld [vmem:[%s3967_s0 + $0xc] sm:$0xf] }
 0x51d   :  { %v315_v14 = vmul.f32 %v3022_v57, %v313_v13 }
 0x51e   :  { %v317_v15 = vpack.c.bf16 %v242_v12, %v242_v12 }
 0x51f   :  { %v316_v16 = vpack.c.bf16 %v315_v14, %v315_v14 }
 0x520   :  { %322 = vrot.lane.b32.xlu0 %v317_v15, %s3197_s9 }
 0x521   :  { %319 = vrot.lane.b32.xlu1 %v316_v16, %s3198_s10 }
 0x525   :  { %395 = vrot.lane.b32.xlu1 %v316_v16, %s3197_s9 }
 0x592   :  { %v323_v17 = vpop.permute.xlu0 %322 }
 0x593   :  { %v320_v18 = vpop.permute.xlu1 %319 }
 0x594   :  { %v326_v19 = vsel %vm33_vm1, %v320_v18, %v323_v17 }
 0x595   :  { %2690 = vmatmul.mubr.msk.bf16.vlgmr.msra.gmra.mrb[4].mxu1 %vm66_vm2, %v326_v19 }
 0x596   :  { %2706 = vmatpush3.bf16.msra.mxu1 %v3297_v23  ;;  %2713 = vmatprep.mubr.msk.bf16.mxu1 %vm3196_vm0, %v3195_v0 }
 0x597   :  { %v396_v21 = vpop.permute.xlu1 %395  ;;  %2707 = vmatprep.subr.bf16.mxu1 %v3195_v0 }
 0x598   :  { %v399_v22 = vsel %vm33_vm1, %v2423_v20, %v396_v21 }
 0x599   :  { %2702 = vmatmul.mubr.msk.bf16.vlgmr.msra.gmra.mrb[8].mxu0 %vm66_vm2, %v399_v22 }
 0x59a   :  { %2708 = vmatpush3.bf16.msra.mxu1 %v3303_v24  ;;  %2718 = vmatpush3.bf16.msra.mxu0 %v3238_v1 }
 0x59b   :  { %2709 = vmatprep.subr.bf16.mxu1 %v3195_v0  ;;  %2719 = vmatprep.subr.bf16.mxu0 %v3195_v0 }
 0x59c   :  { %2725 = vmatprep.mubr.msk.bf16.mxu0 %vm3196_vm0, %v3195_v0 }
 0x59e   :  { %2710 = vmatpush3.bf16.msra.mxu1 %v3310_v25  ;;  %2720 = vmatpush3.bf16.msra.mxu0 %v3249_v2 }
 0x59f   :  { %2711 = vmatprep.subr.bf16.mxu1 %v3195_v0  ;;  %2721 = vmatprep.subr.bf16.mxu0 %v3195_v0 }
 0x5a2   :  { %2712 = vmatpush3.bf16.msra.mxu1 %v3318_v27  ;;  %2722 = vmatpush3.bf16.msra.mxu0 %v3255_v3 }
 0x5a3   :  { %2723 = vmatprep.subr.bf16.mxu0 %v3195_v0  ;;  %2729 = vmatprep.subr.bf16.mxu1 %v3195_v0 }
 0x5a6   :  { %2724 = vmatpush3.bf16.msra.mxu0 %v3262_v4 }
 0x5a7   :  { %2741 = vmatprep.subr.bf16.mxu0 %v3195_v0 }
 0x668   :  { %v363_v26 = vpop.f32.mrb[4].mxu1 }
 0x669   :  { %v364_v28 = vadd.f32 %v3355_v36, %v363_v26  ;;  %v2691_v29 = vpop.f32.mrb[5].mxu1 }
 0x66a   :  { %v366_v30 = vpop.f32.mrb[6].mxu1 }
 0x66b   :  { %3027 = vtanh.f32 %v364_v28  ;;  %v2692_v31 = vpop.f32.mrb[7].mxu1  ;;  %v2422_v40 = vmul.f32 -1.442695, %v364_v28 }
 0x66c   :  { %v436_v32 = vpop.f32.mrb[8].mxu0 }
 0x66d   :  { %v437_v33 = vadd.f32 %v3286_v7, %v436_v32  ;;  %v2703_v34 = vpop.f32.mrb[9].mxu0 }
 0x66e   :  { %v439_v35 = vpop.f32.mrb[10].mxu0 }
 0x66f   :  { %3029 = vtanh.f32 %v437_v33  ;;  %v2704_v37 = vpop.f32.mrb[11].mxu0  ;;  %v2425_v41 = vmul.f32 -1.442695, %v437_v33 }
 0x670   :  { %3031 = vpow2.f32 %v2422_v40 }
 0x671   :  { %3033 = vpow2.f32 %v2425_v41 }
 0x675   :  { %v3028_v38 = vpop.eup %3027 }
 0x676   :  { %378 = vrot.lane.b32.xlu0 %v3028_v38, %s3197_s9 }
 0x679   :  { %v3030_v39 = vpop.eup %3029 }
 0x67a   :  { %451 = vrot.lane.b32.xlu1 %v3030_v39, %s3197_s9  ;;  %v3032_v42 = vpop.eup %3031 }
 0x67b   :  { %v372_v43 = vadd.f32 1.0, %v3032_v42  ;;  %v3034_v44 = vpop.eup %3033 }
 0x67c   :  { %v445_v45 = vadd.f32 1.0, %v3034_v44 }
 0x67d   :  { %3035 = vrcp.f32 %v372_v43 }
 0x67e   :  { %3037 = vrcp.f32 %v445_v45 }
 0x687   :  { %v3036_v46 = vpop.eup %3035 }
 0x688   :  { %v3038_v49 = vpop.eup %3037  ;;  %v376_v52 = vmul.f32 %v3036_v46, %v3364_v5 }
 0x689   :  { %v449_v55 = vmul.f32 %v3038_v49, %v3366_v8 }
 0x6e8   :  { %v379_v47 = vpop.permute.xlu0 %378 }
 0x6e9   :  { %v381_v48 = vmul.f32 %v3036_v46, %v379_v47 }
 0x6eb   :  { %383 = vrot.lane.b32.xlu0 %v381_v48, %s3198_s10 }
 0x6ec   :  { %v452_v50 = vpop.permute.xlu1 %451 }
 0x6ed   :  { %v454_v51 = vmul.f32 %v3038_v49, %v452_v50 }
 0x6ef   :  { %456 = vrot.lane.b32.xlu1 %v454_v51, %s3198_s10 }
 0x75d   :  { %v384_v53 = vpop.permute.xlu0 %383 }
 0x75e   :  { %v3409_v54 = vadd.f32 %v384_v53, %v376_v52 }
 0x760   :  { %3039 = vtanh.f32 %v3409_v54 }
 0x761   :  { %v457_v56 = vpop.permute.xlu1 %456 }
 0x762   :  { %v3413_v57 = vadd.f32 %v457_v56, %v449_v55 }
 0x764   :  { %3041 = vtanh.f32 %v3413_v57 }
 0x76a   :  { %v3040_v58 = vpop.eup %3039 }
 0x76b   :  { %389 = vrot.lane.b32.xlu0 %v3040_v58, %s3197_s9 }
 0x76e   :  { %v3042_v59 = vpop.eup %3041 }
 0x76f   :  { %462 = vrot.lane.b32.xlu1 %v3042_v59, %s3197_s9 }
 0x7dd   :  { %v390_v60 = vpop.permute.xlu0 %389 }
 0x7de   :  { %v392_v61 = vmul.f32 %v3036_v46, %v390_v60  ;;  %v2433_v60 = vld [vmem:[%s3967_s0 + $0x10] sm:$0xf] }
 0x7e0   :  { %v467_v62 = vpack.c.bf16 %v392_v61, %v392_v61 }
 0x7e1   :  { %v463_v63 = vpop.permute.xlu1 %462 }
 0x7e2   :  { %v465_v5 = vmul.f32 %v3038_v49, %v463_v63  ;;  %472 = vrot.lane.b32.xlu1 %v467_v62, %s3197_s9 }
 0x7e4   :  { %v466_v6 = vpack.c.bf16 %v465_v5, %v465_v5 }
 0x7e6   :  { %469 = vrot.lane.b32.xlu0 %v466_v6, %s3198_s10 }
 0x7ea   :  { %545 = vrot.lane.b32.xlu0 %v466_v6, %s3197_s9 }
 0x854   :  { %v473_v8 = vpop.permute.xlu1 %472 }
 0x858   :  { %v470_v9 = vpop.permute.xlu0 %469 }
 0x859   :  { %v476_v10 = vsel %vm33_vm1, %v470_v9, %v473_v8 }
 0x85a   :  { %2714 = vmatmul.mubr.msk.bf16.vlgmr.msra.gmra.mrb[8].mxu1 %vm66_vm2, %v476_v10 }
 0x85b   :  { %2730 = vmatpush3.bf16.msra.mxu1 %v3297_v23  ;;  %2737 = vmatprep.mubr.msk.bf16.mxu1 %vm3196_vm0, %v3195_v0 }
 0x85c   :  { %v546_v12 = vpop.permute.xlu0 %545  ;;  %2731 = vmatprep.subr.bf16.mxu1 %v3195_v0 }
 0x85d   :  { %v549_v13 = vsel %vm33_vm1, %v2428_v11, %v546_v12 }
 0x85e   :  { %2726 = vmatmul.mubr.msk.bf16.vlgmr.msra.gmra.mrb[12].mxu0 %vm66_vm2, %v549_v13 }
 0x85f   :  { %2732 = vmatpush3.bf16.msra.mxu1 %v3303_v24  ;;  %2742 = vmatpush3.bf16.msra.mxu0 %v3238_v1 }
 0x860   :  { %2733 = vmatprep.subr.bf16.mxu1 %v3195_v0  ;;  %2743 = vmatprep.subr.bf16.mxu0 %v3195_v0 }
 0x861   :  { %2749 = vmatprep.mubr.msk.bf16.mxu0 %vm3196_vm0, %v3195_v0 }
 0x863   :  { %2734 = vmatpush3.bf16.msra.mxu1 %v3310_v25  ;;  %2744 = vmatpush3.bf16.msra.mxu0 %v3249_v2 }
 0x864   :  { %2735 = vmatprep.subr.bf16.mxu1 %v3195_v0  ;;  %2745 = vmatprep.subr.bf16.mxu0 %v3195_v0 }
 0x867   :  { %2736 = vmatpush3.bf16.msra.mxu1 %v3318_v27  ;;  %2746 = vmatpush3.bf16.msra.mxu0 %v3255_v3 }
 0x868   :  { %2747 = vmatprep.subr.bf16.mxu0 %v3195_v0  ;;  %2753 = vmatprep.subr.bf16.mxu1 %v3195_v0 }
 0x86b   :  { %2748 = vmatpush3.bf16.msra.mxu0 %v3262_v4 }
 0x86c   :  { %2765 = vmatprep.subr.bf16.mxu0 %v3195_v0 }
 0x92d   :  { %v513_v14 = vpop.f32.mrb[8].mxu1 }
 0x92e   :  { %v514_v15 = vadd.f32 %v3355_v36, %v513_v14  ;;  %v2715_v16 = vpop.f32.mrb[9].mxu1 }
 0x92f   :  { %v516_v17 = vpop.f32.mrb[10].mxu1 }
 0x930   :  { %3043 = vtanh.f32 %v514_v15  ;;  %v2716_v18 = vpop.f32.mrb[11].mxu1  ;;  %v2427_v30 = vmul.f32 -1.442695, %v514_v15 }
 0x931   :  { %v586_v19 = vpop.f32.mrb[12].mxu0 }
 0x932   :  { %v587_v20 = vadd.f32 %v3286_v7, %v586_v19  ;;  %v2727_v21 = vpop.f32.mrb[13].mxu0 }
 0x933   :  { %v589_v22 = vpop.f32.mrb[14].mxu0 }
 0x934   :  { %3045 = vtanh.f32 %v587_v20  ;;  %v2728_v26 = vpop.f32.mrb[15].mxu0  ;;  %v2430_v31 = vmul.f32 -1.442695, %v587_v20 }
 0x935   :  { %3047 = vpow2.f32 %v2427_v30 }
 0x936   :  { %3049 = vpow2.f32 %v2430_v31 }
 0x93a   :  { %v3044_v28 = vpop.eup %3043 }
 0x93b   :  { %528 = vrot.lane.b32.xlu1 %v3044_v28, %s3197_s9 }
 0x93e   :  { %v3046_v29 = vpop.eup %3045 }
 0x93f   :  { %601 = vrot.lane.b32.xlu0 %v3046_v29, %s3197_s9  ;;  %v3048_v32 = vpop.eup %3047 }
 0x940   :  { %v522_v33 = vadd.f32 1.0, %v3048_v32  ;;  %v3050_v34 = vpop.eup %3049 }
 0x941   :  { %v595_v35 = vadd.f32 1.0, %v3050_v34 }
 0x942   :  { %3051 = vrcp.f32 %v522_v33 }
 0x943   :  { %3053 = vrcp.f32 %v595_v35 }
 0x94c   :  { %v3052_v37 = vpop.eup %3051 }
 0x94d   :  { %v3054_v40 = vpop.eup %3053  ;;  %v526_v43 = vmul.f32 %v3052_v37, %v3409_v54 }
 0x94e   :  { %v599_v46 = vmul.f32 %v3054_v40, %v3413_v57 }
 0x9ad   :  { %v529_v38 = vpop.permute.xlu1 %528 }
 0x9ae   :  { %v531_v39 = vmul.f32 %v3052_v37, %v529_v38 }
 0x9b0   :  { %533 = vrot.lane.b32.xlu1 %v531_v39, %s3198_s10 }
 0x9b1   :  { %v602_v41 = vpop.permute.xlu0 %601 }
 0x9b2   :  { %v604_v42 = vmul.f32 %v3054_v40, %v602_v41 }
 0x9b4   :  { %606 = vrot.lane.b32.xlu0 %v604_v42, %s3198_s10 }
 0xa22   :  { %v534_v44 = vpop.permute.xlu1 %533 }
 0xa23   :  { %v3455_v45 = vadd.f32 %v534_v44, %v526_v43 }
 0xa25   :  { %3055 = vtanh.f32 %v3455_v45 }
 0xa26   :  { %v607_v47 = vpop.permute.xlu0 %606 }
 0xa27   :  { %v3459_v48 = vadd.f32 %v607_v47, %v599_v46  ;;  %v2438_v47 = vld [vmem:[%s3967_s0 + $0x14] sm:$0xf] }
 0xa29   :  { %3057 = vtanh.f32 %v3459_v48 }
 0xa2f   :  { %v3056_v49 = vpop.eup %3055 }
 0xa30   :  { %539 = vrot.lane.b32.xlu1 %v3056_v49, %s3197_s9 }
 0xa33   :  { %v3058_v50 = vpop.eup %3057 }
 0xa34   :  { %612 = vrot.lane.b32.xlu0 %v3058_v50, %s3197_s9 }
 0xaa2   :  { %v540_v51 = vpop.permute.xlu1 %539 }
 0xaa3   :  { %v542_v52 = vmul.f32 %v3052_v37, %v540_v51 }
 0xaa5   :  { %v617_v53 = vpack.c.bf16 %v542_v52, %v542_v52 }
 0xaa6   :  { %v613_v54 = vpop.permute.xlu0 %612 }
 0xaa7   :  { %v615_v55 = vmul.f32 %v3054_v40, %v613_v54  ;;  %622 = vrot.lane.b32.xlu0 %v617_v53, %s3197_s9 }
 0xaa9   :  { %v616_v56 = vpack.c.bf16 %v615_v55, %v615_v55 }
 0xaab   :  { %619 = vrot.lane.b32.xlu1 %v616_v56, %s3198_s10 }
 0xaaf   :  { %695 = vrot.lane.b32.xlu1 %v616_v56, %s3197_s9 }
 0xb19   :  { %v623_v57 = vpop.permute.xlu0 %622 }
 0xb1d   :  { %v620_v58 = vpop.permute.xlu1 %619 }
 0xb1e   :  { %v626_v59 = vsel %vm33_vm1, %v620_v58, %v623_v57 }
 0xb1f   :  { %2738 = vmatmul.mubr.msk.bf16.vlgmr.msra.gmra.mrb[12].mxu1 %vm66_vm2, %v626_v59 }
 0xb20   :  { %2754 = vmatpush3.bf16.msra.mxu1 %v3297_v23  ;;  %2761 = vmatprep.mubr.msk.bf16.mxu1 %vm3196_vm0, %v3195_v0 }
 0xb21   :  { %v696_v61 = vpop.permute.xlu1 %695  ;;  %2755 = vmatprep.subr.bf16.mxu1 %v3195_v0 }
 0xb22   :  { %v699_v62 = vsel %vm33_vm1, %v2433_v60, %v696_v61 }
 0xb23   :  { %2750 = vmatmul.mubr.msk.bf16.vlgmr.msra.gmra.mrb[16].mxu0 %vm66_vm2, %v699_v62 }
 0xb24   :  { %2756 = vmatpush3.bf16.msra.mxu1 %v3303_v24  ;;  %2766 = vmatpush3.bf16.msra.mxu0 %v3238_v1 }
 0xb25   :  { %2757 = vmatprep.subr.bf16.mxu1 %v3195_v0  ;;  %2767 = vmatprep.subr.bf16.mxu0 %v3195_v0 }
 0xb26   :  { %2773 = vmatprep.mubr.msk.bf16.mxu0 %vm3196_vm0, %v3195_v0 }
 0xb28   :  { %2758 = vmatpush3.bf16.msra.mxu1 %v3310_v25  ;;  %2768 = vmatpush3.bf16.msra.mxu0 %v3249_v2 }
 0xb29   :  { %2759 = vmatprep.subr.bf16.mxu1 %v3195_v0  ;;  %2769 = vmatprep.subr.bf16.mxu0 %v3195_v0 }
 0xb2c   :  { %2760 = vmatpush3.bf16.msra.mxu1 %v3318_v27  ;;  %2770 = vmatpush3.bf16.msra.mxu0 %v3255_v3 }
 0xb2d   :  { %2771 = vmatprep.subr.bf16.mxu0 %v3195_v0  ;;  %2777 = vmatprep.subr.bf16.mxu1 %v3195_v0 }
 0xb30   :  { %2772 = vmatpush3.bf16.msra.mxu0 %v3262_v4 }
 0xb31   :  { %2789 = vmatprep.subr.bf16.mxu0 %v3195_v0 }
 0xbf2   :  { %v663_v1 = vpop.f32.mrb[12].mxu1 }
 0xbf3   :  { %v664_v63 = vadd.f32 %v3355_v36, %v663_v1  ;;  %v2739_v2 = vpop.f32.mrb[13].mxu1 }
 0xbf4   :  { %v666_v5 = vpop.f32.mrb[14].mxu1 }
 0xbf5   :  { %3059 = vtanh.f32 %v664_v63  ;;  %v2740_v6 = vpop.f32.mrb[15].mxu1  ;;  %v2432_v13 = vmul.f32 -1.442695, %v664_v63 }
 0xbf6   :  { %v736_v8 = vpop.f32.mrb[16].mxu0 }
 0xbf7   :  { %v737_v9 = vadd.f32 %v3286_v7, %v736_v8  ;;  %v2751_v10 = vpop.f32.mrb[17].mxu0 }
 0xbf8   :  { %v739_v3 = vpop.f32.mrb[18].mxu0 }
 0xbf9   :  { %3061 = vtanh.f32 %v737_v9  ;;  %v2752_v11 = vpop.f32.mrb[19].mxu0  ;;  %v2435_v14 = vmul.f32 -1.442695, %v737_v9 }
 0xbfa   :  { %3063 = vpow2.f32 %v2432_v13 }
 0xbfb   :  { %3065 = vpow2.f32 %v2435_v14  ;;  %v3549_v14 = vld [vmem:[%s3966_s2 + $0x40] sm:$0xff]  }
 0xbff   :  { %v3060_v12 = vpop.eup %3059 }
 0xc00   :  { %678 = vrot.lane.b32.xlu0 %v3060_v12, %s3197_s9 }
 0xc03   :  { %v3062_v4 = vpop.eup %3061 }
 0xc04   :  { %751 = vrot.lane.b32.xlu1 %v3062_v4, %s3197_s9  ;;  %v3064_v15 = vpop.eup %3063 }
 0xc05   :  { %v672_v16 = vadd.f32 1.0, %v3064_v15  ;;  %v3066_v17 = vpop.eup %3065  ;;  %v3556_v15 = vld [vmem:[%s3966_s2 + $0x48] sm:$0xff]  }
 0xc06   :  { %v745_v18 = vadd.f32 1.0, %v3066_v17  ;;  %v3565_v17 = vld [vmem:[%s3966_s2 + $0x50] sm:$0xff]  }
 0xc07   :  { %3067 = vrcp.f32 %v672_v16 }
 0xc08   :  { %3069 = vrcp.f32 %v745_v18  ;;  %v3572_v18 = vld [vmem:[%s3966_s2 + $0x58] sm:$0xff]  }
 0xc11   :  { %v3068_v19 = vpop.eup %3067 }
 0xc12   :  { %v3070_v22 = vpop.eup %3069  ;;  %v676_v29 = vmul.f32 %v3068_v19, %v3455_v45 }
 0xc13   :  { %v749_v32 = vmul.f32 %v3070_v22, %v3459_v48 }
 0xc72   :  { %v679_v20 = vpop.permute.xlu0 %678 }
 0xc73   :  { %v681_v21 = vmul.f32 %v3068_v19, %v679_v20 }
 0xc75   :  { %683 = vrot.lane.b32.xlu0 %v681_v21, %s3198_s10 }
 0xc76   :  { %v752_v26 = vpop.permute.xlu1 %751 }
 0xc77   :  { %v754_v28 = vmul.f32 %v3070_v22, %v752_v26 }
 0xc79   :  { %756 = vrot.lane.b32.xlu1 %v754_v28, %s3198_s10 }
 0xce7   :  { %v684_v30 = vpop.permute.xlu0 %683 }
 0xce8   :  { %v3501_v31 = vadd.f32 %v684_v30, %v676_v29 }
 0xcea   :  { %3071 = vtanh.f32 %v3501_v31 }
 0xceb   :  { %v757_v33 = vpop.permute.xlu1 %756 }
 0xcec   :  { %v3505_v34 = vadd.f32 %v757_v33, %v749_v32  ;;  %v996_v32 = vld [vmem:[%s3969_s1] sm:$0xf] }
 0xcee   :  { %3073 = vtanh.f32 %v3505_v34 }
 0xcf4   :  { %v3072_v35 = vpop.eup %3071 }
 0xcf5   :  { %689 = vrot.lane.b32.xlu0 %v3072_v35, %s3197_s9 }
 0xcf8   :  { %v3074_v37 = vpop.eup %3073 }
 0xcf9   :  { %762 = vrot.lane.b32.xlu1 %v3074_v37, %s3197_s9 }
 0xd67   :  { %v690_v38 = vpop.permute.xlu0 %689 }
 0xd68   :  { %v692_v39 = vmul.f32 %v3068_v19, %v690_v38 }
 0xd6a   :  { %v767_v40 = vpack.c.bf16 %v692_v39, %v692_v39 }
 0xd6b   :  { %v763_v41 = vpop.permute.xlu1 %762 }
 0xd6c   :  { %v765_v42 = vmul.f32 %v3070_v22, %v763_v41  ;;  %772 = vrot.lane.b32.xlu1 %v767_v40, %s3197_s9  ;;  %v3594_v40 = vld [vmem:[%s3968_s3 + $0x2] ss:$0 sm:$0xff] }
 0xd6e   :  { %v766_v43 = vpack.c.bf16 %v765_v42, %v765_v42 }
 0xd70   :  { %769 = vrot.lane.b32.xlu0 %v766_v43, %s3198_s10 }
 0xd74   :  { %845 = vrot.lane.b32.xlu0 %v766_v43, %s3197_s9 }
 0xdde   :  { %v773_v44 = vpop.permute.xlu1 %772 }
 0xde2   :  { %v770_v45 = vpop.permute.xlu0 %769 }
 0xde3   :  { %v776_v46 = vsel %vm33_vm1, %v770_v45, %v773_v44 }
 0xde4   :  { %2762 = vmatmul.mubr.msk.bf16.vlgmr.msra.gmra.mrb[16].mxu1 %vm66_vm2, %v776_v46 }
 0xde5   :  { %2778 = vmatpush3.bf16.msra.mxu1 %v3297_v23  ;;  %2785 = vmatprep.mubr.msk.bf16.mxu1 %vm3196_vm0, %v3195_v0 }
 0xde6   :  { %v846_v48 = vpop.permute.xlu0 %845  ;;  %2779 = vmatprep.subr.bf16.mxu1 %v3195_v0 }
 0xde7   :  { %v849_v49 = vsel %vm33_vm1, %v2438_v47, %v846_v48 }
 0xde8   :  { %2774 = vmatmul.mubr.msk.bf16.vlgmr.msra.gmra.mrb[20].mxu0 %vm66_vm2, %v849_v49 }
 0xde9   :  { %2780 = vmatpush3.bf16.msra.mxu1 %v3303_v24  ;;  %2797 = vmatprep.mubr.msk.bf16.mxu0 %vm3196_vm0, %v3195_v0 }
 0xdea   :  { %2781 = vmatprep.subr.bf16.mxu1 %v3195_v0  ;;  %2790 = vmatpush3.bf16.msra.mxu0 %v3549_v14 }
 0xdeb   :  { %2791 = vmatprep.subr.bf16.mxu0 %v3195_v0 }
 0xded   :  { %2782 = vmatpush3.bf16.msra.mxu1 %v3310_v25 }
 0xdee   :  { %2783 = vmatprep.subr.bf16.mxu1 %v3195_v0  ;;  %2792 = vmatpush3.bf16.msra.mxu0 %v3556_v15 }
 0xdef   :  { %2793 = vmatprep.subr.bf16.mxu0 %v3195_v0 }
 0xdf1   :  { %2784 = vmatpush3.bf16.msra.mxu1 %v3318_v27 }
 0xdf2   :  { %2801 = vmatprep.subr.bf16.mxu1 %v3195_v0  ;;  %2794 = vmatpush3.bf16.msra.mxu0 %v3565_v17 }
 0xdf3   :  { %2795 = vmatprep.subr.bf16.mxu0 %v3195_v0 }
 0xdf6   :  { %2796 = vmatpush3.bf16.msra.mxu0 %v3572_v18 }
 0xdf7   :  { %2813 = vmatprep.subr.bf16.mxu0 %v3195_v0 }
 0xeb7   :  { %v813_v23 = vpop.f32.mrb[16].mxu1 }
 0xeb8   :  { %v814_v50 = vadd.f32 %v3355_v36, %v813_v23  ;;  %v2763_v51 = vpop.f32.mrb[17].mxu1 }
 0xeb9   :  { %v816_v52 = vpop.f32.mrb[18].mxu1 }
 0xeba   :  { %3075 = vtanh.f32 %v814_v50  ;;  %v2764_v24 = vpop.f32.mrb[19].mxu1  ;;  %v2437_v58 = vmul.f32 -1.442695, %v814_v50 }
 0xebb   :  { %v886_v53 = vpop.f32.mrb[20].mxu0 }
 0xebc   :  { %v887_v54 = vadd.f32 %v3286_v7, %v886_v53  ;;  %v2775_v55 = vpop.f32.mrb[21].mxu0 }
 0xebd   :  { %v889_v56 = vpop.f32.mrb[22].mxu0 }
 0xebe   :  { %3077 = vtanh.f32 %v887_v54  ;;  %v2776_v25 = vpop.f32.mrb[23].mxu0  ;;  %v2440_v59 = vmul.f32 -1.442695, %v887_v54 }
 0xebf   :  { %3079 = vpow2.f32 %v2437_v58 }
 0xec0   :  { %3081 = vpow2.f32 %v2440_v59 }
 0xec4   :  { %v3076_v57 = vpop.eup %3075 }
 0xec5   :  { %828 = vrot.lane.b32.xlu1 %v3076_v57, %s3197_s9 }
 0xec8   :  { %v3078_v27 = vpop.eup %3077 }
 0xec9   :  { %901 = vrot.lane.b32.xlu0 %v3078_v27, %s3197_s9  ;;  %v3080_v60 = vpop.eup %3079 }
 0xeca   :  { %v822_v61 = vadd.f32 1.0, %v3080_v60  ;;  %v3082_v62 = vpop.eup %3081 }
 0xecb   :  { %v895_v1 = vadd.f32 1.0, %v3082_v62 }
 0xecc   :  { %3083 = vrcp.f32 %v822_v61 }
 0xecd   :  { %3085 = vrcp.f32 %v895_v1  ;;  %v3612_v1 = vld [vmem:[%s3966_s2 + $0x60] sm:$0xff]  }
 0xed6   :  { %v3084_v7 = vpop.eup %3083 }
 0xed7   :  { %v3086_v5 = vpop.eup %3085  ;;  %v826_v9 = vmul.f32 %v3084_v7, %v3501_v31 }
 0xed8   :  { %v899_v11 = vmul.f32 %v3086_v5, %v3505_v34 }
 0xf37   :  { %v829_v63 = vpop.permute.xlu1 %828 }
 0xf38   :  { %v831_v2 = vmul.f32 %v3084_v7, %v829_v63 }
 0xf3a   :  { %833 = vrot.lane.b32.xlu1 %v831_v2, %s3198_s10  ;;  %v3627_v2 = vld [vmem:[%s3966_s2 + $0x70] sm:$0xff]  }
 0xf3b   :  { %v902_v6 = vpop.permute.xlu0 %901 }
 0xf3c   :  { %v904_v8 = vmul.f32 %v3086_v5, %v902_v6 }
 0xf3e   :  { %906 = vrot.lane.b32.xlu0 %v904_v8, %s3198_s10 }
 0xfac   :  { %v834_v10 = vpop.permute.xlu1 %833 }
 0xfad   :  { %v3539_v3 = vadd.f32 %v834_v10, %v826_v9 }
 0xfaf   :  { %3087 = vtanh.f32 %v3539_v3 }
 0xfb0   :  { %v907_v12 = vpop.permute.xlu0 %906 }
 0xfb1   :  { %v3543_v4 = vadd.f32 %v907_v12, %v899_v11 }
 0xfb3   :  { %3089 = vtanh.f32 %v3543_v4 }
 0xfb9   :  { %v3088_v13 = vpop.eup %3087 }
 0xfba   :  { %839 = vrot.lane.b32.xlu1 %v3088_v13, %s3197_s9 }
 0xfbd   :  { %v3090_v16 = vpop.eup %3089 }
 0xfbe   :  { %912 = vrot.lane.b32.xlu0 %v3090_v16, %s3197_s9  ;;  %v2477_v16 = vld [vmem:[%s3969_s1 + $0x4] sm:$0xf] }
0x102c   :  { %v840_v19 = vpop.permute.xlu1 %839 }
0x102d   :  { %v842_v20 = vmul.f32 %v3084_v7, %v840_v19  ;;  %v3619_v7 = vld [vmem:[%s3966_s2 + $0x68] sm:$0xff]  }
0x102f   :  { %v917_v21 = vpack.c.bf16 %v842_v20, %v842_v20 }
0x1030   :  { %v913_v22 = vpop.permute.xlu0 %912 }
0x1031   :  { %v915_v26 = vmul.f32 %v3086_v5, %v913_v22  ;;  %922 = vrot.lane.b32.xlu0 %v917_v21, %s3197_s9  ;;  %v3635_v5 = vld [vmem:[%s3966_s2 + $0x78] sm:$0xff]   ;;  %v3664_v21 = vld [vmem:[%s3968_s3 + $0x3] ss:$0 sm:$0xff] }
0x1033   :  { %v916_v28 = vpack.c.bf16 %v915_v26, %v915_v26 }
0x1035   :  { %919 = vrot.lane.b32.xlu1 %v916_v28, %s3198_s10 }
0x1039   :  { %1006 = vrot.lane.b32.xlu1 %v916_v28, %s3197_s9 }
0x10a3   :  { %v923_v29 = vpop.permute.xlu0 %922 }
0x10a7   :  { %v920_v30 = vpop.permute.xlu1 %919 }
0x10a8   :  { %v926_v31 = vsel %vm33_vm1, %v920_v30, %v923_v29 }
0x10a9   :  { %2786 = vmatmul.mubr.msk.bf16.vlgmr.msra.gmra.mrb[20].mxu1 %vm66_vm2, %v926_v31 }
0x10aa   :  { %2809 = vmatprep.mubr.msk.bf16.mxu1 %vm3196_vm0, %v3195_v0  ;;  %2802 = vmatpush3.bf16.msra.mxu1 %v3612_v1 }
0x10ab   :  { %v1007_v33 = vpop.permute.xlu1 %1006  ;;  %2803 = vmatprep.subr.bf16.mxu1 %v3195_v0 }
0x10ac   :  { %v1010_v34 = vsel %vm33_vm1, %v996_v32, %v1007_v33 }
0x10ad   :  { %2798 = vmatmul.mubr.msk.bf16.vlgmr.msra.gmra.mrb[24].mxu0 %vm66_vm2, %v1010_v34 }
0x10ae   :  { %2817 = vmatprep.mubr.msk.bf16.mxu0 %vm3196_vm0, %v3195_v0  ;;  %2804 = vmatpush3.bf16.msra.mxu1 %v3619_v7 }
0x10af   :  { %2805 = vmatprep.subr.bf16.mxu1 %v3195_v0 }
0x10b2   :  { %2806 = vmatpush3.bf16.msra.mxu1 %v3627_v2 }
0x10b3   :  { %2807 = vmatprep.subr.bf16.mxu1 %v3195_v0 }
0x10b6   :  { %2808 = vmatpush3.bf16.msra.mxu1 %v3635_v5 }
0x10b7   :  { %2821 = vmatprep.subr.bf16.mxu1 %v3195_v0 }
0x117c   :  { %v963_v35 = vpop.f32.mrb[20].mxu1 }
0x117d   :  { %v964_v37 = vadd.f32 %v3355_v36, %v963_v35  ;;  %v2787_v38 = vpop.f32.mrb[21].mxu1 }
0x117e   :  { %v966_v39 = vpop.f32.mrb[22].mxu1 }
0x117f   :  { %3091 = vtanh.f32 %v964_v37  ;;  %v2788_v41 = vpop.f32.mrb[23].mxu1  ;;  %v2442_v48 = vmul.f32 -1.442695, %v964_v37 }
0x1180   :  { %v1076_v42 = vpop.f32.mrb[24].mxu0 }
0x1181   :  { %v1077_v43 = vadd.f32 %v3594_v40, %v1076_v42  ;;  %v2799_v44 = vpop.f32.mrb[25].mxu0 }
0x1182   :  { %v1079_v45 = vpop.f32.mrb[26].mxu0 }
0x1183   :  { %3093 = vtanh.f32 %v1077_v43  ;;  %v2800_v46 = vpop.f32.mrb[27].mxu0  ;;  %v2457_v49 = vmul.f32 -1.442695, %v1077_v43 }
0x1184   :  { %3095 = vpow2.f32 %v2442_v48 }
0x1185   :  { %3097 = vpow2.f32 %v2457_v49 }
0x1189   :  { %v3092_v47 = vpop.eup %3091 }
0x118a   :  { %978 = vrot.lane.b32.xlu0 %v3092_v47, %s3197_s9 }
0x118d   :  { %v3094_v36 = vpop.eup %3093 }
0x118e   :  { %1091 = vrot.lane.b32.xlu1 %v3094_v36, %s3197_s9  ;;  %v3096_v23 = vpop.eup %3095 }
0x118f   :  { %v972_v50 = vadd.f32 1.0, %v3096_v23  ;;  %v3098_v51 = vpop.eup %3097 }
0x1190   :  { %v1085_v52 = vadd.f32 1.0, %v3098_v51 }
0x1191   :  { %3099 = vrcp.f32 %v972_v50 }
0x1192   :  { %3101 = vrcp.f32 %v1085_v52 }
0x119b   :  { %v3100_v24 = vpop.eup %3099 }
0x119c   :  { %v3102_v55 = vpop.eup %3101  ;;  %v976_v57 = vmul.f32 %v3100_v24, %v3539_v3 }
0x119d   :  { %v1089_v59 = vmul.f32 %v3102_v55, %v3543_v4 }
0x11fc   :  { %v979_v53 = vpop.permute.xlu0 %978 }
0x11fd   :  { %v981_v54 = vmul.f32 %v3100_v24, %v979_v53 }
0x11ff   :  { %983 = vrot.lane.b32.xlu0 %v981_v54, %s3198_s10 }
0x1200   :  { %v1092_v56 = vpop.permute.xlu1 %1091 }
0x1201   :  { %v1094_v25 = vmul.f32 %v3102_v55, %v1092_v56  ;;  %v3684_v56 = vld [vmem:[%s3970_s4] sm:$0xff]  }
0x1202   :  { %2814 = vmatpush3.bf16.msra.mxu0 %v3684_v56 }
0x1203   :  { %1096 = vrot.lane.b32.xlu1 %v1094_v25, %s3198_s10  ;;  %v3690_v25 = vld [vmem:[%s3970_s4 + $0x8] sm:$0xff]   ;;  %2815 = vmatprep.subr.bf16.mxu0 %v3195_v0 }
0x1206   :  { %2816 = vmatpush3.bf16.msra.mxu0 %v3690_v25 }
0x1207   :  { %2833 = vmatprep.subr.bf16.mxu0 %v3195_v0 }
0x1271   :  { %v984_v27 = vpop.permute.xlu0 %983 }
0x1272   :  { %v3602_v58 = vadd.f32 %v984_v27, %v976_v57 }
0x1274   :  { %3103 = vtanh.f32 %v3602_v58 }
0x1275   :  { %v1097_v60 = vpop.permute.xlu1 %1096 }
0x1276   :  { %v3606_v61 = vadd.f32 %v1097_v60, %v1089_v59 }
0x1278   :  { %3105 = vtanh.f32 %v3606_v61 }
0x127e   :  { %v3104_v62 = vpop.eup %3103 }
0x127f   :  { %989 = vrot.lane.b32.xlu0 %v3104_v62, %s3197_s9 }
0x1282   :  { %v3106_v63 = vpop.eup %3105 }
0x1283   :  { %1102 = vrot.lane.b32.xlu1 %v3106_v63, %s3197_s9 }
0x12f1   :  { %v990_v6 = vpop.permute.xlu0 %989 }
0x12f2   :  { %v992_v8 = vmul.f32 %v3100_v24, %v990_v6 }
0x12f4   :  { %v1116_v9 = vpack.c.bf16 %v992_v8, %v992_v8 }
0x12f5   :  { %v1103_v10 = vpop.permute.xlu1 %1102 }
0x12f6   :  { %v1105_v3 = vmul.f32 %v3102_v55, %v1103_v10  ;;  %1121 = vrot.lane.b32.xlu1 %v1116_v9, %s3197_s9  ;;  %v2483_v10 = vld [vmem:[%s3969_s1 + $0x8] sm:$0xf] }
0x12f8   :  { %v1115_v11 = vpack.c.bf16 %v1105_v3, %v1105_v3 }
0x12fa   :  { %1118 = vrot.lane.b32.xlu0 %v1115_v11, %s3198_s10 }
0x12fe   :  { %1313 = vrot.lane.b32.xlu0 %v1115_v11, %s3197_s9 }
0x1368   :  { %v1122_v12 = vpop.permute.xlu1 %1121 }
0x136c   :  { %v1119_v4 = vpop.permute.xlu0 %1118 }
0x136d   :  { %v1125_v13 = vsel %vm33_vm1, %v1119_v4, %v1122_v12 }
0x136e   :  { %2810 = vmatmul.mubr.msk.bf16.vlgmr.msra.gmra.mrb[24].mxu1 %vm66_vm2, %v1125_v13 }
0x136f   :  { %2822 = vmatpush3.bf16.msra.mxu1 %v3549_v14  ;;  %2829 = vmatprep.mubr.msk.bf16.mxu1 %vm3196_vm0, %v3195_v0 }
0x1370   :  { %2823 = vmatprep.subr.bf16.mxu1 %v3195_v0  ;;  %v1314_v19 = vpop.permute.xlu0 %1313 }
0x1371   :  { %v1317_v20 = vsel %vm33_vm1, %v2477_v16, %v1314_v19 }
0x1373   :  { %2824 = vmatpush3.bf16.msra.mxu1 %v3556_v15 }
0x1374   :  { %2825 = vmatprep.subr.bf16.mxu1 %v3195_v0 }
0x1377   :  { %2826 = vmatpush3.bf16.msra.mxu1 %v3565_v17 }
0x1378   :  { %2827 = vmatprep.subr.bf16.mxu1 %v3195_v0 }
0x137b   :  { %2828 = vmatpush3.bf16.msra.mxu1 %v3572_v18 }
0x137c   :  { %2845 = vmatprep.subr.bf16.mxu1 %v3195_v0 }
0x137e   :  { %2830 = vmatmul.mubr.msk.bf16.vlgmr.msra.gmra.mrb[28].mxu1 %vm66_vm2, %v1317_v20 }
0x137f   :  { %2849 = vmatprep.mubr.msk.bf16.mxu1 %vm3196_vm0, %v3195_v0  ;;  %2846 = vmatpush3.bf16.msra.mxu1 %v3684_v56 }
0x1380   :  { %2847 = vmatprep.subr.bf16.mxu1 %v3195_v0 }
0x1383   :  { %2848 = vmatpush3.bf16.msra.mxu1 %v3690_v25 }
0x1384   :  { %2865 = vmatprep.subr.bf16.mxu1 %v3195_v0 }
0x1441   :  { %v1191_v22 = vpop.f32.mrb[24].mxu1 }
0x1442   :  { %v1192_v26 = vadd.f32 %v3664_v21, %v1191_v22  ;;  %v2811_v28 = vpop.f32.mrb[25].mxu1 }
0x1443   :  { %v1194_v29 = vpop.f32.mrb[26].mxu1 }
0x1444   :  { %3107 = vtanh.f32 %v1192_v26  ;;  %v2812_v30 = vpop.f32.mrb[27].mxu1  ;;  %v2472_v39 = vmul.f32 -1.442695, %v1192_v26 }
0x144e   :  { %v3108_v31 = vpop.eup %3107 }
0x144f   :  { %1206 = vrot.lane.b32.xlu1 %v3108_v31, %s3197_s9 }
0x1451   :  { %v1354_v32 = vpop.f32.mrb[28].mxu1 }
0x1452   :  { %v1355_v33 = vadd.f32 %v3594_v40, %v1354_v32  ;;  %v2831_v34 = vpop.f32.mrb[29].mxu1 }
0x1453   :  { %v1357_v35 = vpop.f32.mrb[30].mxu1 }
0x1454   :  { %3109 = vtanh.f32 %v1355_v33  ;;  %v2832_v37 = vpop.f32.mrb[31].mxu1  ;;  %v2479_v42 = vmul.f32 -1.442695, %v1355_v33 }
0x1455   :  { %3111 = vpow2.f32 %v2472_v39 }
0x1456   :  { %3113 = vpow2.f32 %v2479_v42 }
0x145e   :  { %v3110_v38 = vpop.eup %3109 }
0x145f   :  { %1369 = vrot.lane.b32.xlu0 %v3110_v38, %s3197_s9  ;;  %v3112_v41 = vpop.eup %3111 }
0x1460   :  { %v1200_v43 = vadd.f32 1.0, %v3112_v41  ;;  %v3114_v44 = vpop.eup %3113 }
0x1461   :  { %v1363_v36 = vadd.f32 1.0, %v3114_v44 }
0x1462   :  { %3115 = vrcp.f32 %v1200_v43 }
0x1463   :  { %3117 = vrcp.f32 %v1363_v36 }
0x146c   :  { %v3116_v45 = vpop.eup %3115 }
0x146d   :  { %v3118_v48 = vpop.eup %3117  ;;  %v1204_v50 = vmul.f32 %v3116_v45, %v3602_v58 }
0x146e   :  { %v1367_v53 = vmul.f32 %v3118_v48, %v3606_v61 }
0x14c1   :  { %v1207_v46 = vpop.permute.xlu1 %1206 }
0x14c2   :  { %v1209_v47 = vmul.f32 %v3116_v45, %v1207_v46 }
0x14c4   :  { %1211 = vrot.lane.b32.xlu1 %v1209_v47, %s3198_s10 }
0x14d1   :  { %v1370_v49 = vpop.permute.xlu0 %1369 }
0x14d2   :  { %v1372_v23 = vmul.f32 %v3118_v48, %v1370_v49 }
0x14d4   :  { %1374 = vrot.lane.b32.xlu0 %v1372_v23, %s3198_s10 }
0x1536   :  { %v1212_v51 = vpop.permute.xlu1 %1211 }
0x1537   :  { %v3673_v52 = vadd.f32 %v1212_v51, %v1204_v50 }
0x1539   :  { %3119 = vtanh.f32 %v3673_v52 }
0x1543   :  { %v3120_v24 = vpop.eup %3119 }
0x1544   :  { %1217 = vrot.lane.b32.xlu1 %v3120_v24, %s3197_s9 }
0x1546   :  { %v1375_v54 = vpop.permute.xlu0 %1374 }
0x1547   :  { %v3678_v55 = vadd.f32 %v1375_v54, %v1367_v53 }
0x1549   :  { %3121 = vtanh.f32 %v3678_v55 }
0x1553   :  { %v3122_v57 = vpop.eup %3121 }
0x1554   :  { %1380 = vrot.lane.b32.xlu0 %v3122_v57, %s3197_s9 }
0x15b6   :  { %v1218_v27 = vpop.permute.xlu1 %1217 }
0x15b7   :  { %v1220_v58 = vmul.f32 %v3116_v45, %v1218_v27 }
0x15b9   :  { %v1221_v59 = vpack.c.bf16 %v1220_v58, %v1220_v58 }
0x15bb   :  { %1233 = vrot.lane.b32.xlu1 %v1221_v59, %s3198_s10 }
0x15bf   :  { %1388 = vrot.lane.b32.xlu1 %v1221_v59, %s3197_s9 }
0x15c6   :  { %v1381_v60 = vpop.permute.xlu0 %1380 }
0x15c7   :  { %v1383_v61 = vmul.f32 %v3118_v48, %v1381_v60 }
0x15c9   :  { %v1384_v62 = vpack.c.bf16 %v1383_v61, %v1383_v61 }
0x15cb   :  { %1386 = vrot.lane.b32.xlu0 %v1384_v62, %s3198_s10 }
0x15cf   :  { %1529 = vrot.lane.b32.xlu0 %v1384_v62, %s3197_s9 }
0x162d   :  { %v1234_v63 = vpop.permute.xlu1 %1233 }
0x162e   :  { %2818 = vmatmul.mubr.msk.bf16.vlgmr.msra.gmra.mrb[28].mxu0 %vm33_vm1, %v1234_v63 }
0x162f   :  { %2834 = vmatpush3.bf16.msra.mxu0 %v3612_v1  ;;  %2841 = vmatprep.mubr.msk.bf16.mxu0 %vm3196_vm0, %v3195_v0 }
0x1630   :  { %2835 = vmatprep.subr.bf16.mxu0 %v3195_v0 }
0x1631   :  { %v1389_v6 = vpop.permute.xlu1 %1388 }
0x1633   :  { %2836 = vmatpush3.bf16.msra.mxu0 %v3619_v7 }
0x1634   :  { %2837 = vmatprep.subr.bf16.mxu0 %v3195_v0 }
0x1637   :  { %2838 = vmatpush3.bf16.msra.mxu0 %v3627_v2 }
0x1638   :  { %2839 = vmatprep.subr.bf16.mxu0 %v3195_v0 }
0x163b   :  { %2840 = vmatpush3.bf16.msra.mxu0 %v3635_v5 }
0x163c   :  { %2853 = vmatprep.subr.bf16.mxu0 %v3195_v0 }
0x163d   :  { %v1387_v8 = vpop.permute.xlu0 %1386 }
0x163e   :  { %v1392_v9 = vsel %vm33_vm1, %v1387_v8, %v1389_v6  ;;  %v2489_v8 = vld [vmem:[%s3969_s1 + $0xc] sm:$0xf] }
0x163f   :  { %2842 = vmatmul.mubr.msk.bf16.vlgmr.msra.gmra.mrb[32].mxu0 %vm66_vm2, %v1392_v9 }
0x1640   :  { %2854 = vmatpush3.bf16.msra.mxu0 %v3549_v14  ;;  %2861 = vmatprep.mubr.msk.bf16.mxu0 %vm3196_vm0, %v3195_v0 }
0x1641   :  { %2855 = vmatprep.subr.bf16.mxu0 %v3195_v0  ;;  %v1530_v3 = vpop.permute.xlu0 %1529 }
0x1642   :  { %v1533_v11 = vsel %vm33_vm1, %v2483_v10, %v1530_v3 }
0x1644   :  { %2856 = vmatpush3.bf16.msra.mxu0 %v3556_v15 }
0x1645   :  { %2857 = vmatprep.subr.bf16.mxu0 %v3195_v0 }
0x1648   :  { %2858 = vmatpush3.bf16.msra.mxu0 %v3565_v17 }
0x1649   :  { %2859 = vmatprep.subr.bf16.mxu0 %v3195_v0 }
0x164c   :  { %2860 = vmatpush3.bf16.msra.mxu0 %v3572_v18 }
0x164d   :  { %2877 = vmatprep.subr.bf16.mxu0 %v3195_v0 }
0x164f   :  { %2862 = vmatmul.mubr.msk.bf16.vlgmr.msra.gmra.mrb[36].mxu0 %vm66_vm2, %v1533_v11 }
0x1650   :  { %2878 = vmatpush3.bf16.msra.mxu0 %v3684_v56  ;;  %2881 = vmatprep.mubr.msk.bf16.mxu0 %vm3196_vm0, %v3195_v0 }
0x1651   :  { %2879 = vmatprep.subr.bf16.mxu0 %v3195_v0 }
0x1654   :  { %2880 = vmatpush3.bf16.msra.mxu0 %v3690_v25 }
0x1655   :  { %2897 = vmatprep.subr.bf16.mxu0 %v3195_v0 }
0x1701   :  { %v3738_v12 = vpop.f32.mrb[28].mxu0 }
0x1702   :  { %v2819_v4 = vpop.f32.mrb[29].mxu0 }
0x1703   :  { %v1287_v13 = vpop.f32.mrb[30].mxu0 }
0x1704   :  { %v2820_v16 = vpop.f32.mrb[31].mxu0 }
0x1712   :  { %v1429_v19 = vpop.f32.mrb[32].mxu0 }
0x1713   :  { %v1430_v20 = vadd.f32 %v3664_v21, %v1429_v19  ;;  %v2843_v22 = vpop.f32.mrb[33].mxu0 }
0x1714   :  { %v1432_v26 = vpop.f32.mrb[34].mxu0 }
0x1715   :  { %3123 = vtanh.f32 %v1430_v20  ;;  %v2844_v28 = vpop.f32.mrb[35].mxu0  ;;  %v2481_v37 = vmul.f32 -1.442695, %v1430_v20 }
0x171f   :  { %v3124_v29 = vpop.eup %3123 }
0x1720   :  { %1444 = vrot.lane.b32.xlu1 %v3124_v29, %s3197_s9 }
0x1722   :  { %v1570_v30 = vpop.f32.mrb[36].mxu0 }
0x1723   :  { %v1571_v31 = vadd.f32 %v3594_v40, %v1570_v30  ;;  %v2863_v32 = vpop.f32.mrb[37].mxu0 }
0x1724   :  { %v1573_v33 = vpop.f32.mrb[38].mxu0 }
0x1725   :  { %3125 = vtanh.f32 %v1571_v31  ;;  %v2864_v34 = vpop.f32.mrb[39].mxu0  ;;  %v2485_v39 = vmul.f32 -1.442695, %v1571_v31 }
0x1726   :  { %3127 = vpow2.f32 %v2481_v37 }
0x1727   :  { %3129 = vpow2.f32 %v2485_v39 }
0x172f   :  { %v3126_v35 = vpop.eup %3125 }
0x1730   :  { %1585 = vrot.lane.b32.xlu0 %v3126_v35, %s3197_s9  ;;  %v3128_v38 = vpop.eup %3127 }
0x1731   :  { %v1438_v41 = vadd.f32 1.0, %v3128_v38  ;;  %v3130_v42 = vpop.eup %3129 }
0x1732   :  { %v1579_v46 = vadd.f32 1.0, %v3130_v42 }
0x1733   :  { %3131 = vrcp.f32 %v1438_v41 }
0x1734   :  { %3133 = vrcp.f32 %v1579_v46 }
0x173d   :  { %v3132_v43 = vpop.eup %3131 }
0x173e   :  { %v3134_v47 = vpop.eup %3133  ;;  %v1442_v49 = vmul.f32 %v3132_v43, %v3673_v52 }
0x173f   :  { %v1583_v24 = vmul.f32 %v3134_v47, %v3678_v55 }
0x1792   :  { %v1445_v44 = vpop.permute.xlu1 %1444 }
0x1793   :  { %v1447_v45 = vmul.f32 %v3132_v43, %v1445_v44 }
0x1795   :  { %1449 = vrot.lane.b32.xlu1 %v1447_v45, %s3198_s10 }
0x17a2   :  { %v1586_v36 = vpop.permute.xlu0 %1585 }
0x17a3   :  { %v1588_v48 = vmul.f32 %v3134_v47, %v1586_v36 }
0x17a5   :  { %1590 = vrot.lane.b32.xlu0 %v1588_v48, %s3198_s10 }
0x1807   :  { %v1450_v23 = vpop.permute.xlu1 %1449 }
0x1808   :  { %v3747_v50 = vadd.f32 %v1450_v23, %v1442_v49 }
0x180a   :  { %3135 = vtanh.f32 %v3747_v50 }
0x1814   :  { %v3136_v51 = vpop.eup %3135 }
0x1815   :  { %1455 = vrot.lane.b32.xlu1 %v3136_v51, %s3197_s9 }
0x1817   :  { %v1591_v53 = vpop.permute.xlu0 %1590 }
0x1818   :  { %v3752_v54 = vadd.f32 %v1591_v53, %v1583_v24 }
0x181a   :  { %3137 = vtanh.f32 %v3752_v54 }
0x1824   :  { %v3138_v57 = vpop.eup %3137 }
0x1825   :  { %1596 = vrot.lane.b32.xlu0 %v3138_v57, %s3197_s9 }
0x1887   :  { %v1456_v27 = vpop.permute.xlu1 %1455 }
0x1888   :  { %v1458_v52 = vmul.f32 %v3132_v43, %v1456_v27 }
0x188a   :  { %v1459_v58 = vpack.c.bf16 %v1458_v52, %v1458_v52 }
0x188c   :  { %1461 = vrot.lane.b32.xlu1 %v1459_v58, %s3198_s10 }
0x1890   :  { %1604 = vrot.lane.b32.xlu1 %v1459_v58, %s3197_s9 }
0x1897   :  { %v1597_v59 = vpop.permute.xlu0 %1596 }
0x1898   :  { %v1599_v60 = vmul.f32 %v3134_v47, %v1597_v59 }
0x189a   :  { %v1600_v61 = vpack.c.bf16 %v1599_v60, %v1599_v60 }
0x189c   :  { %1602 = vrot.lane.b32.xlu0 %v1600_v61, %s3198_s10 }
0x18a0   :  { %1745 = vrot.lane.b32.xlu0 %v1600_v61, %s3197_s9 }
0x18fe   :  { %v1462_v55 = vpop.permute.xlu1 %1461 }
0x18ff   :  { %2850 = vmatmul.mubr.msk.bf16.vlgmr.msra.gmra.mrb[32].mxu1 %vm33_vm1, %v1462_v55 }
0x1900   :  { %2866 = vmatpush3.bf16.msra.mxu1 %v3612_v1  ;;  %2873 = vmatprep.mubr.msk.bf16.mxu1 %vm3196_vm0, %v3195_v0 }
0x1901   :  { %2867 = vmatprep.subr.bf16.mxu1 %v3195_v0 }
0x1902   :  { %v1605_v62 = vpop.permute.xlu1 %1604 }
0x1904   :  { %2868 = vmatpush3.bf16.msra.mxu1 %v3619_v7 }
0x1905   :  { %2869 = vmatprep.subr.bf16.mxu1 %v3195_v0 }
0x1908   :  { %2870 = vmatpush3.bf16.msra.mxu1 %v3627_v2 }
0x1909   :  { %2871 = vmatprep.subr.bf16.mxu1 %v3195_v0 }
0x190c   :  { %2872 = vmatpush3.bf16.msra.mxu1 %v3635_v5 }
0x190d   :  { %2885 = vmatprep.subr.bf16.mxu1 %v3195_v0 }
0x190e   :  { %v1603_v63 = vpop.permute.xlu0 %1602 }
0x190f   :  { %v1608_v6 = vsel %vm33_vm1, %v1603_v63, %v1605_v62 }
0x1910   :  { %2874 = vmatmul.mubr.msk.bf16.vlgmr.msra.gmra.mrb[36].mxu1 %vm66_vm2, %v1608_v6  ;;  %v2495_v6 = vld [vmem:[%s3969_s1 + $0x10] sm:$0xf] }
0x1911   :  { %2886 = vmatpush3.bf16.msra.mxu1 %v3549_v14  ;;  %2893 = vmatprep.mubr.msk.bf16.mxu1 %vm3196_vm0, %v3195_v0 }
0x1912   :  { %2887 = vmatprep.subr.bf16.mxu1 %v3195_v0  ;;  %v1746_v9 = vpop.permute.xlu0 %1745 }
0x1913   :  { %v1749_v10 = vsel %vm33_vm1, %v2489_v8, %v1746_v9 }
0x1915   :  { %2888 = vmatpush3.bf16.msra.mxu1 %v3556_v15 }
0x1916   :  { %2889 = vmatprep.subr.bf16.mxu1 %v3195_v0 }
0x1919   :  { %2890 = vmatpush3.bf16.msra.mxu1 %v3565_v17 }
0x191a   :  { %2891 = vmatprep.subr.bf16.mxu1 %v3195_v0 }
0x191d   :  { %2892 = vmatpush3.bf16.msra.mxu1 %v3572_v18 }
0x191e   :  { %2909 = vmatprep.subr.bf16.mxu1 %v3195_v0 }
0x1920   :  { %2894 = vmatmul.mubr.msk.bf16.vlgmr.msra.gmra.mrb[40].mxu1 %vm66_vm2, %v1749_v10 }
0x1921   :  { %2910 = vmatpush3.bf16.msra.mxu1 %v3684_v56  ;;  %2913 = vmatprep.mubr.msk.bf16.mxu1 %vm3196_vm0, %v3195_v0 }
0x1922   :  { %2911 = vmatprep.subr.bf16.mxu1 %v3195_v0 }
0x1925   :  { %2912 = vmatpush3.bf16.msra.mxu1 %v3690_v25 }
0x1926   :  { %2929 = vmatprep.subr.bf16.mxu1 %v3195_v0 }
0x19d2   :  { %v3794_v3 = vpop.f32.mrb[32].mxu1 }
0x19d3   :  { %v2851_v11 = vpop.f32.mrb[33].mxu1 }
0x19d4   :  { %v1503_v4 = vpop.f32.mrb[34].mxu1 }
0x19d5   :  { %v2852_v13 = vpop.f32.mrb[35].mxu1 }
0x19e3   :  { %v1645_v16 = vpop.f32.mrb[36].mxu1 }
0x19e4   :  { %v1646_v19 = vadd.f32 %v3664_v21, %v1645_v16  ;;  %v2875_v20 = vpop.f32.mrb[37].mxu1 }
0x19e5   :  { %v1648_v22 = vpop.f32.mrb[38].mxu1 }
0x19e6   :  { %3139 = vtanh.f32 %v1646_v19  ;;  %v2876_v26 = vpop.f32.mrb[39].mxu1  ;;  %v2487_v35 = vmul.f32 -1.442695, %v1646_v19 }
0x19f0   :  { %v3140_v28 = vpop.eup %3139 }
0x19f1   :  { %1660 = vrot.lane.b32.xlu1 %v3140_v28, %s3197_s9 }
0x19f3   :  { %v1786_v29 = vpop.f32.mrb[40].mxu1 }
0x19f4   :  { %v1787_v30 = vadd.f32 %v3594_v40, %v1786_v29  ;;  %v2895_v31 = vpop.f32.mrb[41].mxu1 }
0x19f5   :  { %v1789_v32 = vpop.f32.mrb[42].mxu1 }
0x19f6   :  { %3141 = vtanh.f32 %v1787_v30  ;;  %v2896_v33 = vpop.f32.mrb[43].mxu1  ;;  %v2491_v38 = vmul.f32 -1.442695, %v1787_v30 }
0x19f7   :  { %3143 = vpow2.f32 %v2487_v35 }
0x19f8   :  { %3145 = vpow2.f32 %v2491_v38 }
0x1a00   :  { %v3142_v34 = vpop.eup %3141 }
0x1a01   :  { %1801 = vrot.lane.b32.xlu0 %v3142_v34, %s3197_s9  ;;  %v3144_v37 = vpop.eup %3143 }
0x1a02   :  { %v1654_v39 = vadd.f32 1.0, %v3144_v37  ;;  %v3146_v41 = vpop.eup %3145 }
0x1a03   :  { %v1795_v45 = vadd.f32 1.0, %v3146_v41 }
0x1a04   :  { %3147 = vrcp.f32 %v1654_v39 }
0x1a05   :  { %3149 = vrcp.f32 %v1795_v45 }
0x1a0e   :  { %v3148_v42 = vpop.eup %3147 }
0x1a0f   :  { %v3150_v46 = vpop.eup %3149  ;;  %v1658_v48 = vmul.f32 %v3148_v42, %v3747_v50 }
0x1a10   :  { %v1799_v24 = vmul.f32 %v3150_v46, %v3752_v54 }
0x1a63   :  { %v1661_v43 = vpop.permute.xlu1 %1660 }
0x1a64   :  { %v1663_v44 = vmul.f32 %v3148_v42, %v1661_v43 }
0x1a66   :  { %1665 = vrot.lane.b32.xlu1 %v1663_v44, %s3198_s10 }
0x1a73   :  { %v1802_v47 = vpop.permute.xlu0 %1801 }
0x1a74   :  { %v1804_v36 = vmul.f32 %v3150_v46, %v1802_v47 }
0x1a76   :  { %1806 = vrot.lane.b32.xlu0 %v1804_v36, %s3198_s10 }
0x1ad8   :  { %v1666_v49 = vpop.permute.xlu1 %1665 }
0x1ad9   :  { %v3803_v23 = vadd.f32 %v1666_v49, %v1658_v48 }
0x1adb   :  { %3151 = vtanh.f32 %v3803_v23 }
0x1ae5   :  { %v3152_v51 = vpop.eup %3151 }
0x1ae6   :  { %1671 = vrot.lane.b32.xlu1 %v3152_v51, %s3197_s9 }
0x1ae8   :  { %v1807_v53 = vpop.permute.xlu0 %1806 }
0x1ae9   :  { %v3808_v57 = vadd.f32 %v1807_v53, %v1799_v24 }
0x1aeb   :  { %3153 = vtanh.f32 %v3808_v57 }
0x1af5   :  { %v3154_v27 = vpop.eup %3153 }
0x1af6   :  { %1812 = vrot.lane.b32.xlu0 %v3154_v27, %s3197_s9 }
0x1b58   :  { %v1672_v52 = vpop.permute.xlu1 %1671 }
0x1b59   :  { %v1674_v50 = vmul.f32 %v3148_v42, %v1672_v52 }
0x1b5b   :  { %v1675_v58 = vpack.c.bf16 %v1674_v50, %v1674_v50 }
0x1b5d   :  { %1677 = vrot.lane.b32.xlu1 %v1675_v58, %s3198_s10 }
0x1b61   :  { %1820 = vrot.lane.b32.xlu1 %v1675_v58, %s3197_s9 }
0x1b68   :  { %v1813_v59 = vpop.permute.xlu0 %1812 }
0x1b69   :  { %v1815_v60 = vmul.f32 %v3150_v46, %v1813_v59 }
0x1b6b   :  { %v1816_v61 = vpack.c.bf16 %v1815_v60, %v1815_v60 }
0x1b6d   :  { %1818 = vrot.lane.b32.xlu0 %v1816_v61, %s3198_s10 }
0x1b71   :  { %1961 = vrot.lane.b32.xlu0 %v1816_v61, %s3197_s9 }
0x1bcf   :  { %v1678_v54 = vpop.permute.xlu1 %1677 }
0x1bd0   :  { %2882 = vmatmul.mubr.msk.bf16.vlgmr.msra.gmra.mrb[40].mxu0 %vm33_vm1, %v1678_v54 }
0x1bd1   :  { %2898 = vmatpush3.bf16.msra.mxu0 %v3612_v1  ;;  %2905 = vmatprep.mubr.msk.bf16.mxu0 %vm3196_vm0, %v3195_v0 }
0x1bd2   :  { %2899 = vmatprep.subr.bf16.mxu0 %v3195_v0 }
0x1bd3   :  { %v1821_v55 = vpop.permute.xlu1 %1820 }
0x1bd5   :  { %2900 = vmatpush3.bf16.msra.mxu0 %v3619_v7 }
0x1bd6   :  { %2901 = vmatprep.subr.bf16.mxu0 %v3195_v0 }
0x1bd9   :  { %2902 = vmatpush3.bf16.msra.mxu0 %v3627_v2 }
0x1bda   :  { %2903 = vmatprep.subr.bf16.mxu0 %v3195_v0 }
0x1bdd   :  { %2904 = vmatpush3.bf16.msra.mxu0 %v3635_v5 }
0x1bde   :  { %2917 = vmatprep.subr.bf16.mxu0 %v3195_v0 }
0x1bdf   :  { %v1819_v62 = vpop.permute.xlu0 %1818 }
0x1be0   :  { %v1824_v63 = vsel %vm33_vm1, %v1819_v62, %v1821_v55 }
0x1be1   :  { %2906 = vmatmul.mubr.msk.bf16.vlgmr.msra.gmra.mrb[44].mxu0 %vm66_vm2, %v1824_v63 }
0x1be2   :  { %2918 = vmatpush3.bf16.msra.mxu0 %v3549_v14  ;;  %2925 = vmatprep.mubr.msk.bf16.mxu0 %vm3196_vm0, %v3195_v0 }
0x1be3   :  { %2919 = vmatprep.subr.bf16.mxu0 %v3195_v0  ;;  %v1962_v8 = vpop.permute.xlu0 %1961 }
0x1be4   :  { %v1965_v9 = vsel %vm33_vm1, %v2495_v6, %v1962_v8  ;;  %v2501_v6 = vld [vmem:[%s3969_s1 + $0x14] sm:$0xf] }
0x1be6   :  { %2920 = vmatpush3.bf16.msra.mxu0 %v3556_v15 }
0x1be7   :  { %2921 = vmatprep.subr.bf16.mxu0 %v3195_v0 }
0x1bea   :  { %2922 = vmatpush3.bf16.msra.mxu0 %v3565_v17 }
0x1beb   :  { %2923 = vmatprep.subr.bf16.mxu0 %v3195_v0 }
0x1bee   :  { %2924 = vmatpush3.bf16.msra.mxu0 %v3572_v18 }
0x1bef   :  { %2941 = vmatprep.subr.bf16.mxu0 %v3195_v0 }
0x1bf1   :  { %2926 = vmatmul.mubr.msk.bf16.vlgmr.msra.gmra.mrb[48].mxu0 %vm66_vm2, %v1965_v9 }
0x1bf2   :  { %2942 = vmatpush3.bf16.msra.mxu0 %v3684_v56  ;;  %2945 = vmatprep.mubr.msk.bf16.mxu0 %vm3196_vm0, %v3195_v0 }
0x1bf3   :  { %2943 = vmatprep.subr.bf16.mxu0 %v3195_v0 }
0x1bf6   :  { %2944 = vmatpush3.bf16.msra.mxu0 %v3690_v25 }
0x1bf7   :  { %2961 = vmatprep.subr.bf16.mxu0 %v3195_v0 }
0x1ca3   :  { %v3850_v10 = vpop.f32.mrb[40].mxu0 }
0x1ca4   :  { %v2883_v11 = vpop.f32.mrb[41].mxu0 }
0x1ca5   :  { %v1719_v4 = vpop.f32.mrb[42].mxu0 }
0x1ca6   :  { %v2884_v13 = vpop.f32.mrb[43].mxu0 }
0x1cb4   :  { %v1861_v16 = vpop.f32.mrb[44].mxu0 }
0x1cb5   :  { %v1862_v19 = vadd.f32 %v3664_v21, %v1861_v16  ;;  %v2907_v20 = vpop.f32.mrb[45].mxu0 }
0x1cb6   :  { %v1864_v22 = vpop.f32.mrb[46].mxu0 }
0x1cb7   :  { %3155 = vtanh.f32 %v1862_v19  ;;  %v2908_v26 = vpop.f32.mrb[47].mxu0  ;;  %v2493_v35 = vmul.f32 -1.442695, %v1862_v19 }
0x1cc1   :  { %v3156_v28 = vpop.eup %3155 }
0x1cc2   :  { %1876 = vrot.lane.b32.xlu1 %v3156_v28, %s3197_s9 }
0x1cc4   :  { %v2002_v29 = vpop.f32.mrb[48].mxu0 }
0x1cc5   :  { %v2003_v30 = vadd.f32 %v3594_v40, %v2002_v29  ;;  %v2927_v31 = vpop.f32.mrb[49].mxu0 }
0x1cc6   :  { %v2005_v32 = vpop.f32.mrb[50].mxu0 }
0x1cc7   :  { %3157 = vtanh.f32 %v2003_v30  ;;  %v2928_v33 = vpop.f32.mrb[51].mxu0  ;;  %v2497_v38 = vmul.f32 -1.442695, %v2003_v30 }
0x1cc8   :  { %3159 = vpow2.f32 %v2493_v35 }
0x1cc9   :  { %3161 = vpow2.f32 %v2497_v38 }
0x1cd1   :  { %v3158_v34 = vpop.eup %3157 }
0x1cd2   :  { %2017 = vrot.lane.b32.xlu0 %v3158_v34, %s3197_s9  ;;  %v3160_v37 = vpop.eup %3159 }
0x1cd3   :  { %v1870_v39 = vadd.f32 1.0, %v3160_v37  ;;  %v3162_v41 = vpop.eup %3161 }
0x1cd4   :  { %v2011_v45 = vadd.f32 1.0, %v3162_v41 }
0x1cd5   :  { %3163 = vrcp.f32 %v1870_v39 }
0x1cd6   :  { %3165 = vrcp.f32 %v2011_v45 }
0x1cdf   :  { %v3164_v42 = vpop.eup %3163 }
0x1ce0   :  { %v3166_v46 = vpop.eup %3165  ;;  %v1874_v48 = vmul.f32 %v3164_v42, %v3803_v23 }
0x1ce1   :  { %v2015_v53 = vmul.f32 %v3166_v46, %v3808_v57 }
0x1d34   :  { %v1877_v43 = vpop.permute.xlu1 %1876 }
0x1d35   :  { %v1879_v44 = vmul.f32 %v3164_v42, %v1877_v43 }
0x1d37   :  { %1881 = vrot.lane.b32.xlu1 %v1879_v44, %s3198_s10 }
0x1d44   :  { %v2018_v47 = vpop.permute.xlu0 %2017 }
0x1d45   :  { %v2020_v36 = vmul.f32 %v3166_v46, %v2018_v47 }
0x1d47   :  { %2022 = vrot.lane.b32.xlu0 %v2020_v36, %s3198_s10 }
0x1da9   :  { %v1882_v49 = vpop.permute.xlu1 %1881 }
0x1daa   :  { %v3859_v51 = vadd.f32 %v1882_v49, %v1874_v48 }
0x1dac   :  { %3167 = vtanh.f32 %v3859_v51 }
0x1db6   :  { %v3168_v24 = vpop.eup %3167 }
0x1db7   :  { %1887 = vrot.lane.b32.xlu1 %v3168_v24, %s3197_s9 }
0x1db9   :  { %v2023_v27 = vpop.permute.xlu0 %2022 }
0x1dba   :  { %v3864_v52 = vadd.f32 %v2023_v27, %v2015_v53 }
0x1dbc   :  { %3169 = vtanh.f32 %v3864_v52 }
0x1dc6   :  { %v3170_v50 = vpop.eup %3169 }
0x1dc7   :  { %2028 = vrot.lane.b32.xlu0 %v3170_v50, %s3197_s9 }
0x1e29   :  { %v1888_v58 = vpop.permute.xlu1 %1887 }
0x1e2a   :  { %v1890_v23 = vmul.f32 %v3164_v42, %v1888_v58 }
0x1e2c   :  { %v1891_v59 = vpack.c.bf16 %v1890_v23, %v1890_v23 }
0x1e2e   :  { %1893 = vrot.lane.b32.xlu1 %v1891_v59, %s3198_s10 }
0x1e32   :  { %2036 = vrot.lane.b32.xlu1 %v1891_v59, %s3197_s9 }
0x1e39   :  { %v2029_v60 = vpop.permute.xlu0 %2028 }
0x1e3a   :  { %v2031_v61 = vmul.f32 %v3166_v46, %v2029_v60 }
0x1e3c   :  { %v2032_v54 = vpack.c.bf16 %v2031_v61, %v2031_v61 }
0x1e3e   :  { %2034 = vrot.lane.b32.xlu0 %v2032_v54, %s3198_s10 }
0x1e42   :  { %2177 = vrot.lane.b32.xlu0 %v2032_v54, %s3197_s9 }
0x1ea0   :  { %v1894_v57 = vpop.permute.xlu1 %1893 }
0x1ea1   :  { %2914 = vmatmul.mubr.msk.bf16.vlgmr.msra.gmra.mrb[44].mxu1 %vm33_vm1, %v1894_v57 }
0x1ea2   :  { %2930 = vmatpush3.bf16.msra.mxu1 %v3612_v1  ;;  %2937 = vmatprep.mubr.msk.bf16.mxu1 %vm3196_vm0, %v3195_v0 }
0x1ea3   :  { %2931 = vmatprep.subr.bf16.mxu1 %v3195_v0 }
0x1ea4   :  { %v2037_v55 = vpop.permute.xlu1 %2036 }
0x1ea6   :  { %2932 = vmatpush3.bf16.msra.mxu1 %v3619_v7 }
0x1ea7   :  { %2933 = vmatprep.subr.bf16.mxu1 %v3195_v0 }
0x1eaa   :  { %2934 = vmatpush3.bf16.msra.mxu1 %v3627_v2 }
0x1eab   :  { %2935 = vmatprep.subr.bf16.mxu1 %v3195_v0 }
0x1eae   :  { %2936 = vmatpush3.bf16.msra.mxu1 %v3635_v5 }
0x1eaf   :  { %2949 = vmatprep.subr.bf16.mxu1 %v3195_v0 }
0x1eb0   :  { %v2035_v62 = vpop.permute.xlu0 %2034 }
0x1eb1   :  { %v2040_v63 = vsel %vm33_vm1, %v2035_v62, %v2037_v55 }
0x1eb2   :  { %2938 = vmatmul.mubr.msk.bf16.vlgmr.msra.gmra.mrb[48].mxu1 %vm66_vm2, %v2040_v63 }
0x1eb3   :  { %2950 = vmatpush3.bf16.msra.mxu1 %v3549_v14  ;;  %2957 = vmatprep.mubr.msk.bf16.mxu1 %vm3196_vm0, %v3195_v0 }
0x1eb4   :  { %2951 = vmatprep.subr.bf16.mxu1 %v3195_v0  ;;  %v2178_v8 = vpop.permute.xlu0 %2177 }
0x1eb5   :  { %v2181_v14 = vsel %vm33_vm1, %v2501_v6, %v2178_v8 }
0x1eb7   :  { %2952 = vmatpush3.bf16.msra.mxu1 %v3556_v15 }
0x1eb8   :  { %2953 = vmatprep.subr.bf16.mxu1 %v3195_v0 }
0x1ebb   :  { %2954 = vmatpush3.bf16.msra.mxu1 %v3565_v17 }
0x1ebc   :  { %2955 = vmatprep.subr.bf16.mxu1 %v3195_v0 }
0x1ebf   :  { %2956 = vmatpush3.bf16.msra.mxu1 %v3572_v18 }
0x1ec0   :  { %2973 = vmatprep.subr.bf16.mxu1 %v3195_v0 }
0x1ec2   :  { %2958 = vmatmul.mubr.msk.bf16.vlgmr.msra.gmra.mrb[52].mxu1 %vm66_vm2, %v2181_v14 }
0x1ec3   :  { %2974 = vmatpush3.bf16.msra.mxu1 %v3684_v56  ;;  %2977 = vmatprep.mubr.msk.bf16.mxu1 %vm3196_vm0, %v3195_v0 }
0x1ec4   :  { %2975 = vmatprep.subr.bf16.mxu1 %v3195_v0 }
0x1ec7   :  { %2976 = vmatpush3.bf16.msra.mxu1 %v3690_v25 }
0x1f74   :  { %v3905_v15 = vpop.f32.mrb[44].mxu1 }
0x1f75   :  { %v2915_v17 = vpop.f32.mrb[45].mxu1 }
0x1f76   :  { %v1935_v9 = vpop.f32.mrb[46].mxu1 }
0x1f77   :  { %v2916_v18 = vpop.f32.mrb[47].mxu1 }
0x1f85   :  { %v2077_v11 = vpop.f32.mrb[48].mxu1 }
0x1f86   :  { %v2078_v4 = vadd.f32 %v3664_v21, %v2077_v11  ;;  %v2939_v13 = vpop.f32.mrb[49].mxu1 }
0x1f87   :  { %v2080_v16 = vpop.f32.mrb[50].mxu1  ;;  %v2473_v13 = vld [vmem:[%s3971_s5] ss:$0 sm:$0xff] }
0x1f88   :  { %3171 = vtanh.f32 %v2078_v4  ;;  %v2940_v19 = vpop.f32.mrb[51].mxu1  ;;  %v2499_v30 = vmul.f32 -1.442695, %v2078_v4  ;;  %v1285_v16 = vadd.f32 %v2473_v13, %v3738_v12 }
0x1f89   :  { %v1717_v19 = vadd.f32 %v2473_v13, %v3850_v10 }
0x1f92   :  { %v3172_v56 = vpop.eup %3171 }
0x1f93   :  { %2092 = vrot.lane.b32.xlu1 %v3172_v56, %s3197_s9  ;;  %v1933_v56 = vadd.f32 %v2473_v13, %v3905_v15 }
0x1f95   :  { %v2218_v20 = vpop.f32.mrb[52].mxu1 }
0x1f96   :  { %v2219_v22 = vadd.f32 %v3594_v40, %v2218_v20  ;;  %v2959_v26 = vpop.f32.mrb[53].mxu1 }
0x1f97   :  { %v2221_v25 = vpop.f32.mrb[54].mxu1 }
0x1f98   :  { %3173 = vtanh.f32 %v2219_v22  ;;  %v2960_v28 = vpop.f32.mrb[55].mxu1  ;;  %v2503_v32 = vmul.f32 -1.442695, %v2219_v22  ;;  %v1501_v25 = vadd.f32 %v2473_v13, %v3794_v3 }
0x1f99   :  { %3175 = vpow2.f32 %v2499_v30 }
0x1f9a   :  { %3177 = vpow2.f32 %v2503_v32 }
0x1fa2   :  { %v3174_v29 = vpop.eup %3173 }
0x1fa3   :  { %2233 = vrot.lane.b32.xlu0 %v3174_v29, %s3197_s9  ;;  %v3176_v31 = vpop.eup %3175  ;;  %v993_v29 = vlaneseq }
0x1fa4   :  { %v2086_v33 = vadd.f32 1.0, %v3176_v31  ;;  %v3178_v34 = vpop.eup %3177 }
0x1fa5   :  { %v2227_v39 = vadd.f32 1.0, %v3178_v34  ;;  %v3944_v30 = vand.u32 127, %v993_v29 }
0x1fa6   :  { %3179 = vrcp.f32 %v2086_v33 }
0x1fa7   :  { %3181 = vrcp.f32 %v2227_v39  ;;  %vm1309_vm15 = vcmp.eq.s32.totalorder %v3944_v30, 0 }
0x1fb0   :  { %v3180_v35 = vpop.eup %3179 }
0x1fb1   :  { %v3182_v40 = vpop.eup %3181  ;;  %v2090_v43 = vmul.f32 %v3180_v35, %v3859_v51 }
0x1fb2   :  { %v2231_v47 = vmul.f32 %v3182_v40, %v3864_v52 }
0x2005   :  { %v2093_v37 = vpop.permute.xlu1 %2092 }
0x2006   :  { %v2095_v38 = vmul.f32 %v3180_v35, %v2093_v37 }
0x2008   :  { %2097 = vrot.lane.b32.xlu1 %v2095_v38, %s3198_s10 }
0x2015   :  { %v2234_v41 = vpop.permute.xlu0 %2233 }
0x2016   :  { %v2236_v42 = vmul.f32 %v3182_v40, %v2234_v41 }
0x2018   :  { %2238 = vrot.lane.b32.xlu0 %v2236_v42, %s3198_s10 }
0x207a   :  { %v2098_v44 = vpop.permute.xlu1 %2097 }
0x207b   :  { %v2100_v45 = vadd.f32 %v2098_v44, %v2090_v43 }
0x207d   :  { %3183 = vtanh.f32 %v2100_v45 }
0x2087   :  { %v3184_v46 = vpop.eup %3183 }
0x2088   :  { %2103 = vrot.lane.b32.xlu1 %v3184_v46, %s3197_s9 }
0x208a   :  { %v2239_v36 = vpop.permute.xlu0 %2238 }
0x208b   :  { %v2241_v48 = vadd.f32 %v2239_v36, %v2231_v47 }
0x208d   :  { %3185 = vtanh.f32 %v2241_v48 }
0x2097   :  { %v3186_v49 = vpop.eup %3185 }
0x2098   :  { %2244 = vrot.lane.b32.xlu0 %v3186_v49, %s3197_s9 }
0x20fa   :  { %v2104_v24 = vpop.permute.xlu1 %2103 }
0x20fb   :  { %v2106_v53 = vmul.f32 %v3180_v35, %v2104_v24 }
0x20fd   :  { %v2107_v27 = vpack.c.bf16 %v2106_v53, %v2106_v53 }
0x20ff   :  { %2109 = vrot.lane.b32.xlu1 %v2107_v27, %s3198_s10 }
0x2103   :  { %2252 = vrot.lane.b32.xlu1 %v2107_v27, %s3197_s9 }
0x210a   :  { %v2245_v51 = vpop.permute.xlu0 %2244 }
0x210b   :  { %v2247_v50 = vmul.f32 %v3182_v40, %v2245_v51 }
0x210d   :  { %v2248_v58 = vpack.c.bf16 %v2247_v50, %v2247_v50 }
0x210f   :  { %2250 = vrot.lane.b32.xlu0 %v2248_v58, %s3198_s10 }
0x2171   :  { %v2110_v23 = vpop.permute.xlu1 %2109 }
0x2172   :  { %2946 = vmatmul.mubr.msk.bf16.vlgmr.msra.gmra.mrb[52].mxu0 %vm33_vm1, %v2110_v23 }
0x2173   :  { %2962 = vmatpush3.bf16.msra.mxu0 %v3612_v1  ;;  %2969 = vmatprep.mubr.msk.bf16.mxu0 %vm3196_vm0, %v3195_v0  ;;  %vm1525_vm0 = vcmp.eq.s32.totalorder %v3944_v30, 1 }
0x2174   :  { %2963 = vmatprep.subr.bf16.mxu0 %v3195_v0 }
0x2175   :  { %v2253_v52 = vpop.permute.xlu1 %2252 }
0x2177   :  { %2964 = vmatpush3.bf16.msra.mxu0 %v3619_v7 }
0x2178   :  { %2965 = vmatprep.subr.bf16.mxu0 %v3195_v0 }
0x217b   :  { %2966 = vmatpush3.bf16.msra.mxu0 %v3627_v2 }
0x217c   :  { %2967 = vmatprep.subr.bf16.mxu0 %v3195_v0 }
0x217f   :  { %2968 = vmatpush3.bf16.msra.mxu0 %v3635_v5 }
0x2181   :  { %v2251_v59 = vpop.permute.xlu0 %2250 }
0x2182   :  { %v2256_v60 = vsel %vm33_vm1, %v2251_v59, %v2253_v52 }
0x2183   :  { %2970 = vmatmul.mubr.msk.bf16.vlgmr.msra.gmra.mrb[56].mxu0 %vm66_vm2, %v2256_v60  ;;  %vm1957_vm2 = vcmp.eq.s32.totalorder %v3944_v30, 3 }
0x2245   :  { %v2148_v1 = vpop.f32.mrb[52].mxu0 }
0x2246   :  { %v2947_v61 = vpop.f32.mrb[53].mxu0  ;;  %v2149_v28 = vadd.f32 %v2473_v13, %v2148_v1 }
0x2247   :  { %v2151_v54 = vpop.f32.mrb[54].mxu0 }
0x2248   :  { %v2948_v57 = vpop.f32.mrb[55].mxu0 }
0x2256   :  { %v2293_v55 = vpop.f32.mrb[56].mxu0 }
0x2257   :  { %v2294_v7 = vadd.f32 %v3664_v21, %v2293_v55  ;;  %v2971_v62 = vpop.f32.mrb[57].mxu0 }
0x2258   :  { %v2296_v63 = vpop.f32.mrb[58].mxu0 }
0x2259   :  { %3187 = vtanh.f32 %v2294_v7  ;;  %v2972_v2 = vpop.f32.mrb[59].mxu0  ;;  %v2505_v5 = vmul.f32 -1.442695, %v2294_v7 }
0x225b   :  { %3189 = vpow2.f32 %v2505_v5 }
0x2263   :  { %v3188_v0 = vpop.eup %3187 }
0x2264   :  { %2308 = vrot.lane.b32.xlu0 %v3188_v0, %s3197_s9 }
0x2265   :  { %v3190_v6 = vpop.eup %3189 }
0x2266   :  { %v2302_v8 = vadd.f32 1.0, %v3190_v6 }
0x2268   :  { %3191 = vrcp.f32 %v2302_v8 }
0x2272   :  { %v3192_v14 = vpop.eup %3191 }
0x2273   :  { %v2306_v18 = vmul.f32 %v3192_v14, %v2100_v45 }
0x22d6   :  { %v2309_v17 = vpop.permute.xlu0 %2308 }
0x22d7   :  { %v2311_v9 = vmul.f32 %v3192_v14, %v2309_v17 }
0x22d9   :  { %2313 = vrot.lane.b32.xlu1 %v2311_v9, %s3198_s10 }
0x234b   :  { %v2314_v11 = vpop.permute.xlu1 %2313 }
0x234c   :  { %v2316_v21 = vadd.f32 %v2314_v11, %v2306_v18 }
0x234e   :  { %3193 = vtanh.f32 %v2316_v21 }
0x2358   :  { %v3194_v4 = vpop.eup %3193 }
0x2359   :  { %2319 = vrot.lane.b32.xlu0 %v3194_v4, %s3197_s9 }
0x2378   :  { %1290 = vmax.xlane.f32.xlu0 %v1285_v16 }
0x237c   :  { %1722 = vmax.xlane.f32.xlu0 %v1717_v19 }
0x2380   :  { %1938 = vmax.xlane.f32.xlu0 %v1933_v56 }
0x23cb   :  { %v2320_v20 = vpop.permute.xlu0 %2319 }
0x23cc   :  { %v2322_v22 = vmul.f32 %v3192_v14, %v2320_v20 }
0x23ce   :  { %v2323_v26 = vpack.c.bf16 %v2322_v22, %v2322_v22 }
0x23d0   :  { %2325 = vrot.lane.b32.xlu1 %v2323_v26, %s3198_s10 }
0x23f4   :  { %1506 = vmax.xlane.f32.xlu1 %v1501_v25 }
0x23f8   :  { %2154 = vmax.xlane.f32.xlu1 %v2149_v28 }
0x2405   :  { %v1291_v12 = vpop.xlane.xlu0 %1290 }
0x2406   :  { %vm1292_vm3 = vcmp.eq.f32.partialorder %v1285_v16, %v1291_v12 }
0x2407   :  { %v1293_v10 = vsel %vm1292_vm3, %v3944_v30, 128  ;;  %vm2173_vm3 = vcmp.eq.s32.totalorder %v3944_v30, 4 }
0x2408   :  { %v1295_v31 = vshra.s32 %v1293_v10, 16  ;;  %v1294_v42 = vand.u32 65535, %v1293_v10 }
0x2409   :  { %v1723_v15 = vpop.xlane.xlu0 %1722 }
0x240a   :  { %v1297_v32 = vcvt.s32.f32 %v1295_v31  ;;  %vm1724_vm4 = vcmp.eq.f32.partialorder %v1717_v19, %v1723_v15  ;;  %v1296_v43 = vcvt.s32.f32 %v1294_v42 }
0x240b   :  { %v1725_v33 = vsel %vm1724_vm4, %v3944_v30, 128  ;;  %vm2389_vm4 = vcmp.eq.s32.totalorder %v3944_v30, 5 }
0x240c   :  { %v1727_v34 = vshra.s32 %v1725_v33, 16  ;;  %1298 = vmin.xlane.f32.xlu1 %v1297_v32  ;;  %v1726_v44 = vand.u32 65535, %v1725_v33 }
0x240d   :  { %v1939_v49 = vpop.xlane.xlu0 %1938 }
0x240e   :  { %v1729_v35 = vcvt.s32.f32 %v1727_v34  ;;  %v1728_v47 = vcvt.s32.f32 %v1726_v44  ;;  %vm1940_vm9 = vcmp.eq.f32.partialorder %v1933_v56, %v1939_v49 }
0x240f   :  { %v1941_v23 = vsel %vm1940_vm9, %v3944_v30, 128 }
0x2410   :  { %1730 = vmin.xlane.f32.xlu1 %v1729_v35  ;;  %v1943_v61 = vshra.s32 %v1941_v23, 16  ;;  %v1942_v6 = vand.u32 65535, %v1941_v23 }
0x2412   :  { %v1945_v55 = vcvt.s32.f32 %v1943_v61  ;;  %v1944_v9 = vcvt.s32.f32 %v1942_v6 }
0x2442   :  { %v2326_v3 = vpop.permute.xlu1 %2325 }
0x2443   :  { %2978 = vmatmul.mubr.msk.bf16.vlgmr.msra.gmra.mrb[56].mxu1 %vm33_vm1, %v2326_v3  ;;  %vm1741_vm1 = vcmp.eq.s32.totalorder %v3944_v30, 2 }
0x2481   :  { %v1507_v37 = vpop.xlane.xlu1 %1506 }
0x2482   :  { %vm1508_vm8 = vcmp.eq.f32.partialorder %v1501_v25, %v1507_v37 }
0x2483   :  { %v1509_v24 = vsel %vm1508_vm8, %v3944_v30, 128 }
0x2484   :  { %v1511_v51 = vshra.s32 %v1509_v24, 16  ;;  %v1510_v2 = vand.u32 65535, %v1509_v24 }
0x2485   :  { %v2155_v38 = vpop.xlane.xlu1 %2154 }
0x2486   :  { %vm2156_vm5 = vcmp.eq.f32.partialorder %v2149_v28, %v2155_v38  ;;  %v1513_v54 = vcvt.s32.f32 %v1511_v51  ;;  %v1512_v8 = vcvt.s32.f32 %v1510_v2 }
0x2487   :  { %v2157_v39 = vsel %vm2156_vm5, %v3944_v30, 128 }
0x2488   :  { %v2159_v40 = vshra.s32 %v2157_v39, 16  ;;  %v2158_v53 = vand.u32 65535, %v2157_v39 }
0x248a   :  { %v2161_v41 = vcvt.s32.f32 %v2159_v40  ;;  %v2160_v59 = vcvt.s32.f32 %v2158_v53 }
0x248c   :  { %2162 = vmin.xlane.f32.xlu1 %v2161_v41 }
0x2499   :  { %v1299_v45 = vpop.xlane.xlu1 %1298 }
0x249a   :  { %vm1300_vm6 = vcmp.eq.f32.partialorder %v1297_v32, %v1299_v45  ;;  %v1305_v21 = vcvt.f32.s32 %v1299_v45 }
0x249b   :  { %v1301_v46 = vsel %vm1300_vm6, %v1296_v43, inf }
0x249c   :  { %1302 = vmin.xlane.f32.xlu1 %v1301_v46  ;;  %v1306_v19 = vshll.u32 %v1305_v21, 16 }
0x249d   :  { %v3950_v36 = vpop.xlane.xlu1 %1730 }
0x249e   :  { %vm1732_vm7 = vcmp.eq.f32.partialorder %v1729_v35, %v3950_v36  ;;  %v1737_v26 = vcvt.f32.s32 %v3950_v36 }
0x249f   :  { %v1733_v48 = vsel %vm1732_vm7, %v1728_v47, inf }
0x24a0   :  { %1734 = vmin.xlane.f32.xlu1 %v1733_v48  ;;  %v1738_v34 = vshll.u32 %v1737_v26, 16 }
0x2516   :  { %v2364_v27 = vpop.f32.mrb[56].mxu1 }
0x2517   :  { %v2365_v50 = vadd.f32 %v2473_v13, %v2364_v27  ;;  %v2979_v58 = vpop.f32.mrb[57].mxu1 }
0x2518   :  { %v2367_v52 = vpop.f32.mrb[58].mxu1 }
0x2519   :  { %2370 = vmax.xlane.f32.xlu0 %v2365_v50  ;;  %v2980_v60 = vpop.f32.mrb[59].mxu1  ;;  %v2163_v1 = vpop.xlane.xlu1 %2162 }
0x251a   :  { %vm2164_vm10 = vcmp.eq.f32.partialorder %v2161_v41, %v2163_v1  ;;  %v2169_v12 = vcvt.f32.s32 %v2163_v1 }
0x251b   :  { %v2165_v57 = vsel %vm2164_vm10, %v2160_v59, inf }
0x251c   :  { %2166 = vmin.xlane.f32.xlu1 %v2165_v57  ;;  %v2170_v38 = vshll.u32 %v2169_v12, 16 }
0x251d   :  { %1514 = vmin.xlane.f32.xlu0 %v1513_v54 }
0x2521   :  { %1946 = vmin.xlane.f32.xlu0 %v1945_v55 }
0x2529   :  { %v1303_v11 = vpop.xlane.xlu1 %1302 }
0x252a   :  { %v1304_v13 = vcvt.f32.s32 %v1303_v11 }
0x252c   :  { %v1307_v25 = vadd.s32 %v1306_v19, %v1304_v13 }
0x252d   :  { %v1735_v16 = vpop.xlane.xlu1 %1734 }
0x252e   :  { %v1736_v10 = vcvt.f32.s32 %v1735_v16  ;;  %v1308_v35 = vcvt.s32.f32 %v1307_v25 }
0x2530   :  { %v1739_v39 = vadd.s32 %v1738_v34, %v1736_v10  ;;  %v1310_v44 = vsel %vm1309_vm15, %v1308_v35, 0.0 }
0x2532   :  { %v1740_v36 = vcvt.s32.f32 %v1739_v39 }
0x25a6   :  { %v2371_v7 = vpop.xlane.xlu0 %2370 }
0x25a7   :  { %vm2372_vm11 = vcmp.eq.f32.partialorder %v2365_v50, %v2371_v7 }
0x25a8   :  { %v2373_v62 = vsel %vm2372_vm11, %v3944_v30, 128 }
0x25a9   :  { %v2375_v63 = vshra.s32 %v2373_v62, 16  ;;  %v2374_v4 = vand.u32 65535, %v2373_v62  ;;  %v2167_v29 = vpop.xlane.xlu1 %2166 }
0x25aa   :  { %v1515_v0 = vpop.xlane.xlu0 %1514  ;;  %v2168_v3 = vcvt.f32.s32 %v2167_v29 }
0x25ab   :  { %v2377_v5 = vcvt.s32.f32 %v2375_v63  ;;  %vm1516_vm12 = vcmp.eq.f32.partialorder %v1513_v54, %v1515_v0  ;;  %v2376_v56 = vcvt.s32.f32 %v2374_v4  ;;  %v1521_v22 = vcvt.f32.s32 %v1515_v0 }
0x25ac   :  { %v1517_v17 = vsel %vm1516_vm12, %v1512_v8, inf  ;;  %v2171_v45 = vadd.s32 %v2170_v38, %v2168_v3 }
0x25ad   :  { %2378 = vmin.xlane.f32.xlu0 %v2377_v5  ;;  %v1522_v15 = vshll.u32 %v1521_v22, 16 }
0x25ae   :  { %v1947_v14 = vpop.xlane.xlu0 %1946  ;;  %v2172_v49 = vcvt.s32.f32 %v2171_v45 }
0x25af   :  { %vm1948_vm13 = vcmp.eq.f32.partialorder %v1945_v55, %v1947_v14  ;;  %v1953_v32 = vcvt.f32.s32 %v1947_v14 }
0x25b0   :  { %v1949_v18 = vsel %vm1948_vm13, %v1944_v9, inf }
0x25b1   :  { %1518 = vmin.xlane.f32.xlu0 %v1517_v17  ;;  %v1954_v41 = vshll.u32 %v1953_v32, 16 }
0x25b5   :  { %1950 = vmin.xlane.f32.xlu0 %v1949_v18 }
0x263a   :  { %v2379_v20 = vpop.xlane.xlu0 %2378 }
0x263b   :  { %vm2380_vm14 = vcmp.eq.f32.partialorder %v2377_v5, %v2379_v20  ;;  %v2385_v51 = vcvt.f32.s32 %v2379_v20 }
0x263c   :  { %v2381_v28 = vsel %vm2380_vm14, %v2376_v56, inf }
0x263d   :  { %2382 = vmin.xlane.f32.xlu0 %v2381_v28  ;;  %v2386_v58 = vshll.u32 %v2385_v51, 16 }
0x263e   :  { %v1519_v31 = vpop.xlane.xlu0 %1518 }
0x263f   :  { %v1520_v33 = vcvt.f32.s32 %v1519_v31 }
0x2641   :  { %v1523_v37 = vadd.s32 %v1522_v15, %v1520_v33 }
0x2642   :  { %v1951_v40 = vpop.xlane.xlu0 %1950 }
0x2643   :  { %v1524_v42 = vcvt.s32.f32 %v1523_v37  ;;  %v1952_v43 = vcvt.f32.s32 %v1951_v40 }
0x2645   :  { %v1526_v46 = vsel %vm1525_vm0, %v1524_v42, %v1310_v44  ;;  %v1955_v47 = vadd.s32 %v1954_v41, %v1952_v43 }
0x2646   :  { %v1742_v24 = vsel %vm1741_vm1, %v1740_v36, %v1526_v46 }
0x2647   :  { %v1956_v48 = vcvt.s32.f32 %v1955_v47 }
0x2649   :  { %v1958_v53 = vsel %vm1957_vm2, %v1956_v48, %v1742_v24 }
0x264a   :  { %v2174_v27 = vsel %vm2173_vm3, %v2172_v49, %v1958_v53 }
0x26ca   :  { %v2383_v50 = vpop.xlane.xlu0 %2382 }
0x26cb   :  { %v2384_v23 = vcvt.f32.s32 %v2383_v50 }
0x26cd   :  { %v2387_v52 = vadd.s32 %v2386_v58, %v2384_v23 }
0x26cf   :  { %v2388_v59 = vcvt.s32.f32 %v2387_v52 }
0x26d1   :  { %v2390_v60 = vsel %vm2389_vm4, %v2388_v59, %v2174_v27 }
0x26d2   :  { %2391 = vst [vmem:[%s3972_s6] sm:$0xff] %v2390_v60 }

</bundles_post_ra>
